<compile_context>
chip_gen: v7x
topology: tpu7x:2x2x1
jax: 0.10.0
libtpu: 0.0.40
codegen_flags: <defaults>
</compile_context>

<pallas_src>
import functools

import jax
import jax.numpy as jnp
from jax.experimental import pallas as pl
from jax.experimental.pallas import tpu as pltpu


# ------------------------------- kernel -------------------------------------

def _flatgcn_kernel(lys, neg_slope,
                    ids_ref, x_ref, us_ref, ut_ref, is_ref, it_ref,
                    w1_ref, b1_ref, w2_ref, b2_ref, w3_ref, b3_ref,
                    o_ref):
    TB = ids_ref.shape[0]
    N = x_ref.shape[0]
    W = x_ref.shape[1]            # 3 * D, lane-dense
    D = W // 3
    H = w1_ref.shape[1]
    hp = jax.lax.Precision.HIGHEST

    x = x_ref[...]                                   # [N, 3D] (f32 or bf16), VMEM-resident
    uid = ids_ref[:, 0:1]                            # [TB, 1] int32
    iid = ids_ref[:, 1:2]

    # In-kernel row gather as a one-hot MXU matmul (exact: one 1.0 per row,
    # HIGHEST precision reconstructs f32 operands; bf16 path is natively exact).
    node = jax.lax.broadcasted_iota(jnp.int32, (TB, N), 1)
    onehot_u = (node == uid).astype(x.dtype)         # [TB, N]
    onehot_i = (node == iid).astype(x.dtype)
    gu = jnp.dot(onehot_u, x, preferred_element_type=jnp.float32, precision=hp)  # [TB, 3D]
    gi = jnp.dot(onehot_i, x, preferred_element_type=jnp.float32, precision=hp)

    # Eval-mode BatchNorm1d affines (3 user BNs / 3 item BNs), lane-dense [1, 3D].
    xu = gu * us_ref[...] + ut_ref[...]              # [TB, 3D] f32
    xi = gi * is_ref[...] + it_ref[...]

    # p_k = sum_d xu[:, a*D:(a+1)*D] * xi[:, b*D:(b+1)*D]   (XLU lane reduce)
    # accumulated straight into the first (BN-folded) Linear via VPU FMAs,
    # avoiding the lane-sparse [TB, L] pred vreg and a K=9 MXU matmul.
    w1 = w1_ref[...]                                 # [L, H]
    h = jnp.zeros((TB, H), jnp.float32)
    for k, (a, b) in enumerate(lys):
        pk = jnp.sum(xu[:, a * D:(a + 1) * D] * xi[:, b * D:(b + 1) * D],
                     axis=-1, keepdims=True)         # [TB, 1]
        h = h + pk * w1[k:k + 1, :]                  # broadcast FMA [TB,1] x [1,H]
    h = h + b1_ref[...]
    h = jnp.where(h > 0, h, neg_slope * h)           # LeakyReLU (Dropout == identity)

    h = jnp.dot(h, w2_ref[...], preferred_element_type=jnp.float32,
                precision=hp) + b2_ref[...]
    h = jnp.where(h > 0, h, neg_slope * h)

    # Final Linear(H -> 1): VPU multiply + lane reduce (no N=1 MXU matmul).
    out = jnp.sum(h * w3_ref[...], axis=-1, keepdims=True) + b3_ref[...]   # [TB, 1]
    o_ref[...] = out.astype(o_ref.dtype)


# --------------------------- wrapper / folding -------------------------------

def fold_params(params, D):
    """One-time folding: MLP BN affines into the Linears; BN affines lane-dense."""
    ls, lt = params["lys_scale"], params["lys_shift"]        # [1, L]
    g1, c1 = params["bn1_scale"], params["bn1_shift"]        # [1, H]
    g2, c2 = params["bn2_scale"], params["bn2_shift"]        # [1, H]
    w1, b1 = params["w1"], params["b1"]                      # [L, H], [1, H]
    w2, b2 = params["w2"], params["b2"]                      # [H, H], [1, H]
    L = w1.shape[0]
    w1f = (ls.reshape(L, 1) * w1) * g1                       # lys_bn + bn1 folded
    b1f = (lt @ w1 + b1) * g1 + c1
    w2f = w2 * g2                                            # bn2 folded
    b2f = b2 * g2 + c2
    return dict(
        u_scale=params["u_scale"].reshape(1, 3 * D),         # lane-dense affines
        u_shift=params["u_shift"].reshape(1, 3 * D),
        i_scale=params["i_scale"].reshape(1, 3 * D),
        i_shift=params["i_shift"].reshape(1, 3 * D),
        w1=w1f, b1=b1f, w2=w2f, b2=b2f,
        w3_row=params["w3"].reshape(1, -1),                  # [1, H]
        b3=params["b3"],                                     # [1, 1]
    )


def flatgcn_forward(X, ids, fparams, lys, neg_slope=0.01, batch_tile=512):
    """FlatGCN forward.  X: [N,3,D] (f32 or bf16), ids: [B,2] int -> [B,1] f32."""
    N, three, D = X.shape
    assert three == 3
    W = 3 * D
    B = ids.shape[0]
    TB = int(batch_tile)
    assert TB % 8 == 0
    G = pl.cdiv(B, TB)
    B_pad = G * TB

    # Lane-dense, VMEM-resident embedding table (DMA'd once, constant index_map).
    x2 = X.reshape(N, W)
    table_bytes = N * W * x2.dtype.itemsize
    # Conservative across generations (v5e scoped-VMEM default is 16 MiB).
    assert table_bytes <= 12 * 1024 * 1024, (
        "embedding table too large for the VMEM-resident gather variant")

    # Pad ids to a multiple of the batch tile; padded rows reuse node 0.
    ids_p = jnp.pad(ids.astype(jnp.int32), ((0, B_pad - B), (0, 0)))

    param_ins = (x2,
                 fparams["u_scale"], fparams["u_shift"],
                 fparams["i_scale"], fparams["i_shift"],
                 fparams["w1"], fparams["b1"],
                 fparams["w2"], fparams["b2"],
                 fparams["w3_row"], fparams["b3"])

    in_specs = [pl.BlockSpec((TB, 2), lambda i: (i, 0))]      # ids: only per-step DMA
    # Table + parameters: constant index_map -> VMEM-resident across grid steps.
    in_specs += [pl.BlockSpec(p.shape, lambda i, nd=p.ndim: (0,) * nd)
                 for p in param_ins]
    # (TB, 1) column store kept: output bytes are <1% of traffic (review: backlog).
    out_spec = pl.BlockSpec((TB, 1), lambda i: (i, 0))

    kernel = functools.partial(_flatgcn_kernel, tuple(lys), float(neg_slope))
    out = pl.pallas_call(
        kernel,
        out_shape=jax.ShapeDtypeStruct((B_pad, 1), jnp.float32),
        grid=(G,),
        in_specs=in_specs,
        out_specs=out_spec,
        compiler_params=pltpu.CompilerParams(
            dimension_semantics=("parallel",)),
    )(ids_p, *param_ins)
    return out[:B]


# ---------------- deterministic parameter construction -----------------------

def _bn_affine(key, shape, eps=1e-5):
    k1, k2, k3, k4 = jax.random.split(key, 4)
    gamma = jax.random.uniform(k1, shape, jnp.float32, 0.5, 1.5)
    beta = 0.1 * jax.random.normal(k2, shape, jnp.float32)
    mean = 0.1 * jax.random.normal(k3, shape, jnp.float32)
    var = jax.random.uniform(k4, shape, jnp.float32, 0.5, 1.5)
    scale = gamma * jax.lax.rsqrt(var + eps)
    shift = beta - mean * scale
    return scale, shift


def init_params(key, D, L, H):
    ks = jax.random.split(key, 11)
    u_scale, u_shift = _bn_affine(ks[0], (3, D))       # 3x user BatchNorm1d(D)
    i_scale, i_shift = _bn_affine(ks[1], (3, D))       # 3x item BatchNorm1d(D)
    lys_scale, lys_shift = _bn_affine(ks[2], (1, L))   # BatchNorm1d(L)
    bn1_scale, bn1_shift = _bn_affine(ks[3], (1, H))   # BatchNorm1d(H)
    bn2_scale, bn2_shift = _bn_affine(ks[4], (1, H))   # BatchNorm1d(H)

    def xavier(k, fan_in, fan_out):                    # xavier_uniform_, stored [in,out]
        bound = (6.0 / (fan_in + fan_out)) ** 0.5
        return jax.random.uniform(k, (fan_in, fan_out), jnp.float32, -bound, bound)

    def bias(k, fan_in, fan_out):
        bound = 1.0 / (fan_in ** 0.5)
        return jax.random.uniform(k, (1, fan_out), jnp.float32, -bound, bound)

    return dict(
        u_scale=u_scale, u_shift=u_shift,
        i_scale=i_scale, i_shift=i_shift,
        lys_scale=lys_scale, lys_shift=lys_shift,
        w1=xavier(ks[5], L, H), b1=bias(ks[6], L, H),
        bn1_scale=bn1_scale, bn1_shift=bn1_shift,
        w2=xavier(ks[7], H, H), b2=bias(ks[8], H, H),
        bn2_scale=bn2_scale, bn2_shift=bn2_shift,
        w3=xavier(ks[9], H, 1), b3=bias(ks[10], H, 1),
    )


# ---------------- pure-JAX reference (unfused params) ------------------------

def flatgcn_reference(X, ids, params, lys, neg_slope=0.01):
    hp = jax.lax.Precision.HIGHEST
    xu = X[ids[:, 0]].astype(jnp.float32) * params["u_scale"][None] + params["u_shift"][None]
    xi = X[ids[:, 1]].astype(jnp.float32) * params["i_scale"][None] + params["i_shift"][None]
    p = jnp.concatenate(
        [jnp.sum(xu[:, a, :] * xi[:, b, :], axis=-1, keepdims=True) for a, b in lys],
        axis=-1)
    p = p * params["lys_scale"] + params["lys_shift"]
    h = jnp.dot(p, params["w1"], precision=hp) + params["b1"]
    h = h * params["bn1_scale"] + params["bn1_shift"]
    h = jnp.where(h > 0, h, neg_slope * h)
    h = jnp.dot(h, params["w2"], precision=hp) + params["b2"]
    h = h * params["bn2_scale"] + params["bn2_shift"]
    h = jnp.where(h > 0, h, neg_slope * h)
    return jnp.dot(h, params["w3"], precision=hp) + params["b3"]


# ----------------------------------- demo ------------------------------------

if __name__ == "__main__":
    N, D, B, H = 64, 32, 200, 64                         # nodes, emb dim, batch, mlp_size
    lys = [(i, j) for i in range(3) for j in range(3)]   # the module's layer pairs
    L = len(lys)

    key = jax.random.PRNGKey(0)
    k_x, k_ids, k_p = jax.random.split(key, 3)
    X = jax.random.normal(k_x, (N, 3, D), jnp.float32)        # embs: [N, 3, D]
    ids = jax.random.randint(k_ids, (B, 2), 0, N, jnp.int32)  # [B, 2]
    params = init_params(k_p, D, L, H)
    fparams = fold_params(params, D)                          # one-time BN folding

    # f32 path (B=200 pads to 256 -> 2 grid steps of 128 rows; keeps >=2 steps
    # so "parallel" can shard across the 2 TensorCores on v7x).
    out = flatgcn_forward(X, ids, fparams, lys, batch_tile=128)
    out = jax.block_until_ready(out)
    ref = flatgcn_reference(X, ids, params, lys)
    rel_err = float(jnp.max(jnp.abs(out - ref)) / (jnp.max(jnp.abs(ref)) + 1e-6))
    assert out.shape == (B, 1), out.shape
    assert rel_err < 1e-4, f"f32 kernel/reference mismatch, rel max err = {rel_err}"

    # bf16 embedding-storage path (halves the table DMA; f32 math after upcast).
    X_bf = X.astype(jnp.bfloat16)
    out_bf = flatgcn_forward(X_bf, ids, fparams, lys, batch_tile=128)
    out_bf = jax.block_until_ready(out_bf)
    ref_bf = flatgcn_reference(X_bf, ids, params, lys)
    rel_err_bf = float(jnp.max(jnp.abs(out_bf - ref_bf)) /
                       (jnp.max(jnp.abs(ref_bf)) + 1e-6))
    assert rel_err_bf < 1e-4, f"bf16 kernel/reference mismatch, rel max err = {rel_err_bf}"

    print("KERNEL_OK")
</pallas_src>

<mosaic_0001>
module attributes {stable_mosaic.version = 11 : i64} {
  func.func @_flatgcn_kernel(%arg0: i32, %arg1: memref<128x2xi32, #tpu.memory_space<vmem>>, %arg2: memref<64x96xf32, #tpu.memory_space<vmem>>, %arg3: memref<1x96xf32, #tpu.memory_space<vmem>>, %arg4: memref<1x96xf32, #tpu.memory_space<vmem>>, %arg5: memref<1x96xf32, #tpu.memory_space<vmem>>, %arg6: memref<1x96xf32, #tpu.memory_space<vmem>>, %arg7: memref<9x64xf32, #tpu.memory_space<vmem>>, %arg8: memref<1x64xf32, #tpu.memory_space<vmem>>, %arg9: memref<64x64xf32, #tpu.memory_space<vmem>>, %arg10: memref<1x64xf32, #tpu.memory_space<vmem>>, %arg11: memref<1x64xf32, #tpu.memory_space<vmem>>, %arg12: memref<1x1xf32, #tpu.memory_space<vmem>>, %arg13: memref<128x1xf32, #tpu.memory_space<vmem>>) attributes {dimension_semantics = [#tpu.dimension_semantics<parallel>], iteration_bounds = array<i64: 2>, scalar_prefetch = 0 : i64, scratch_operands = 0 : i64, tpu.core_type = #tpu.core_type<tc>, window_params = [{transform_indices = @transform_0, window_bounds = array<i64: 128, 2>}, {pipeline_mode = #tpu.pipeline_mode<synchronous>, transform_indices = @transform_1, window_bounds = array<i64: 64, 96>}, {pipeline_mode = #tpu.pipeline_mode<synchronous>, transform_indices = @transform_2, window_bounds = array<i64: 1, 96>}, {pipeline_mode = #tpu.pipeline_mode<synchronous>, transform_indices = @transform_3, window_bounds = array<i64: 1, 96>}, {pipeline_mode = #tpu.pipeline_mode<synchronous>, transform_indices = @transform_4, window_bounds = array<i64: 1, 96>}, {pipeline_mode = #tpu.pipeline_mode<synchronous>, transform_indices = @transform_5, window_bounds = array<i64: 1, 96>}, {pipeline_mode = #tpu.pipeline_mode<synchronous>, transform_indices = @transform_6, window_bounds = array<i64: 9, 64>}, {pipeline_mode = #tpu.pipeline_mode<synchronous>, transform_indices = @transform_7, window_bounds = array<i64: 1, 64>}, {pipeline_mode = #tpu.pipeline_mode<synchronous>, transform_indices = @transform_8, window_bounds = array<i64: 64, 64>}, {pipeline_mode = #tpu.pipeline_mode<synchronous>, transform_indices = @transform_9, window_bounds = array<i64: 1, 64>}, {pipeline_mode = #tpu.pipeline_mode<synchronous>, transform_indices = @transform_10, window_bounds = array<i64: 1, 64>}, {pipeline_mode = #tpu.pipeline_mode<synchronous>, transform_indices = @transform_11, window_bounds = array<i64: 1, 1>}, {transform_indices = @transform_12, window_bounds = array<i64: 128, 1>}]} {
    %c0 = arith.constant 0 : index
    %c0_0 = arith.constant 0 : index
    %0 = vector.load %arg2[%c0, %c0_0] : memref<64x96xf32, #tpu.memory_space<vmem>>, vector<64x96xf32>
    %c0_1 = arith.constant 0 : index
    %c0_2 = arith.constant 0 : index
    %1 = vector.load %arg1[%c0_1, %c0_2] : memref<128x2xi32, #tpu.memory_space<vmem>>, vector<128x1xi32>
    %c0_3 = arith.constant 0 : index
    %c1 = arith.constant 1 : index
    %2 = vector.load %arg1[%c0_3, %c1] : memref<128x2xi32, #tpu.memory_space<vmem>>, vector<128x1xi32>
    %3 = tpu.iota {dimensions = array<i32: 1>} : vector<128x64xi32>
    %4 = vector.broadcast %1 : vector<128x1xi32> to vector<128x64xi32>
    %5 = arith.cmpi eq, %3, %4 : vector<128x64xi32>
    %6 = arith.extui %5 : vector<128x64xi1> to vector<128x64xi32>
    %7 = arith.sitofp %6 : vector<128x64xi32> to vector<128x64xf32>
    %8 = vector.broadcast %2 : vector<128x1xi32> to vector<128x64xi32>
    %9 = arith.cmpi eq, %3, %8 : vector<128x64xi32>
    %10 = arith.extui %9 : vector<128x64xi1> to vector<128x64xi32>
    %11 = arith.sitofp %10 : vector<128x64xi32> to vector<128x64xf32>
    %cst = arith.constant dense<0.000000e+00> : vector<128x96xf32>
    %12 = tpu.matmul %7, %0, %cst {dimension_numbers = #tpu.dot_dimension_numbers<[1], [0], [0], [1], [0, 0, 1, 1], [], []>, precision = #tpu.contract_precision<fp32>} : vector<128x64xf32>, vector<64x96xf32>, vector<128x96xf32> -> vector<128x96xf32>
    %cst_4 = arith.constant dense<0.000000e+00> : vector<128x96xf32>
    %13 = tpu.matmul %11, %0, %cst_4 {dimension_numbers = #tpu.dot_dimension_numbers<[1], [0], [0], [1], [0, 0, 1, 1], [], []>, precision = #tpu.contract_precision<fp32>} : vector<128x64xf32>, vector<64x96xf32>, vector<128x96xf32> -> vector<128x96xf32>
    %c0_5 = arith.constant 0 : index
    %c0_6 = arith.constant 0 : index
    %14 = vector.load %arg3[%c0_5, %c0_6] : memref<1x96xf32, #tpu.memory_space<vmem>>, vector<1x96xf32>
    %15 = vector.broadcast %14 : vector<1x96xf32> to vector<128x96xf32>
    %16 = arith.mulf %12, %15 : vector<128x96xf32>
    %c0_7 = arith.constant 0 : index
    %c0_8 = arith.constant 0 : index
    %17 = vector.load %arg4[%c0_7, %c0_8] : memref<1x96xf32, #tpu.memory_space<vmem>>, vector<1x96xf32>
    %18 = vector.broadcast %17 : vector<1x96xf32> to vector<128x96xf32>
    %19 = arith.addf %16, %18 : vector<128x96xf32>
    %c0_9 = arith.constant 0 : index
    %c0_10 = arith.constant 0 : index
    %20 = vector.load %arg5[%c0_9, %c0_10] : memref<1x96xf32, #tpu.memory_space<vmem>>, vector<1x96xf32>
    %21 = vector.broadcast %20 : vector<1x96xf32> to vector<128x96xf32>
    %22 = arith.mulf %13, %21 : vector<128x96xf32>
    %c0_11 = arith.constant 0 : index
    %c0_12 = arith.constant 0 : index
    %23 = vector.load %arg6[%c0_11, %c0_12] : memref<1x96xf32, #tpu.memory_space<vmem>>, vector<1x96xf32>
    %24 = vector.broadcast %23 : vector<1x96xf32> to vector<128x96xf32>
    %25 = arith.addf %22, %24 : vector<128x96xf32>
    %c0_13 = arith.constant 0 : index
    %c0_14 = arith.constant 0 : index
    %26 = vector.load %arg7[%c0_13, %c0_14] : memref<9x64xf32, #tpu.memory_space<vmem>>, vector<9x64xf32>
    %cst_15 = arith.constant 0.000000e+00 : f32
    %27 = vector.broadcast %cst_15 : f32 to vector<128x64xf32>
    %28 = vector.extract_strided_slice %19 {offsets = [0, 0], sizes = [128, 32], strides = [1, 1]} : vector<128x96xf32> to vector<128x32xf32>
    %29 = vector.extract_strided_slice %25 {offsets = [0, 0], sizes = [128, 32], strides = [1, 1]} : vector<128x96xf32> to vector<128x32xf32>
    %30 = arith.mulf %28, %29 : vector<128x32xf32>
    %cst_16 = arith.constant dense<0.000000e+00> : vector<128xf32>
    %31 = vector.multi_reduction <add>, %30, %cst_16 [1] : vector<128x32xf32> to vector<128xf32>
    %32 = vector.shape_cast %31 : vector<128xf32> to vector<128x1xf32>
    %33 = vector.extract_strided_slice %26 {offsets = [0, 0], sizes = [1, 64], strides = [1, 1]} : vector<9x64xf32> to vector<1x64xf32>
    %34 = vector.broadcast %32 : vector<128x1xf32> to vector<128x64xf32>
    %35 = vector.broadcast %33 : vector<1x64xf32> to vector<128x64xf32>
    %36 = arith.mulf %34, %35 : vector<128x64xf32>
    %37 = arith.addf %27, %36 : vector<128x64xf32>
    %38 = vector.extract_strided_slice %19 {offsets = [0, 0], sizes = [128, 32], strides = [1, 1]} : vector<128x96xf32> to vector<128x32xf32>
    %39 = vector.extract_strided_slice %25 {offsets = [0, 32], sizes = [128, 32], strides = [1, 1]} : vector<128x96xf32> to vector<128x32xf32>
    %40 = arith.mulf %38, %39 : vector<128x32xf32>
    %cst_17 = arith.constant dense<0.000000e+00> : vector<128xf32>
    %41 = vector.multi_reduction <add>, %40, %cst_17 [1] : vector<128x32xf32> to vector<128xf32>
    %42 = vector.shape_cast %41 : vector<128xf32> to vector<128x1xf32>
    %43 = vector.extract_strided_slice %26 {offsets = [1, 0], sizes = [1, 64], strides = [1, 1]} : vector<9x64xf32> to vector<1x64xf32>
    %44 = vector.broadcast %42 : vector<128x1xf32> to vector<128x64xf32>
    %45 = vector.broadcast %43 : vector<1x64xf32> to vector<128x64xf32>
    %46 = arith.mulf %44, %45 : vector<128x64xf32>
    %47 = arith.addf %37, %46 : vector<128x64xf32>
    %48 = vector.extract_strided_slice %19 {offsets = [0, 0], sizes = [128, 32], strides = [1, 1]} : vector<128x96xf32> to vector<128x32xf32>
    %49 = vector.extract_strided_slice %25 {offsets = [0, 64], sizes = [128, 32], strides = [1, 1]} : vector<128x96xf32> to vector<128x32xf32>
    %50 = arith.mulf %48, %49 : vector<128x32xf32>
    %cst_18 = arith.constant dense<0.000000e+00> : vector<128xf32>
    %51 = vector.multi_reduction <add>, %50, %cst_18 [1] : vector<128x32xf32> to vector<128xf32>
    %52 = vector.shape_cast %51 : vector<128xf32> to vector<128x1xf32>
    %53 = vector.extract_strided_slice %26 {offsets = [2, 0], sizes = [1, 64], strides = [1, 1]} : vector<9x64xf32> to vector<1x64xf32>
    %54 = vector.broadcast %52 : vector<128x1xf32> to vector<128x64xf32>
    %55 = vector.broadcast %53 : vector<1x64xf32> to vector<128x64xf32>
    %56 = arith.mulf %54, %55 : vector<128x64xf32>
    %57 = arith.addf %47, %56 : vector<128x64xf32>
    %58 = vector.extract_strided_slice %19 {offsets = [0, 32], sizes = [128, 32], strides = [1, 1]} : vector<128x96xf32> to vector<128x32xf32>
    %59 = vector.extract_strided_slice %25 {offsets = [0, 0], sizes = [128, 32], strides = [1, 1]} : vector<128x96xf32> to vector<128x32xf32>
    %60 = arith.mulf %58, %59 : vector<128x32xf32>
    %cst_19 = arith.constant dense<0.000000e+00> : vector<128xf32>
    %61 = vector.multi_reduction <add>, %60, %cst_19 [1] : vector<128x32xf32> to vector<128xf32>
    %62 = vector.shape_cast %61 : vector<128xf32> to vector<128x1xf32>
    %63 = vector.extract_strided_slice %26 {offsets = [3, 0], sizes = [1, 64], strides = [1, 1]} : vector<9x64xf32> to vector<1x64xf32>
    %64 = vector.broadcast %62 : vector<128x1xf32> to vector<128x64xf32>
    %65 = vector.broadcast %63 : vector<1x64xf32> to vector<128x64xf32>
    %66 = arith.mulf %64, %65 : vector<128x64xf32>
    %67 = arith.addf %57, %66 : vector<128x64xf32>
    %68 = vector.extract_strided_slice %19 {offsets = [0, 32], sizes = [128, 32], strides = [1, 1]} : vector<128x96xf32> to vector<128x32xf32>
    %69 = vector.extract_strided_slice %25 {offsets = [0, 32], sizes = [128, 32], strides = [1, 1]} : vector<128x96xf32> to vector<128x32xf32>
    %70 = arith.mulf %68, %69 : vector<128x32xf32>
    %cst_20 = arith.constant dense<0.000000e+00> : vector<128xf32>
    %71 = vector.multi_reduction <add>, %70, %cst_20 [1] : vector<128x32xf32> to vector<128xf32>
    %72 = vector.shape_cast %71 : vector<128xf32> to vector<128x1xf32>
    %73 = vector.extract_strided_slice %26 {offsets = [4, 0], sizes = [1, 64], strides = [1, 1]} : vector<9x64xf32> to vector<1x64xf32>
    %74 = vector.broadcast %72 : vector<128x1xf32> to vector<128x64xf32>
    %75 = vector.broadcast %73 : vector<1x64xf32> to vector<128x64xf32>
    %76 = arith.mulf %74, %75 : vector<128x64xf32>
    %77 = arith.addf %67, %76 : vector<128x64xf32>
    %78 = vector.extract_strided_slice %19 {offsets = [0, 32], sizes = [128, 32], strides = [1, 1]} : vector<128x96xf32> to vector<128x32xf32>
    %79 = vector.extract_strided_slice %25 {offsets = [0, 64], sizes = [128, 32], strides = [1, 1]} : vector<128x96xf32> to vector<128x32xf32>
    %80 = arith.mulf %78, %79 : vector<128x32xf32>
    %cst_21 = arith.constant dense<0.000000e+00> : vector<128xf32>
    %81 = vector.multi_reduction <add>, %80, %cst_21 [1] : vector<128x32xf32> to vector<128xf32>
    %82 = vector.shape_cast %81 : vector<128xf32> to vector<128x1xf32>
    %83 = vector.extract_strided_slice %26 {offsets = [5, 0], sizes = [1, 64], strides = [1, 1]} : vector<9x64xf32> to vector<1x64xf32>
    %84 = vector.broadcast %82 : vector<128x1xf32> to vector<128x64xf32>
    %85 = vector.broadcast %83 : vector<1x64xf32> to vector<128x64xf32>
    %86 = arith.mulf %84, %85 : vector<128x64xf32>
    %87 = arith.addf %77, %86 : vector<128x64xf32>
    %88 = vector.extract_strided_slice %19 {offsets = [0, 64], sizes = [128, 32], strides = [1, 1]} : vector<128x96xf32> to vector<128x32xf32>
    %89 = vector.extract_strided_slice %25 {offsets = [0, 0], sizes = [128, 32], strides = [1, 1]} : vector<128x96xf32> to vector<128x32xf32>
    %90 = arith.mulf %88, %89 : vector<128x32xf32>
    %cst_22 = arith.constant dense<0.000000e+00> : vector<128xf32>
    %91 = vector.multi_reduction <add>, %90, %cst_22 [1] : vector<128x32xf32> to vector<128xf32>
    %92 = vector.shape_cast %91 : vector<128xf32> to vector<128x1xf32>
    %93 = vector.extract_strided_slice %26 {offsets = [6, 0], sizes = [1, 64], strides = [1, 1]} : vector<9x64xf32> to vector<1x64xf32>
    %94 = vector.broadcast %92 : vector<128x1xf32> to vector<128x64xf32>
    %95 = vector.broadcast %93 : vector<1x64xf32> to vector<128x64xf32>
    %96 = arith.mulf %94, %95 : vector<128x64xf32>
    %97 = arith.addf %87, %96 : vector<128x64xf32>
    %98 = vector.extract_strided_slice %19 {offsets = [0, 64], sizes = [128, 32], strides = [1, 1]} : vector<128x96xf32> to vector<128x32xf32>
    %99 = vector.extract_strided_slice %25 {offsets = [0, 32], sizes = [128, 32], strides = [1, 1]} : vector<128x96xf32> to vector<128x32xf32>
    %100 = arith.mulf %98, %99 : vector<128x32xf32>
    %cst_23 = arith.constant dense<0.000000e+00> : vector<128xf32>
    %101 = vector.multi_reduction <add>, %100, %cst_23 [1] : vector<128x32xf32> to vector<128xf32>
    %102 = vector.shape_cast %101 : vector<128xf32> to vector<128x1xf32>
    %103 = vector.extract_strided_slice %26 {offsets = [7, 0], sizes = [1, 64], strides = [1, 1]} : vector<9x64xf32> to vector<1x64xf32>
    %104 = vector.broadcast %102 : vector<128x1xf32> to vector<128x64xf32>
    %105 = vector.broadcast %103 : vector<1x64xf32> to vector<128x64xf32>
    %106 = arith.mulf %104, %105 : vector<128x64xf32>
    %107 = arith.addf %97, %106 : vector<128x64xf32>
    %108 = vector.extract_strided_slice %19 {offsets = [0, 64], sizes = [128, 32], strides = [1, 1]} : vector<128x96xf32> to vector<128x32xf32>
    %109 = vector.extract_strided_slice %25 {offsets = [0, 64], sizes = [128, 32], strides = [1, 1]} : vector<128x96xf32> to vector<128x32xf32>
    %110 = arith.mulf %108, %109 : vector<128x32xf32>
    %cst_24 = arith.constant dense<0.000000e+00> : vector<128xf32>
    %111 = vector.multi_reduction <add>, %110, %cst_24 [1] : vector<128x32xf32> to vector<128xf32>
    %112 = vector.shape_cast %111 : vector<128xf32> to vector<128x1xf32>
    %113 = vector.extract_strided_slice %26 {offsets = [8, 0], sizes = [1, 64], strides = [1, 1]} : vector<9x64xf32> to vector<1x64xf32>
    %114 = vector.broadcast %112 : vector<128x1xf32> to vector<128x64xf32>
    %115 = vector.broadcast %113 : vector<1x64xf32> to vector<128x64xf32>
    %116 = arith.mulf %114, %115 : vector<128x64xf32>
    %117 = arith.addf %107, %116 : vector<128x64xf32>
    %c0_25 = arith.constant 0 : index
    %c0_26 = arith.constant 0 : index
    %118 = vector.load %arg8[%c0_25, %c0_26] : memref<1x64xf32, #tpu.memory_space<vmem>>, vector<1x64xf32>
    %119 = vector.broadcast %118 : vector<1x64xf32> to vector<128x64xf32>
    %120 = arith.addf %117, %119 : vector<128x64xf32>
    %cst_27 = arith.constant 0.000000e+00 : f32
    %121 = vector.broadcast %cst_27 : f32 to vector<128x64xf32>
    %122 = arith.cmpf ogt, %120, %121 : vector<128x64xf32>
    %cst_28 = arith.constant 0.00999999977 : f32
    %123 = vector.broadcast %cst_28 : f32 to vector<128x64xf32>
    %124 = arith.mulf %123, %120 : vector<128x64xf32>
    %125 = arith.select %122, %120, %124 : vector<128x64xi1>, vector<128x64xf32>
    %c0_29 = arith.constant 0 : index
    %c0_30 = arith.constant 0 : index
    %126 = vector.load %arg9[%c0_29, %c0_30] : memref<64x64xf32, #tpu.memory_space<vmem>>, vector<64x64xf32>
    %cst_31 = arith.constant dense<0.000000e+00> : vector<128x64xf32>
    %127 = tpu.matmul %125, %126, %cst_31 {dimension_numbers = #tpu.dot_dimension_numbers<[1], [0], [0], [1], [0, 0, 1, 1], [], []>, precision = #tpu.contract_precision<fp32>} : vector<128x64xf32>, vector<64x64xf32>, vector<128x64xf32> -> vector<128x64xf32>
    %c0_32 = arith.constant 0 : index
    %c0_33 = arith.constant 0 : index
    %128 = vector.load %arg10[%c0_32, %c0_33] : memref<1x64xf32, #tpu.memory_space<vmem>>, vector<1x64xf32>
    %129 = vector.broadcast %128 : vector<1x64xf32> to vector<128x64xf32>
    %130 = arith.addf %127, %129 : vector<128x64xf32>
    %cst_34 = arith.constant 0.000000e+00 : f32
    %131 = vector.broadcast %cst_34 : f32 to vector<128x64xf32>
    %132 = arith.cmpf ogt, %130, %131 : vector<128x64xf32>
    %cst_35 = arith.constant 0.00999999977 : f32
    %133 = vector.broadcast %cst_35 : f32 to vector<128x64xf32>
    %134 = arith.mulf %133, %130 : vector<128x64xf32>
    %135 = arith.select %132, %130, %134 : vector<128x64xi1>, vector<128x64xf32>
    %c0_36 = arith.constant 0 : index
    %c0_37 = arith.constant 0 : index
    %136 = vector.load %arg11[%c0_36, %c0_37] : memref<1x64xf32, #tpu.memory_space<vmem>>, vector<1x64xf32>
    %137 = vector.broadcast %136 : vector<1x64xf32> to vector<128x64xf32>
    %138 = arith.mulf %135, %137 : vector<128x64xf32>
    %cst_38 = arith.constant dense<0.000000e+00> : vector<128xf32>
    %139 = vector.multi_reduction <add>, %138, %cst_38 [1] : vector<128x64xf32> to vector<128xf32>
    %140 = vector.shape_cast %139 : vector<128xf32> to vector<128x1xf32>
    %c0_39 = arith.constant 0 : index
    %c0_40 = arith.constant 0 : index
    %141 = vector.load %arg12[%c0_39, %c0_40] : memref<1x1xf32, #tpu.memory_space<vmem>>, vector<1x1xf32>
    %142 = vector.broadcast %141 : vector<1x1xf32> to vector<128x1xf32>
    %143 = arith.addf %140, %142 : vector<128x1xf32>
    %c0_41 = arith.constant 0 : index
    %c0_42 = arith.constant 0 : index
    %144 = vector.load %arg13[%c0_41, %c0_42] : memref<128x1xf32, #tpu.memory_space<vmem>>, vector<128x1xf32>
    tpu.vector_store %arg13[%c0_41, %c0_42], %143 {strides = array<i32>} : memref<128x1xf32, #tpu.memory_space<vmem>>, vector<128x1xf32>,
    return
  }
  func.func @transform_0(%arg0: i32) -> (i32, i32) {
    %c0_i32 = arith.constant 0 : i32
    %c0_i32_0 = arith.constant 0 : i32
    return %arg0, %c0_i32 : i32, i32
  }
  func.func @transform_1(%arg0: i32) -> (i32, i32) {
    %c0_i32 = arith.constant 0 : i32
    %c0_i32_0 = arith.constant 0 : i32
    %c0_i32_1 = arith.constant 0 : i32
    return %c0_i32, %c0_i32_0 : i32, i32
  }
  func.func @transform_2(%arg0: i32) -> (i32, i32) {
    %c0_i32 = arith.constant 0 : i32
    %c0_i32_0 = arith.constant 0 : i32
    %c0_i32_1 = arith.constant 0 : i32
    return %c0_i32, %c0_i32_0 : i32, i32
  }
  func.func @transform_3(%arg0: i32) -> (i32, i32) {
    %c0_i32 = arith.constant 0 : i32
    %c0_i32_0 = arith.constant 0 : i32
    %c0_i32_1 = arith.constant 0 : i32
    return %c0_i32, %c0_i32_0 : i32, i32
  }
  func.func @transform_4(%arg0: i32) -> (i32, i32) {
    %c0_i32 = arith.constant 0 : i32
    %c0_i32_0 = arith.constant 0 : i32
    %c0_i32_1 = arith.constant 0 : i32
    return %c0_i32, %c0_i32_0 : i32, i32
  }
  func.func @transform_5(%arg0: i32) -> (i32, i32) {
    %c0_i32 = arith.constant 0 : i32
    %c0_i32_0 = arith.constant 0 : i32
    %c0_i32_1 = arith.constant 0 : i32
    return %c0_i32, %c0_i32_0 : i32, i32
  }
  func.func @transform_6(%arg0: i32) -> (i32, i32) {
    %c0_i32 = arith.constant 0 : i32
    %c0_i32_0 = arith.constant 0 : i32
    %c0_i32_1 = arith.constant 0 : i32
    return %c0_i32, %c0_i32_0 : i32, i32
  }
  func.func @transform_7(%arg0: i32) -> (i32, i32) {
    %c0_i32 = arith.constant 0 : i32
    %c0_i32_0 = arith.constant 0 : i32
    %c0_i32_1 = arith.constant 0 : i32
    return %c0_i32, %c0_i32_0 : i32, i32
  }
  func.func @transform_8(%arg0: i32) -> (i32, i32) {
    %c0_i32 = arith.constant 0 : i32
    %c0_i32_0 = arith.constant 0 : i32
    %c0_i32_1 = arith.constant 0 : i32
    return %c0_i32, %c0_i32_0 : i32, i32
  }
  func.func @transform_9(%arg0: i32) -> (i32, i32) {
    %c0_i32 = arith.constant 0 : i32
    %c0_i32_0 = arith.constant 0 : i32
    %c0_i32_1 = arith.constant 0 : i32
    return %c0_i32, %c0_i32_0 : i32, i32
  }
  func.func @transform_10(%arg0: i32) -> (i32, i32) {
    %c0_i32 = arith.constant 0 : i32
    %c0_i32_0 = arith.constant 0 : i32
    %c0_i32_1 = arith.constant 0 : i32
    return %c0_i32, %c0_i32_0 : i32, i32
  }
  func.func @transform_11(%arg0: i32) -> (i32, i32) {
    %c0_i32 = arith.constant 0 : i32
    %c0_i32_0 = arith.constant 0 : i32
    %c0_i32_1 = arith.constant 0 : i32
    return %c0_i32, %c0_i32_0 : i32, i32
  }
  func.func @transform_12(%arg0: i32) -> (i32, i32) {
    %c0_i32 = arith.constant 0 : i32
    %c0_i32_0 = arith.constant 0 : i32
    return %arg0, %c0_i32 : i32, i32
  }
}

</mosaic_0001>

<bundles_post_ra>
// kernel: tpu_custom_call.1
= control target key start
LH: loop header
LB: loop body
LE: loop exit
PB: predicated region body
PF: predicated region fallthrough
CT: control target
= control target key end

     0   :  { %s8000_s23 = smov 0   ;;  %s10819_s0 = inlined_call_operand.vmem [shape: s32[256,2], index: 0, kind: input, shape index: {}]   ;;  %s10820_s1 = inlined_call_operand.vmem [shape: f32[64,96], index: 1, kind: input, shape index: {}]   ;;  %s10821_s2 = inlined_call_operand.vmem [shape: f32[1,96], index: 2, kind: input, shape index: {}]   ;;  %s10822_s3 = inlined_call_operand.vmem [shape: f32[1,96], index: 3, kind: input, shape index: {}]   ;;  %s10823_s4 = inlined_call_operand.vmem [shape: f32[1,96], index: 4, kind: input, shape index: {}]   ;;  %s10824_s5 = inlined_call_operand.vmem [shape: f32[1,96], index: 5, kind: input, shape index: {}]   ;;  %s10825_s6 = inlined_call_operand.vmem [shape: f32[9,64], index: 6, kind: input, shape index: {}]   ;;  %s10826_s7 = inlined_call_operand.vmem [shape: f32[1,64], index: 7, kind: input, shape index: {}]   ;;  %s10827_s8 = inlined_call_operand.vmem [shape: f32[64,64], index: 8, kind: input, shape index: {}]   ;;  %s10828_s9 = inlined_call_operand.vmem [shape: f32[1,64], index: 9, kind: input, shape index: {}]   ;;  %s10829_s10 = inlined_call_operand.vmem [shape: f32[1,64], index: 10, kind: input, shape index: {}]   ;;  %s10830_s11 = inlined_call_operand.<no memory space> [shape: f32[1,1], index: 11, kind: input, shape index: {}]   ;;  %s10831_s12 = inlined_call_operand.vmem [shape: f32[256,1], index: 12, kind: output, shape index: {}]  }
   0x1   :  { %v17_v0 = vstv %s10830_s11 }
   0x2   :  { %18 = vst [vmem:[#allocation2] sm:$0x1] %v17_v0 }
   0x3 LB: > { %s6056_s24 = sadd.s32 4294967295, %s7924_s23   ;;  %p6060_p0 = scmp.ge.s32.totalorder %s7924_s23, 1  ;;  %s7924_s23 = sphi %s8000_s23, %s24_s23  }
   0x4   : > { %p365_p1 = scmp.lt.s32.totalorder %s7924_s23, 3 }
   0x6   : > { %p366_p2 = pnand %p6060_p0, %p365_p1 }
   0x8   : > { %369 = sbr.rel (%p366_p2) target bundleno = 2624 (0xa40), region = 68 }
   0xf   : > { %s6061_s25 = sshll.u32 %s6056_s24, 4  ;;  %v419_v1 = vld [vmem:[%s10820_s1] sm:$0xff]  ;;  %v420_v2 = vld [vmem:[%s10820_s1 + $0x8] sm:$0xff]  ;;  %v8017_v3 = vld [vmem:[%s10820_s1 + $0x10] sm:$0xff]  ;;  %v7926_v4 = vmov 0   ;;  %v7927_v60 = vmov 1  }
  0x10   : > { %7915 = vset.pattern.permute.xlu1 %v7926_v4  ;;  %7914 = vset.pattern.permute.xlu0 %v7926_v4  ;;  %p408_p3 = scmp.lt.s32.totalorder %s6061_s25, 31  ;;  %v687_v5 = vand.u32 4294901760, %v419_v1  ;;  %v690_v6 = vand.u32 4294901760, %v420_v2  ;;  %v8022_v7 = vld [vmem:[%s10820_s1 + $0x18] sm:$0xff]  ;;  %v693_v8 = vand.u32 4294901760, %v8017_v3  ;;  %v8051_v12 = vld [vmem:[%s10820_s1 + $0x20] sm:$0xff] }
  0x11   : > { %v696_v9 = vand.u32 4294901760, %v8022_v7  ;;  %v8056_v13 = vld [vmem:[%s10820_s1 + $0x28] sm:$0xff]  ;;  %v699_v16 = vand.u32 4294901760, %v8051_v12  ;;  %v8091_v21 = vld [vmem:[%s10820_s1 + $0x30] sm:$0xff]  ;;  %v8096_v22 = vld [vmem:[%s10820_s1 + $0x38] sm:$0xff]  ;;  %vm637_vm0 = vcmask 523264  }
  0x12   : > { %s11079_s25 = smov (!%p408_p3, %s6061_s25), 31  ;;  %v8028_v10 = vpack.c.bf16 %v690_v6, %v687_v5  ;;  %v702_v17 = vand.u32 4294901760, %v8056_v13  ;;  %v705_v25 = vand.u32 4294901760, %v8091_v21  ;;  %v708_v26 = vand.u32 4294901760, %v8096_v22  ;;  %s7929_s19 = smov 32  }
  0x13   : > { %v8034_v11 = vpack.c.bf16 %v696_v9, %v693_v8  ;;  %s6062_s15 = sshll.u32 %s11079_s25, 3  ;;  %v8134_v32 = vsub.f32 %v419_v1, %v687_v5  ;;  %v8136_v33 = vsub.f32 %v420_v2, %v690_v6  ;;  %v935_v45 = vsub.f32 %v8017_v3, %v693_v8  ;;  %s7930_s20 = smov 96  }
  0x14   : > { %7405 = vmatprep.subr.bf16.mxu0 %v8028_v10  ;;  %7357 = vmatprep.subr.bf16.mxu1 %v8028_v10  ;;  %s8044_s18 = scalar_lea.vmem %s10819_s0, %s6062_s15  ;;  %v8080_v20 = vpack.c.bf16 %v702_v17, %v699_v16  ;;  %v8112_v27 = vpack.c.bf16 %v708_v26, %v705_v25  ;;  %v942_v46 = vsub.f32 %v8022_v7, %v696_v9  ;;  %s7931_s21 = smov 64  }
  0x15   : > { %7407 = vmatpush3.bf16.msra.mxu0 %v8028_v10  ;;  %7359 = vmatpush3.bf16.msra.mxu1 %v8028_v10  ;;  %v8059_v14 = vld [vmem:[%s8044_s18 + $0x10] sm:$0xff]  ;;  %v8062_v15 = vld [vmem:[%s8044_s18] sm:$0xff]  ;;  %v8071_v18 = vld [vmem:[%s8044_s18 + $0x18] sm:$0xff]  ;;  %v922_v36 = vand.u32 4294901760, %v8134_v32  ;;  %v929_v37 = vand.u32 4294901760, %v8136_v33  ;;  %v936_v49 = vand.u32 4294901760, %v935_v45  ;;  %v949_v56 = vsub.f32 %v8051_v12, %v699_v16 }
  0x16   : > { %7409 = vmatprep.subr.bf16.mxu0 %v8034_v11  ;;  %7361 = vmatprep.subr.bf16.mxu1 %v8034_v11  ;;  %v8074_v19 = vld [vmem:[%s8044_s18 + $0x8] sm:$0xff]  ;;  %v8102_v24 = vld [vmem:[%s8044_s18 + $0x20] sm:$0xff]  ;;  %v8117_v28 = vld [vmem:[%s8044_s18 + $0x38] sm:$0xff]  ;;  %v943_v50 = vand.u32 4294901760, %v942_v46  ;;  %v956_v57 = vsub.f32 %v8056_v13, %v702_v17  ;;  %v963_v2 = vsub.f32 %v8091_v21, %v705_v25  ;;  %v970_v3 = vsub.f32 %v8096_v22, %v708_v26 }
  0x17   : > { %452 = vperm.xlu1 %7915, %v8059_v14   ;;  %446 = vperm.xlu0 %7914, %v8062_v15   ;;  %v8099_v23 = vld [vmem:[%s8044_s18 + $0x28] sm:$0xff]  ;;  %v8120_v29 = vld [vmem:[%s8044_s18 + $0x30] sm:$0xff]  ;;  %v8132_v31 = vld [vmem:[%s8044_s18 + $0x40] sm:$0xff]  ;;  %v923_v38 = vsub.f32 %v8134_v32, %v922_v36  ;;  %v930_v39 = vsub.f32 %v8136_v33, %v929_v37  ;;  %v8165_v51 = vpack.c.bf16 %v929_v37, %v922_v36  ;;  %v950_v61 = vand.u32 4294901760, %v949_v56 }
  0x18   : > { %v8129_v30 = vld [vmem:[%s8044_s18 + $0x48] sm:$0xff]  ;;  %v8141_v34 = vld [vmem:[%s8044_s18 + $0x58] sm:$0xff]  ;;  %v8144_v35 = vld [vmem:[%s8044_s18 + $0x50] sm:$0xff]  ;;  %v937_v52 = vsub.f32 %v935_v45, %v936_v49  ;;  %v944_v53 = vsub.f32 %v942_v46, %v943_v50  ;;  %v8174_v58 = vpack.c.bf16 %v943_v50, %v936_v49  ;;  %v957_v62 = vand.u32 4294901760, %v956_v57 }
  0x19   : > { %7411 = vmatpush3.bf16.msra.mxu0 %v8034_v11  ;;  %7363 = vmatpush3.bf16.msra.mxu1 %v8034_v11  ;;  %v440_v40 = vld [vmem:[%s8044_s18 + $0x68] sm:$0xff]  ;;  %v439_v41 = vld [vmem:[%s8044_s18 + $0x60] sm:$0xff]  ;;  %v924_v42 = vand.u32 4294901760, %v923_v38  ;;  %v931_v43 = vand.u32 4294901760, %v930_v39  ;;  %v442_v47 = vld [vmem:[%s8044_s18 + $0x78] sm:$0xff]  ;;  %10886 = vst [vmem:[#allocation3_spill] sm:$0xff] %v8165_v51  ;;  %v951_v63 = vsub.f32 %v949_v56, %v950_v61  ;;  %v8212_v21 = vpack.c.bf16 %v970_v3, %v963_v2 }
  0x1a   : > { %7413 = vmatprep.subr.bf16.mxu0 %v8080_v20  ;;  %7365 = vmatprep.subr.bf16.mxu1 %v8080_v20  ;;  %v441_v48 = vld [vmem:[%s8044_s18 + $0x70] sm:$0xff]  ;;  %v938_v54 = vand.u32 4294901760, %v937_v52  ;;  %v945_v55 = vand.u32 4294901760, %v944_v53  ;;  %10887 = vst [vmem:[#allocation4_spill] sm:$0xff] %v8174_v58  ;;  %v958_v0 = vsub.f32 %v956_v57, %v957_v62  ;;  %v8180_v1 = vpack.c.bf16 %v957_v62, %v950_v61  ;;  %s10782_s18 = scalar_lea.vmem %s10831_s12, %s6062_s15 }
  0x1b   : > { %455 = vperm.xlu1 %7915, %v8071_v18   ;;  %449 = vperm.xlu0 %7914, %v8074_v19   ;;  %v8154_v44 = vpack.c.bf16 %v931_v43, %v924_v42  ;;  %v952_v4 = vand.u32 4294901760, %v951_v63  ;;  %v964_v6 = vand.u32 4294901760, %v963_v2  ;;  %v971_v7 = vand.u32 4294901760, %v970_v3 }
  0x1c   : > { %v8176_v59 = vpack.c.bf16 %v945_v55, %v938_v54  ;;  %10888 = vst [vmem:[#allocation5_spill] sm:$0xff] %v8180_v1  ;;  %v959_v5 = vand.u32 4294901760, %v958_v0  ;;  %v10832_v22 = vlaneseq  ;;  %v10833_v26 = vmov 0.0  }
  0x1d   : > { %7415 = vmatpush3.bf16.msra.mxu0 %v8080_v20  ;;  %7367 = vmatpush3.bf16.msra.mxu1 %v8080_v20  ;;  %v965_v9 = vsub.f32 %v963_v2, %v964_v6  ;;  %v972_v12 = vsub.f32 %v970_v3, %v971_v7  ;;  %v8192_v13 = vpack.c.bf16 %v971_v7, %v964_v6 }
  0x1e   : > { %7417 = vmatprep.subr.bf16.mxu0 %v8112_v27  ;;  %7369 = vmatprep.subr.bf16.mxu1 %v8112_v27  ;;  %v8190_v8 = vpack.c.bf16 %v959_v5, %v952_v4 }
  0x1f   : > { %461 = vperm.xlu1 %7915, %v8099_v23   ;;  %458 = vperm.xlu0 %7914, %v8102_v24   ;;  %10889 = vst [vmem:[#allocation6_spill] sm:$0xff] %v8192_v13  ;;  %v973_v16 = vand.u32 4294901760, %v972_v12 }
  0x21   : > { %7419 = vmatpush3.bf16.msra.mxu0 %v8112_v27  ;;  %7371 = vmatpush3.bf16.msra.mxu1 %v8112_v27 }
  0x22   : > { %7373 = vmatprep.subr.bf16.mxu1 %v8154_v44  ;;  %7421 = vmatprep.subr.bf16.mxu0 %v8165_v51 }
  0x23   : > { %467 = vperm.xlu1 %7915, %v8117_v28   ;;  %464 = vperm.xlu0 %7914, %v8120_v29  }
  0x27   : > { %473 = vperm.xlu1 %7915, %v8129_v30   ;;  %470 = vperm.xlu0 %7914, %v8132_v31  }
  0x2b   : > { %479 = vperm.xlu1 %7915, %v8141_v34   ;;  %476 = vperm.xlu0 %7914, %v8144_v35  }
  0x2f   : > { %485 = vperm.xlu1 %7915, %v440_v40   ;;  %482 = vperm.xlu0 %7914, %v439_v41  }
  0x33   : > { %491 = vperm.xlu1 %7915, %v442_v47   ;;  %488 = vperm.xlu0 %7914, %v441_v48  }
  0x37   : > { %7917 = vset.pattern.permute.xlu1 %v7927_v60  ;;  %7916 = vset.pattern.permute.xlu0 %v7927_v60 }
  0x38   : > { %545 = vperm.xlu1 %7917, %v8074_v19   ;;  %542 = vperm.xlu0 %7916, %v8062_v15   ;;  %v966_v15 = vand.u32 4294901760, %v965_v9  ;;  %v8210_v19 = vpack.c.bf16 %v956_v57, %v949_v56 }
  0x3a   : > { %v8196_v17 = vpack.c.bf16 %v973_v16, %v966_v15 }
  0x3c   : > { %548 = vperm.xlu1 %7917, %v8059_v14   ;;  %551 = vperm.xlu0 %7916, %v8071_v18   ;;  %v8200_v14 = vpack.c.bf16 %v8136_v33, %v8134_v32  ;;  %v8206_v18 = vpack.c.bf16 %v942_v46, %v935_v45 }
  0x40   : > { %554 = vperm.xlu1 %7917, %v8102_v24   ;;  %557 = vperm.xlu0 %7916, %v8099_v23   ;;  %v8215_v23 = vand.u32 127, %v10832_v22 }
  0x44   : > { %560 = vperm.xlu1 %7917, %v8120_v29   ;;  %563 = vperm.xlu0 %7916, %v8117_v28  }
  0x48   : > { %566 = vperm.xlu1 %7917, %v8132_v31   ;;  %569 = vperm.xlu0 %7916, %v8129_v30  }
  0x4c   : > { %572 = vperm.xlu1 %7917, %v8144_v35   ;;  %575 = vperm.xlu0 %7916, %v8141_v34  }
  0x50   : > { %578 = vperm.xlu1 %7917, %v439_v41   ;;  %581 = vperm.xlu0 %7916, %v440_v40  }
  0x54   : > { %584 = vperm.xlu1 %7917, %v441_v48   ;;  %587 = vperm.xlu0 %7916, %v442_v47  }
  0x96   : > { %v453_v24 = vpop.permute.xlu1 %452  ;;  %v447_v25 = vpop.permute.xlu0 %446 }
  0x97   : > { %vm495_vm1 = vcmp.eq.s32.totalorder %v8215_v23, %v453_v24  ;;  %vm493_vm2 = vcmp.eq.s32.totalorder %v8215_v23, %v447_v25 }
  0x98   : > { %v8220_v28 = vsel %vm495_vm1, 1.0, %v10833_v26  ;;  %v8223_v29 = vsel %vm493_vm2, 1.0, %v10833_v26 }
  0x99   : > { %v645_v30 = vsel %vm637_vm0, %v8220_v28, 0  ;;  %v639_v31 = vsel %vm637_vm0, %v8223_v29, 0 }
  0x9a   : > { %v8229_v32 = vsub.f32 %v645_v30, %v645_v30  ;;  %v456_v33 = vpop.permute.xlu1 %455  ;;  %v450_v34 = vpop.permute.xlu0 %449  ;;  %v8231_v35 = vsub.f32 %v639_v31, %v639_v31 }
  0x9b   : > { %vm496_vm3 = vcmp.eq.s32.totalorder %v8215_v23, %v456_v33  ;;  %vm494_vm4 = vcmp.eq.s32.totalorder %v8215_v23, %v450_v34 }
  0x9c   : > { %v8236_v36 = vsel %vm496_vm3, 1.0, %v10833_v26  ;;  %v8239_v37 = vsel %vm494_vm4, 1.0, %v10833_v26  ;;  %v761_v38 = vand.u32 4294901760, %v8231_v35  ;;  %v781_v41 = vand.u32 4294901760, %v8229_v32 }
  0x9d   : > { %v648_v39 = vsel %vm637_vm0, %v8236_v36, 0  ;;  %v642_v40 = vsel %vm637_vm0, %v8239_v37, 0 }
  0x9e   : > { %v8247_v42 = vsub.f32 %v648_v39, %v648_v39  ;;  %v8249_v43 = vsub.f32 %v642_v40, %v642_v40  ;;  %v462_v45 = vpop.permute.xlu1 %461  ;;  %6772 = vmatprep.mubr.f32.mxu0 %v761_v38  ;;  %v459_v46 = vpop.permute.xlu0 %458  ;;  %v762_v47 = vsub.f32 %v8231_v35, %v761_v38  ;;  %v782_v56 = vsub.f32 %v8229_v32, %v781_v41 }
  0x9f   : > { %vm498_vm5 = vcmp.eq.s32.totalorder %v8215_v23, %v462_v45  ;;  %vm497_vm6 = vcmp.eq.s32.totalorder %v8215_v23, %v459_v46 }
  0xa0   : > { %v8255_v48 = vsel %vm498_vm5, 1.0, %v10833_v26  ;;  %v8258_v49 = vsel %vm497_vm6, 1.0, %v10833_v26  ;;  %v763_v50 = vand.u32 4294901760, %v762_v47  ;;  %v771_v52 = vand.u32 4294901760, %v8249_v43 }
  0xa1   : > { %v654_v53 = vsel %vm637_vm0, %v8255_v48, 0  ;;  %v651_v54 = vsel %vm637_vm0, %v8258_v49, 0  ;;  %v791_v55 = vand.u32 4294901760, %v8247_v42  ;;  %v783_v9 = vand.u32 4294901760, %v782_v56 }
  0xa2   : > { %v8267_v57 = vsub.f32 %v654_v53, %v654_v53  ;;  %v8269_v60 = vsub.f32 %v651_v54, %v651_v54  ;;  %v468_v61 = vpop.permute.xlu1 %467  ;;  %6652 = vmatprep.mubr.f32.mxu1 %v763_v50  ;;  %6773 = vmatmul.mubr.f32.vlgmr.msra.gmra.mrb[0].mxu0 %v771_v52  ;;  %v465_v62 = vpop.permute.xlu0 %464  ;;  %v772_v63 = vsub.f32 %v8249_v43, %v771_v52 }
  0xa3   : > { %vm500_vm7 = vcmp.eq.s32.totalorder %v8215_v23, %v468_v61  ;;  %vm499_vm8 = vcmp.eq.s32.totalorder %v8215_v23, %v465_v62  ;;  %6775 = vmatprep.mubr.f32.mxu0 %v781_v41  ;;  %v792_v0 = vsub.f32 %v8247_v42, %v791_v55  ;;  %7423 = vmatpush3.bf16.msra.mxu0 %v8165_v51 }
  0xa4   : > { %v8277_v2 = vsel %vm500_vm7, 1.0, %v10833_v26  ;;  %v8280_v3 = vsel %vm499_vm8, 1.0, %v10833_v26  ;;  %v773_v4 = vand.u32 4294901760, %v772_v63  ;;  %v801_v5 = vand.u32 4294901760, %v8269_v60  ;;  %7425 = vmatprep.subr.bf16.mxu0 %v8174_v58 }
  0xa5   : > { %v660_v6 = vsel %vm637_vm0, %v8277_v2, 0  ;;  %v657_v7 = vsel %vm637_vm0, %v8280_v3, 0  ;;  %v811_v12 = vand.u32 4294901760, %v8267_v57  ;;  %v793_v31 = vand.u32 4294901760, %v792_v0 }
  0xa6   : > { %v8289_v15 = vsub.f32 %v660_v6, %v660_v6  ;;  %v8291_v16 = vsub.f32 %v657_v7, %v657_v7  ;;  %v474_v24 = vpop.permute.xlu1 %473  ;;  %6653 = vmatmul.mubr.f32.vlgmr.msra.gmra.mrb[0].mxu1 %v773_v4  ;;  %6776 = vmatmul.mubr.f32.gmra.mrb[2].mxu0 %v791_v55  ;;  %v471_v25 = vpop.permute.xlu0 %470  ;;  %v802_v30 = vsub.f32 %v8269_v60, %v801_v5 }
  0xa7   : > { %vm502_vm9 = vcmp.eq.s32.totalorder %v8215_v23, %v474_v24  ;;  %7375 = vmatpush3.bf16.msra.mxu1 %v8154_v44  ;;  %vm501_vm10 = vcmp.eq.s32.totalorder %v8215_v23, %v471_v25  ;;  %6655 = vmatprep.mubr.f32.mxu1 %v783_v9  ;;  %v812_v33 = vsub.f32 %v8267_v57, %v811_v12 }
  0xa8   : > { %v8299_v34 = vsel %vm502_vm9, 1.0, %v10833_v26  ;;  %v8302_v38 = vsel %vm501_vm10, 1.0, %v10833_v26  ;;  %6778 = vmatprep.mubr.f32.mxu0 %v801_v5  ;;  %v803_v39 = vand.u32 4294901760, %v802_v30  ;;  %v821_v40 = vand.u32 4294901760, %v8291_v16  ;;  %7377 = vmatprep.subr.bf16.mxu1 %v8176_v59 }
  0xa9   : > { %v666_v41 = vsel %vm637_vm0, %v8299_v34, 0  ;;  %v663_v45 = vsel %vm637_vm0, %v8302_v38, 0  ;;  %v831_v46 = vand.u32 4294901760, %v8289_v15  ;;  %7427 = vmatpush3.bf16.msra.mxu0 %v8174_v58  ;;  %v813_v55 = vand.u32 4294901760, %v812_v33 }
  0xaa   : > { %v8312_v47 = vsub.f32 %v666_v41, %v666_v41  ;;  %v8314_v50 = vsub.f32 %v663_v45, %v663_v45  ;;  %v480_v52 = vpop.permute.xlu1 %479  ;;  %6656 = vmatmul.mubr.f32.gmra.mrb[2].mxu1 %v793_v31  ;;  %6779 = vmatmul.mubr.f32.gmra.mrb[4].mxu0 %v811_v12  ;;  %v477_v53 = vpop.permute.xlu0 %476  ;;  %v822_v54 = vsub.f32 %v8291_v16, %v821_v40 }
  0xab   : > { %vm504_vm11 = vcmp.eq.s32.totalorder %v8215_v23, %v480_v52  ;;  %vm503_vm12 = vcmp.eq.s32.totalorder %v8215_v23, %v477_v53  ;;  %6658 = vmatprep.mubr.f32.mxu1 %v803_v39  ;;  %6781 = vmatprep.mubr.f32.mxu0 %v821_v40  ;;  %v832_v56 = vsub.f32 %v8289_v15, %v831_v46 }
  0xac   : > { %v8321_v61 = vsel %vm504_vm11, 1.0, %v10833_v26  ;;  %v8324_v62 = vsel %vm503_vm12, 1.0, %v10833_v26  ;;  %7379 = vmatpush3.bf16.msra.mxu1 %v8176_v59  ;;  %v823_v63 = vand.u32 4294901760, %v822_v54  ;;  %v841_v0 = vand.u32 4294901760, %v8314_v50  ;;  %7429 = vmatprep.subr.bf16.mxu0 %v8180_v1 }
  0xad   : > { %v672_v4 = vsel %vm637_vm0, %v8321_v61, 0  ;;  %v669_v5 = vsel %vm637_vm0, %v8324_v62, 0  ;;  %v851_v6 = vand.u32 4294901760, %v8312_v47  ;;  %7381 = vmatprep.subr.bf16.mxu1 %v8190_v8  ;;  %7431 = vmatpush3.bf16.msra.mxu0 %v8180_v1  ;;  %v833_v30 = vand.u32 4294901760, %v832_v56 }
  0xae   : > { %v8336_v7 = vsub.f32 %v672_v4, %v672_v4  ;;  %v8338_v9 = vsub.f32 %v669_v5, %v669_v5  ;;  %v486_v12 = vpop.permute.xlu1 %485  ;;  %6659 = vmatmul.mubr.f32.gmra.mrb[4].mxu1 %v813_v55  ;;  %6782 = vmatmul.mubr.f32.gmra.mrb[6].mxu0 %v831_v46  ;;  %v483_v24 = vpop.permute.xlu0 %482  ;;  %v842_v25 = vsub.f32 %v8314_v50, %v841_v0 }
  0xaf   : > { %vm506_vm13 = vcmp.eq.s32.totalorder %v8215_v23, %v486_v12  ;;  %vm505_vm14 = vcmp.eq.s32.totalorder %v8215_v23, %v483_v24  ;;  %6661 = vmatprep.mubr.f32.mxu1 %v823_v63  ;;  %6784 = vmatprep.mubr.f32.mxu0 %v841_v0  ;;  %v852_v31 = vsub.f32 %v8312_v47, %v851_v6 }
  0xb0   : > { %v8345_v33 = vsel %vm506_vm13, 1.0, %v10833_v26  ;;  %v8348_v39 = vsel %vm505_vm14, 1.0, %v10833_v26  ;;  %v843_v40 = vand.u32 4294901760, %v842_v25  ;;  %v861_v41 = vand.u32 4294901760, %v8338_v9  ;;  %7383 = vmatpush3.bf16.msra.mxu1 %v8190_v8  ;;  %7433 = vmatprep.subr.bf16.mxu0 %v8192_v13 }
  0xb1   : > { %v678_v45 = vsel %vm637_vm0, %v8345_v33, 0  ;;  %v675_v46 = vsel %vm637_vm0, %v8348_v39, 0  ;;  %v871_v52 = vand.u32 4294901760, %v8336_v7  ;;  %7385 = vmatprep.subr.bf16.mxu1 %v8196_v17  ;;  %7435 = vmatpush3.bf16.msra.mxu0 %v8192_v13  ;;  %v853_v0 = vand.u32 4294901760, %v852_v31 }
  0xb2   : > { %v8360_v53 = vsub.f32 %v678_v45, %v678_v45  ;;  %v8362_v54 = vsub.f32 %v675_v46, %v675_v46  ;;  %v492_v55 = vpop.permute.xlu1 %491  ;;  %6662 = vmatmul.mubr.f32.gmra.mrb[6].mxu1 %v833_v30  ;;  %6785 = vmatmul.mubr.f32.gmra.mrb[8].mxu0 %v851_v6  ;;  %v489_v56 = vpop.permute.xlu0 %488  ;;  %v862_v63 = vsub.f32 %v8338_v9, %v861_v41 }
  0xb3   : > { %vm508_vm15 = vcmp.eq.s32.totalorder %v8215_v23, %v492_v55  ;;  %vm507_vm1 = vcmp.eq.s32.totalorder %v8215_v23, %v489_v56  ;;  %6664 = vmatprep.mubr.f32.mxu1 %v843_v40  ;;  %6787 = vmatprep.mubr.f32.mxu0 %v861_v41  ;;  %v872_v4 = vsub.f32 %v8336_v7, %v871_v52 }
  0xb4   : > { %v8369_v5 = vsel %vm508_vm15, 1.0, %v10833_v26  ;;  %v8372_v12 = vsel %vm507_vm1, 1.0, %v10833_v26  ;;  %v863_v24 = vand.u32 4294901760, %v862_v63  ;;  %v881_v6 = vand.u32 4294901760, %v8362_v54  ;;  %7387 = vmatpush3.bf16.msra.mxu1 %v8196_v17  ;;  %7437 = vmatprep.subr.bf16.mxu0 %v8028_v10 }
  0xb5   : > { %v684_v25 = vsel %vm637_vm0, %v8369_v5, 0  ;;  %v681_v30 = vsel %vm637_vm0, %v8372_v12, 0  ;;  %v891_v31 = vand.u32 4294901760, %v8360_v53  ;;  %7389 = vmatprep.subr.bf16.mxu1 %v8200_v14  ;;  %v873_v46 = vand.u32 4294901760, %v872_v4 }
  0xb6   : > { %v8383_v40 = vsub.f32 %v684_v25, %v684_v25  ;;  %v8385_v41 = vsub.f32 %v681_v30, %v681_v30  ;;  %6665 = vmatmul.mubr.f32.gmra.mrb[8].mxu1 %v853_v0  ;;  %6788 = vmatmul.mubr.f32.gmra.mrb[10].mxu0 %v871_v52  ;;  %v882_v45 = vsub.f32 %v8362_v54, %v881_v6  ;;  %v10890_v25 = vmov 0.0  }
  0xb7   : > { %6667 = vmatprep.mubr.f32.mxu1 %v863_v24  ;;  %6790 = vmatprep.mubr.f32.mxu0 %v881_v6  ;;  %v892_v55 = vsub.f32 %v8360_v53, %v891_v31  ;;  %v546_v56 = vpop.permute.xlu1 %545  ;;  %v543_v63 = vpop.permute.xlu0 %542 }
  0xb8   : > { %v883_v22 = vand.u32 4294901760, %v882_v45  ;;  %v901_v26 = vand.u32 4294901760, %v8385_v41  ;;  %v911_v13 = vand.u32 4294901760, %v8383_v40  ;;  %vm590_vm2 = vcmp.eq.s32.totalorder %v8215_v23, %v546_v56 }
  0xb9   : > { %v8393_v30 = vsel %vm590_vm2, 1.0, %v10890_v25  ;;  %vm589_vm3 = vcmp.eq.s32.totalorder %v8215_v23, %v543_v63  ;;  %v893_v6 = vand.u32 4294901760, %v892_v55 }
  0xba   : > { %6668 = vmatmul.mubr.f32.gmra.mrb[10].mxu1 %v873_v46  ;;  %6791 = vmatmul.mubr.f32.gmra.mrb[12].mxu0 %v891_v31  ;;  %v902_v52 = vsub.f32 %v8385_v41, %v901_v26  ;;  %v8398_v0 = vsel %vm589_vm3, 1.0, %v10890_v25  ;;  %v912_v56 = vsub.f32 %v8383_v40, %v911_v13  ;;  %vm3208_vm3 = vcmask 261120  }
  0xbb   : > { %6670 = vmatprep.mubr.f32.mxu1 %v883_v22  ;;  %6793 = vmatprep.mubr.f32.mxu0 %v901_v26  ;;  %v549_v4 = vpop.permute.xlu1 %548  ;;  %v552_v24 = vpop.permute.xlu0 %551 }
  0xbc   : > { %v903_v45 = vand.u32 4294901760, %v902_v52  ;;  %vm591_vm4 = vcmp.eq.s32.totalorder %v8215_v23, %v549_v4  ;;  %vm592_vm5 = vcmp.eq.s32.totalorder %v8215_v23, %v552_v24  ;;  %v913_v46 = vand.u32 4294901760, %v912_v56 }
  0xbd   : > { %v8403_v1 = vsel %vm591_vm4, 1.0, %v10890_v25  ;;  %v8407_v31 = vsel %vm592_vm5, 1.0, %v10890_v25 }
  0xbe   : > { %6671 = vmatmul.mubr.f32.gmra.mrb[12].mxu1 %v893_v6  ;;  %6794 = vmatmul.mubr.f32.gmra.mrb[14].mxu0 %v911_v13 }
  0xbf   : > { %6673 = vmatprep.mubr.f32.mxu1 %v903_v45  ;;  %6812 = vmatprep.mubr.msk.f32.mxu0 %vm637_vm0, %v8223_v29  ;;  %v555_v22 = vpop.permute.xlu1 %554  ;;  %v558_v26 = vpop.permute.xlu0 %557 }
  0xc0   : > { %vm593_vm6 = vcmp.eq.s32.totalorder %v8215_v23, %v555_v22  ;;  %vm594_vm7 = vcmp.eq.s32.totalorder %v8215_v23, %v558_v26 }
  0xc1   : > { %v8414_v55 = vsel %vm593_vm6, 1.0, %v10890_v25  ;;  %v8417_v63 = vsel %vm594_vm7, 1.0, %v10890_v25 }
  0xc2   : > { %6674 = vmatmul.mubr.f32.gmra.mrb[14].mxu1 %v913_v46  ;;  %6813 = vmatmul.mubr.msk.f32.vlgmr.msra.gmra.mrb[0].mxu0 %vm637_vm0, %v8239_v37 }
  0xc3   : > { %6692 = vmatprep.mubr.msk.f32.mxu1 %vm637_vm0, %v8223_v29  ;;  %6815 = vmatprep.mubr.msk.f32.mxu0 %vm637_vm0, %v8220_v28  ;;  %v561_v13 = vpop.permute.xlu1 %560  ;;  %v564_v52 = vpop.permute.xlu0 %563 }
  0xc4   : > { %7439 = vmatpush3.bf16.msra.mxu0 %v8028_v10  ;;  %vm595_vm8 = vcmp.eq.s32.totalorder %v8215_v23, %v561_v13  ;;  %vm596_vm9 = vcmp.eq.s32.totalorder %v8215_v23, %v564_v52 }
  0xc5   : > { %7441 = vmatprep.subr.bf16.mxu0 %v8034_v11  ;;  %v8430_v4 = vsel %vm595_vm8, 1.0, %v10890_v25  ;;  %v8433_v24 = vsel %vm596_vm9, 1.0, %v10890_v25 }
  0xc6   : > { %6693 = vmatmul.mubr.msk.f32.vlgmr.msra.gmra.mrb[0].mxu1 %vm637_vm0, %v8239_v37  ;;  %6816 = vmatmul.mubr.msk.f32.gmra.mrb[2].mxu0 %vm637_vm0, %v8236_v36 }
  0xc7   : > { %7391 = vmatpush3.bf16.msra.mxu1 %v8200_v14  ;;  %6695 = vmatprep.mubr.msk.f32.mxu1 %vm637_vm0, %v8220_v28  ;;  %v567_v6 = vpop.permute.xlu1 %566  ;;  %v570_v45 = vpop.permute.xlu0 %569 }
  0xc8   : > { %6818 = vmatprep.mubr.msk.f32.mxu0 %vm637_vm0, %v8258_v49  ;;  %7393 = vmatprep.subr.bf16.mxu1 %v8206_v18  ;;  %vm597_vm10 = vcmp.eq.s32.totalorder %v8215_v23, %v567_v6  ;;  %vm598_vm11 = vcmp.eq.s32.totalorder %v8215_v23, %v570_v45 }
  0xc9   : > { %7443 = vmatpush3.bf16.msra.mxu0 %v8034_v11  ;;  %v8449_v56 = vsel %vm597_vm10, 1.0, %v10890_v25  ;;  %v8452_v22 = vsel %vm598_vm11, 1.0, %v10890_v25 }
  0xca   : > { %6696 = vmatmul.mubr.msk.f32.gmra.mrb[2].mxu1 %vm637_vm0, %v8236_v36  ;;  %6819 = vmatmul.mubr.msk.f32.gmra.mrb[4].mxu0 %vm637_vm0, %v8255_v48 }
  0xcb   : > { %6698 = vmatprep.mubr.msk.f32.mxu1 %vm637_vm0, %v8258_v49  ;;  %6821 = vmatprep.mubr.msk.f32.mxu0 %vm637_vm0, %v8280_v3  ;;  %v573_v26 = vpop.permute.xlu1 %572  ;;  %v576_v46 = vpop.permute.xlu0 %575 }
  0xcc   : > { %7395 = vmatpush3.bf16.msra.mxu1 %v8206_v18  ;;  %7445 = vmatprep.subr.bf16.mxu0 %v8080_v20  ;;  %vm599_vm12 = vcmp.eq.s32.totalorder %v8215_v23, %v573_v26  ;;  %vm600_vm13 = vcmp.eq.s32.totalorder %v8215_v23, %v576_v46 }
  0xcd   : > { %7397 = vmatprep.subr.bf16.mxu1 %v8210_v19  ;;  %7447 = vmatpush3.bf16.msra.mxu0 %v8080_v20  ;;  %v8469_v13 = vsel %vm599_vm12, 1.0, %v10890_v25  ;;  %v8472_v52 = vsel %vm600_vm13, 1.0, %v10890_v25 }
  0xce   : > { %6699 = vmatmul.mubr.msk.f32.gmra.mrb[4].mxu1 %vm637_vm0, %v8255_v48  ;;  %6822 = vmatmul.mubr.msk.f32.gmra.mrb[6].mxu0 %vm637_vm0, %v8277_v2 }
  0xcf   : > { %6701 = vmatprep.mubr.msk.f32.mxu1 %vm637_vm0, %v8280_v3  ;;  %6824 = vmatprep.mubr.msk.f32.mxu0 %vm637_vm0, %v8302_v38  ;;  %v579_v6 = vpop.permute.xlu1 %578  ;;  %v582_v45 = vpop.permute.xlu0 %581 }
  0xd0   : > { %7399 = vmatpush3.bf16.msra.mxu1 %v8210_v19  ;;  %7449 = vmatprep.subr.bf16.mxu0 %v8112_v27  ;;  %vm601_vm14 = vcmp.eq.s32.totalorder %v8215_v23, %v579_v6  ;;  %vm602_vm15 = vcmp.eq.s32.totalorder %v8215_v23, %v582_v45 }
  0xd1   : > { %7401 = vmatprep.subr.bf16.mxu1 %v8212_v21  ;;  %7451 = vmatpush3.bf16.msra.mxu0 %v8112_v27  ;;  %v8489_v26 = vsel %vm601_vm14, 1.0, %v10890_v25  ;;  %v8492_v46 = vsel %vm602_vm15, 1.0, %v10890_v25 }
  0xd2   : > { %6702 = vmatmul.mubr.msk.f32.gmra.mrb[6].mxu1 %vm637_vm0, %v8277_v2  ;;  %6825 = vmatmul.mubr.msk.f32.gmra.mrb[8].mxu0 %vm637_vm0, %v8299_v34 }
  0xd3   : > { %6704 = vmatprep.mubr.msk.f32.mxu1 %vm637_vm0, %v8302_v38  ;;  %6827 = vmatprep.mubr.msk.f32.mxu0 %vm637_vm0, %v8324_v62  ;;  %v585_v6 = vpop.permute.xlu1 %584  ;;  %v588_v45 = vpop.permute.xlu0 %587 }
  0xd4   : > { %7403 = vmatpush3.bf16.msra.mxu1 %v8212_v21  ;;  %vm603_vm1 = vcmp.eq.s32.totalorder %v8215_v23, %v585_v6  ;;  %vm604_vm2 = vcmp.eq.s32.totalorder %v8215_v23, %v588_v45  ;;  %v1869_v23 = vsel %vm637_vm0, %v8398_v0, 0  ;;  %v1899_v6 = vsel %vm637_vm0, %v8469_v13, 0 }
  0xd5   : > { %7453 = vmatprep.subr.bf16.mxu1 %v8028_v10  ;;  %v8507_v58 = vsel %vm603_vm1, 1.0, %v10890_v25  ;;  %v8510_v51 = vsel %vm604_vm2, 1.0, %v10890_v25 }
  0xd6   : > { %6705 = vmatmul.mubr.msk.f32.gmra.mrb[8].mxu1 %vm637_vm0, %v8299_v34  ;;  %6828 = vmatmul.mubr.msk.f32.gmra.mrb[10].mxu0 %vm637_vm0, %v8321_v61 }
  0xd7   : > { %6707 = vmatprep.mubr.msk.f32.mxu1 %vm637_vm0, %v8324_v62  ;;  %6830 = vmatprep.mubr.msk.f32.mxu0 %vm637_vm0, %v8348_v39 }
  0xda   : > { %6708 = vmatmul.mubr.msk.f32.gmra.mrb[10].mxu1 %vm637_vm0, %v8321_v61  ;;  %6831 = vmatmul.mubr.msk.f32.gmra.mrb[12].mxu0 %vm637_vm0, %v8345_v33 }
  0xdb   : > { %6710 = vmatprep.mubr.msk.f32.mxu1 %vm637_vm0, %v8348_v39  ;;  %6833 = vmatprep.mubr.msk.f32.mxu0 %vm637_vm0, %v8372_v12 }
  0xde   : > { %6711 = vmatmul.mubr.msk.f32.gmra.mrb[12].mxu1 %vm637_vm0, %v8345_v33  ;;  %6834 = vmatmul.mubr.msk.f32.gmra.mrb[14].mxu0 %vm637_vm0, %v8369_v5 }
  0xdf   : > { %6713 = vmatprep.mubr.msk.f32.mxu1 %vm637_vm0, %v8372_v12  ;;  %6852 = vmatprep.mubr.msk.f32.mxu0 %vm637_vm0, %v8223_v29  ;;  %v1872_v29 = vsel %vm637_vm0, %v8393_v30, 0 }
  0xe2   : > { %6714 = vmatmul.mubr.msk.f32.gmra.mrb[14].mxu1 %vm637_vm0, %v8369_v5  ;;  %6853 = vmatmul.mubr.msk.f32.vlgmr.msra.gmra.mrb[0].mxu0 %vm637_vm0, %v8239_v37 }
  0xe3   : > { %6732 = vmatprep.mubr.f32.mxu1 %v8231_v35  ;;  %6855 = vmatprep.mubr.msk.f32.mxu0 %vm637_vm0, %v8220_v28  ;;  %v8572_v28 = vsub.f32 %v1869_v23, %v1869_v23 }
  0xe5   : > { %v1991_v35 = vand.u32 4294901760, %v8572_v28 }
  0xe6   : > { %6733 = vmatmul.mubr.f32.vlgmr.msra.gmra.mrb[0].mxu1 %v8249_v43  ;;  %6856 = vmatmul.mubr.msk.f32.gmra.mrb[2].mxu0 %vm637_vm0, %v8236_v36  ;;  %v8590_v36 = vsub.f32 %v1872_v29, %v1872_v29  ;;  %v1881_v43 = vsel %vm637_vm0, %v8414_v55, 0 }
  0xe7   : > { %7455 = vmatpush3.bf16.msra.mxu1 %v8028_v10  ;;  %6735 = vmatprep.mubr.f32.mxu1 %v8229_v32  ;;  %v1875_v32 = vsel %vm637_vm0, %v8403_v1, 0 }
  0xe8   : > { %6858 = vmatprep.mubr.msk.f32.mxu0 %vm637_vm0, %v8258_v49  ;;  %7457 = vmatprep.subr.bf16.mxu1 %v8034_v11  ;;  %v8592_v37 = vsub.f32 %v1875_v32, %v1875_v32  ;;  %v2001_v49 = vand.u32 4294901760, %v8590_v36 }
  0xea   : > { %6736 = vmatmul.mubr.f32.gmra.mrb[2].mxu1 %v8247_v42  ;;  %6859 = vmatmul.mubr.msk.f32.gmra.mrb[4].mxu0 %vm637_vm0, %v8255_v48  ;;  %v1878_v42 = vsel %vm637_vm0, %v8407_v31, 0  ;;  %v1992_v48 = vsub.f32 %v8572_v28, %v1991_v35 }
  0xeb   : > { %6738 = vmatprep.mubr.f32.mxu1 %v8269_v60  ;;  %6861 = vmatprep.mubr.msk.f32.mxu0 %vm637_vm0, %v8280_v3  ;;  %v8610_v60 = vsub.f32 %v1881_v43, %v1881_v43  ;;  %v2011_v3 = vand.u32 4294901760, %v8592_v37  ;;  %v8663_v43 = vsub.f32 %v1899_v6, %v1899_v6 }
  0xec   : > { %7459 = vmatpush3.bf16.msra.mxu1 %v8034_v11 }
  0xed   : > { %7461 = vmatprep.subr.bf16.mxu1 %v8080_v20 }
  0xee   : > { %6739 = vmatmul.mubr.f32.gmra.mrb[4].mxu1 %v8267_v57  ;;  %6862 = vmatmul.mubr.msk.f32.gmra.mrb[6].mxu0 %vm637_vm0, %v8277_v2  ;;  %v8608_v57 = vsub.f32 %v1878_v42, %v1878_v42  ;;  %v1884_v2 = vsel %vm637_vm0, %v8417_v63, 0 }
  0xef   : > { %6741 = vmatprep.mubr.f32.mxu1 %v8291_v16  ;;  %6864 = vmatprep.mubr.msk.f32.mxu0 %vm637_vm0, %v8302_v38  ;;  %v1993_v16 = vand.u32 4294901760, %v1992_v48  ;;  %v8624_v38 = vsub.f32 %v1884_v2, %v1884_v2  ;;  %v1902_v48 = vsel %vm637_vm0, %v8472_v52, 0 }
  0xf0   : > { %7463 = vmatpush3.bf16.msra.mxu1 %v8080_v20 }
  0xf1   : > { %7465 = vmatprep.subr.bf16.mxu1 %v8112_v27 }
  0xf2   : > { %6742 = vmatmul.mubr.f32.gmra.mrb[6].mxu1 %v8289_v15  ;;  %6865 = vmatmul.mubr.msk.f32.gmra.mrb[8].mxu0 %vm637_vm0, %v8299_v34  ;;  %v1887_v15 = vsel %vm637_vm0, %v8430_v4, 0  ;;  %v2002_v34 = vsub.f32 %v8590_v36, %v2001_v49 }
  0xf3   : > { %6744 = vmatprep.mubr.f32.mxu1 %v8314_v50  ;;  %6867 = vmatprep.mubr.msk.f32.mxu0 %vm637_vm0, %v8324_v62  ;;  %v2021_v50 = vand.u32 4294901760, %v8608_v57  ;;  %v1893_v62 = vsel %vm637_vm0, %v8449_v56, 0 }
  0xf4   : > { %7467 = vmatpush3.bf16.msra.mxu1 %v8112_v27 }
  0xf5   : > { %7469 = vmatprep.subr.bf16.mxu1 %v8154_v44 }
  0xf6   : > { %6745 = vmatmul.mubr.f32.gmra.mrb[8].mxu1 %v8312_v47  ;;  %6868 = vmatmul.mubr.msk.f32.gmra.mrb[10].mxu0 %vm637_vm0, %v8321_v61  ;;  %v1890_v47 = vsel %vm637_vm0, %v8433_v24, 0  ;;  %v8629_v61 = vsub.f32 %v1887_v15, %v1887_v15  ;;  %v1905_v15 = vsel %vm637_vm0, %v8489_v26, 0 }
  0xf7   : > { %6747 = vmatprep.mubr.f32.mxu1 %v8338_v9  ;;  %6870 = vmatprep.mubr.msk.f32.mxu0 %vm637_vm0, %v8348_v39  ;;  %v2031_v9 = vand.u32 4294901760, %v8610_v60  ;;  %v8640_v39 = vsub.f32 %v1893_v62, %v1893_v62 }
  0xf8   : > { %v2051_v25 = vand.u32 4294901760, %v8629_v61 }
  0xf9   : > { %v2071_v42 = vand.u32 4294901760, %v8640_v39 }
  0xfa   : > { %6748 = vmatmul.mubr.f32.gmra.mrb[10].mxu1 %v8336_v7  ;;  %6871 = vmatmul.mubr.msk.f32.gmra.mrb[12].mxu0 %vm637_vm0, %v8345_v33  ;;  %v2012_v7 = vsub.f32 %v8592_v37, %v2011_v3  ;;  %v8638_v33 = vsub.f32 %v1890_v47, %v1890_v47  ;;  %v2052_v2 = vsub.f32 %v8629_v61, %v2051_v25 }
  0xfb   : > { %6750 = vmatprep.mubr.f32.mxu1 %v8362_v54  ;;  %6873 = vmatprep.mubr.msk.f32.mxu0 %vm637_vm0, %v8372_v12  ;;  %v2022_v54 = vsub.f32 %v8608_v57, %v2021_v50  ;;  %v1896_v12 = vsel %vm637_vm0, %v8452_v22, 0  ;;  %v2072_v62 = vsub.f32 %v8640_v39, %v2071_v42 }
  0xfc   : > { %v2061_v45 = vand.u32 4294901760, %v8638_v33  ;;  %v8656_v23 = vsub.f32 %v1896_v12, %v1896_v12  ;;  %v2091_v12 = vand.u32 4294901760, %v8663_v43 }
  0xfd   : > { %v2023_v29 = vand.u32 4294901760, %v2022_v54  ;;  %v2053_v54 = vand.u32 4294901760, %v2052_v2  ;;  %v1914_v2 = vsel %vm637_vm0, %v8510_v51, 0 }
  0xfe   : > { %6751 = vmatmul.mubr.f32.gmra.mrb[12].mxu1 %v8360_v53  ;;  %6874 = vmatmul.mubr.msk.f32.gmra.mrb[14].mxu0 %vm637_vm0, %v8369_v5  ;;  %v2003_v53 = vand.u32 4294901760, %v2002_v34  ;;  %v2041_v5 = vand.u32 4294901760, %v8624_v38  ;;  %v8676_v34 = vsub.f32 %v1902_v48, %v1902_v48 }
  0xff   : > { %6753 = vmatprep.mubr.f32.mxu1 %v8385_v41  ;;  %v2013_v41 = vand.u32 4294901760, %v2012_v7  ;;  %v2081_v7 = vand.u32 4294901760, %v8656_v23 }
 0x100   : > { %v2042_v32 = vsub.f32 %v8624_v38, %v2041_v5  ;;  %v10843_v48 = vand.u32 4294901760, %v8676_v34 }
 0x102   : > { %6754 = vmatmul.mubr.f32.gmra.mrb[14].mxu1 %v8383_v40  ;;  %v2032_v40 = vsub.f32 %v8610_v60, %v2031_v9  ;;  %v2043_v47 = vand.u32 4294901760, %v2042_v32  ;;  %v2082_v32 = vsub.f32 %v8656_v23, %v2081_v7 }
 0x103   : > { %6892 = vmatprep.mubr.f32.mxu1 %v1993_v16  ;;  %v2062_v16 = vsub.f32 %v8638_v33, %v2061_v45 }
 0x106   : > { %6893 = vmatmul.mubr.f32.vlgmr.msra.gmra.mrb[16].mxu1 %v2003_v53  ;;  %v8683_v53 = vsub.f32 %v1905_v15, %v1905_v15 }
 0x107   : > { %7471 = vmatpush3.bf16.msra.mxu1 %v8154_v44  ;;  %6895 = vmatprep.mubr.f32.mxu1 %v2013_v41  ;;  %v2033_v44 = vand.u32 4294901760, %v2032_v40  ;;  %v1911_v41 = vsel %vm637_vm0, %v8507_v58, 0  ;;  %v2063_v40 = vand.u32 4294901760, %v2062_v16  ;;  %v8707_v16 = vsub.f32 %v1914_v2, %v1914_v2 }
 0x108   : > { %7473 = vmatprep.subr.bf16.mxu1 %v8176_v59  ;;  %v2111_v15 = vand.u32 4294901760, %v8683_v53 }
 0x10a   : > { %6896 = vmatmul.mubr.f32.gmra.mrb[18].mxu1 %v2023_v29  ;;  %v2073_v29 = vand.u32 4294901760, %v2072_v62  ;;  %v2102_v62 = vsub.f32 %v8676_v34, %v10843_v48 }
 0x10b   : > { %6898 = vmatprep.mubr.f32.mxu1 %v2033_v44  ;;  %7475 = vmatpush3.bf16.msra.mxu1 %v8176_v59  ;;  %v1908_v59 = vsel %vm637_vm0, %v8492_v46, 0  ;;  %v8698_v44 = vsub.f32 %v1911_v41, %v1911_v41  ;;  %v2112_v41 = vsub.f32 %v8683_v53, %v2111_v15 }
 0x10c   : > { %7477 = vmatprep.subr.bf16.mxu1 %v8190_v8  ;;  %v8691_v6 = vsub.f32 %v1908_v59, %v1908_v59 }
 0x10d   : > { %v2113_v2 = vand.u32 4294901760, %v2112_v41 }
 0x10e   : > { %6899 = vmatmul.mubr.f32.gmra.mrb[20].mxu1 %v2043_v47  ;;  %v2083_v47 = vand.u32 4294901760, %v2082_v32  ;;  %v2121_v59 = vand.u32 4294901760, %v8691_v6  ;;  %v2141_v32 = vand.u32 4294901760, %v8707_v16 }
 0x10f   : > { %6901 = vmatprep.mubr.f32.mxu1 %v2053_v54  ;;  %7479 = vmatpush3.bf16.msra.mxu1 %v8190_v8  ;;  %v2092_v8 = vsub.f32 %v8663_v43, %v2091_v12 }
 0x110   : > { %7481 = vmatprep.subr.bf16.mxu1 %v8196_v17 }
 0x111   : > { %v2093_v54 = vand.u32 4294901760, %v2092_v8 }
 0x112   : > { %6902 = vmatmul.mubr.f32.gmra.mrb[22].mxu1 %v2063_v40  ;;  %v2131_v40 = vand.u32 4294901760, %v8698_v44 }
 0x113   : > { %6904 = vmatprep.mubr.f32.mxu1 %v2073_v29  ;;  %7483 = vmatpush3.bf16.msra.mxu1 %v8196_v17  ;;  %v2103_v17 = vand.u32 4294901760, %v2102_v62  ;;  %v2122_v29 = vsub.f32 %v8691_v6, %v2121_v59 }
 0x114   : > { %7485 = vmatprep.subr.bf16.mxu1 %v8200_v14  ;;  %v2132_v8 = vsub.f32 %v8698_v44, %v2131_v40 }
 0x115   : > { %v2123_v48 = vand.u32 4294901760, %v2122_v29 }
 0x116   : > { %6905 = vmatmul.mubr.f32.gmra.mrb[24].mxu1 %v2083_v47  ;;  %v2142_v47 = vsub.f32 %v8707_v16, %v2141_v32 }
 0x117   : > { %6907 = vmatprep.mubr.f32.mxu1 %v2093_v54  ;;  %v2133_v54 = vand.u32 4294901760, %v2132_v8 }
 0x118   : > { %v2143_v62 = vand.u32 4294901760, %v2142_v47 }
 0x11a   : > { %6908 = vmatmul.mubr.f32.gmra.mrb[26].mxu1 %v2103_v17 }
 0x11b   : > { %6910 = vmatprep.mubr.f32.mxu1 %v2113_v2 }
 0x11e   : > { %6911 = vmatmul.mubr.f32.gmra.mrb[28].mxu1 %v2123_v48 }
 0x11f   : > { %6913 = vmatprep.mubr.f32.mxu1 %v2133_v54 }
 0x122   : > { %6914 = vmatmul.mubr.f32.gmra.mrb[30].mxu1 %v2143_v62 }
 0x123   : > { %6932 = vmatprep.mubr.msk.f32.mxu1 %vm637_vm0, %v8398_v0 }
 0x126   : > { %6933 = vmatmul.mubr.msk.f32.vlgmr.msra.gmra.mrb[16].mxu1 %vm637_vm0, %v8393_v30 }
 0x127   : > { %7487 = vmatpush3.bf16.msra.mxu1 %v8200_v14  ;;  %6935 = vmatprep.mubr.msk.f32.mxu1 %vm637_vm0, %v8403_v1  ;;  %v10891_v14 = vld [vmem:[#allocation3_spill] sm:$0xff] }
 0x128   : > { %7489 = vmatprep.subr.bf16.mxu1 %v8206_v18 }
 0x12a   : > { %6936 = vmatmul.mubr.msk.f32.gmra.mrb[18].mxu1 %vm637_vm0, %v8407_v31 }
 0x12b   : > { %6938 = vmatprep.mubr.msk.f32.mxu1 %vm637_vm0, %v8414_v55  ;;  %7491 = vmatpush3.bf16.msra.mxu1 %v8206_v18  ;;  %v10892_v18 = vld [vmem:[#allocation4_spill] sm:$0xff] }
 0x12c   : > { %7493 = vmatprep.subr.bf16.mxu1 %v8210_v19 }
 0x12e   : > { %6939 = vmatmul.mubr.msk.f32.gmra.mrb[20].mxu1 %vm637_vm0, %v8417_v63 }
 0x12f   : > { %6941 = vmatprep.mubr.msk.f32.mxu1 %vm637_vm0, %v8430_v4  ;;  %7495 = vmatpush3.bf16.msra.mxu1 %v8210_v19  ;;  %v10893_v19 = vld [vmem:[#allocation5_spill] sm:$0xff] }
 0x130   : > { %7497 = vmatprep.subr.bf16.mxu1 %v8212_v21 }
 0x132   : > { %6942 = vmatmul.mubr.msk.f32.gmra.mrb[22].mxu1 %vm637_vm0, %v8433_v24 }
 0x133   : > { %6944 = vmatprep.mubr.msk.f32.mxu1 %vm637_vm0, %v8449_v56  ;;  %7499 = vmatpush3.bf16.msra.mxu1 %v8212_v21  ;;  %v10894_v21 = vld [vmem:[#allocation6_spill] sm:$0xff] }
 0x134   : > { %7501 = vmatprep.subr.bf16.mxu1 %v8028_v10 }
 0x136   : > { %6945 = vmatmul.mubr.msk.f32.gmra.mrb[24].mxu1 %vm637_vm0, %v8452_v22 }
 0x137   : > { %6947 = vmatprep.mubr.msk.f32.mxu1 %vm637_vm0, %v8469_v13 }
 0x13a   : > { %6948 = vmatmul.mubr.msk.f32.gmra.mrb[26].mxu1 %vm637_vm0, %v8472_v52 }
 0x13b   : > { %6950 = vmatprep.mubr.msk.f32.mxu1 %vm637_vm0, %v8489_v26 }
 0x13e   : > { %6951 = vmatmul.mubr.msk.f32.gmra.mrb[28].mxu1 %vm637_vm0, %v8492_v46 }
 0x13f   : > { %6953 = vmatprep.mubr.msk.f32.mxu1 %vm637_vm0, %v8507_v58 }
 0x142   : > { %6954 = vmatmul.mubr.msk.f32.gmra.mrb[30].mxu1 %vm637_vm0, %v8510_v51 }
 0x143   : > { %6972 = vmatprep.mubr.f32.mxu1 %v8572_v28  ;;  %v10895_v28 = vand.u32 4294901760, %v8676_v34 }
 0x146   : > { %6973 = vmatmul.mubr.f32.vlgmr.msra.gmra.mrb[16].mxu1 %v8590_v36 }
 0x147   : > { %7503 = vmatpush3.bf16.msra.mxu1 %v8028_v10  ;;  %6975 = vmatprep.mubr.f32.mxu1 %v8592_v37 }
 0x148   : > { %7505 = vmatprep.subr.bf16.mxu1 %v8034_v11 }
 0x14a   : > { %6976 = vmatmul.mubr.f32.gmra.mrb[18].mxu1 %v8608_v57 }
 0x14b   : > { %6978 = vmatprep.mubr.f32.mxu1 %v8610_v60  ;;  %7507 = vmatpush3.bf16.msra.mxu1 %v8034_v11 }
 0x14c   : > { %7509 = vmatprep.subr.bf16.mxu1 %v8080_v20 }
 0x14e   : > { %6979 = vmatmul.mubr.f32.gmra.mrb[20].mxu1 %v8624_v38 }
 0x14f   : > { %6981 = vmatprep.mubr.f32.mxu1 %v8629_v61  ;;  %7511 = vmatpush3.bf16.msra.mxu1 %v8080_v20 }
 0x150   : > { %7513 = vmatprep.subr.bf16.mxu1 %v8112_v27 }
 0x152   : > { %6982 = vmatmul.mubr.f32.gmra.mrb[22].mxu1 %v8638_v33 }
 0x153   : > { %6984 = vmatprep.mubr.f32.mxu1 %v8640_v39  ;;  %7515 = vmatpush3.bf16.msra.mxu1 %v8112_v27 }
 0x154   : > { %7517 = vmatprep.subr.bf16.mxu1 %v10891_v14 }
 0x156   : > { %6985 = vmatmul.mubr.f32.gmra.mrb[24].mxu1 %v8656_v23 }
 0x157   : > { %6987 = vmatprep.mubr.f32.mxu1 %v8663_v43 }
 0x15a   : > { %6988 = vmatmul.mubr.f32.gmra.mrb[26].mxu1 %v8676_v34 }
 0x15b   : > { %6990 = vmatprep.mubr.f32.mxu1 %v8683_v53 }
 0x15e   : > { %6991 = vmatmul.mubr.f32.gmra.mrb[28].mxu1 %v8691_v6 }
 0x15f   : > { %6993 = vmatprep.mubr.f32.mxu1 %v8698_v44 }
 0x162   : > { %6994 = vmatmul.mubr.f32.gmra.mrb[30].mxu1 %v8707_v16 }
 0x163   : > { %7012 = vmatprep.mubr.f32.mxu1 %v1991_v35 }
 0x166   : > { %7013 = vmatmul.mubr.f32.vlgmr.msra.gmra.mrb[16].mxu1 %v2001_v49 }
 0x167   : > { %7519 = vmatpush3.bf16.msra.mxu1 %v10891_v14  ;;  %7015 = vmatprep.mubr.f32.mxu1 %v2011_v3 }
 0x168   : > { %7521 = vmatprep.subr.bf16.mxu1 %v10892_v18 }
 0x16a   : > { %7016 = vmatmul.mubr.f32.gmra.mrb[18].mxu1 %v2021_v50 }
 0x16b   : > { %7018 = vmatprep.mubr.f32.mxu1 %v2031_v9  ;;  %7523 = vmatpush3.bf16.msra.mxu1 %v10892_v18 }
 0x16c   : > { %7525 = vmatprep.subr.bf16.mxu1 %v10893_v19 }
 0x16e   : > { %7019 = vmatmul.mubr.f32.gmra.mrb[20].mxu1 %v2041_v5 }
 0x16f   : > { %7021 = vmatprep.mubr.f32.mxu1 %v2051_v25  ;;  %7527 = vmatpush3.bf16.msra.mxu1 %v10893_v19 }
 0x170   : > { %7529 = vmatprep.subr.bf16.mxu1 %v10894_v21 }
 0x172   : > { %7022 = vmatmul.mubr.f32.gmra.mrb[22].mxu1 %v2061_v45 }
 0x173   : > { %7024 = vmatprep.mubr.f32.mxu1 %v2071_v42  ;;  %7531 = vmatpush3.bf16.msra.mxu1 %v10894_v21 }
 0x174   : > { %7533 = vmatprep.subr.bf16.mxu1 %v8028_v10 }
 0x176   : > { %7025 = vmatmul.mubr.f32.gmra.mrb[24].mxu1 %v2081_v7 }
 0x177   : > { %7027 = vmatprep.mubr.f32.mxu1 %v2091_v12 }
 0x17a   : > { %7028 = vmatmul.mubr.f32.gmra.mrb[26].mxu1 %v10895_v28 }
 0x17b   : > { %7030 = vmatprep.mubr.f32.mxu1 %v2111_v15 }
 0x17e   : > { %7031 = vmatmul.mubr.f32.gmra.mrb[28].mxu1 %v2121_v59 }
 0x17f   : > { %7033 = vmatprep.mubr.f32.mxu1 %v2131_v40 }
 0x182   : > { %7034 = vmatmul.mubr.f32.gmra.mrb[30].mxu1 %v2141_v32 }
 0x183   : > { %7052 = vmatprep.mubr.msk.f32.mxu1 %vm637_vm0, %v8398_v0 }
 0x186   : > { %7053 = vmatmul.mubr.msk.f32.vlgmr.msra.gmra.mrb[16].mxu1 %vm637_vm0, %v8393_v30 }
 0x187   : > { %7535 = vmatpush3.bf16.msra.mxu1 %v8028_v10  ;;  %7055 = vmatprep.mubr.msk.f32.mxu1 %vm637_vm0, %v8403_v1 }
 0x188   : > { %7537 = vmatprep.subr.bf16.mxu1 %v8034_v11 }
 0x18a   : > { %7056 = vmatmul.mubr.msk.f32.gmra.mrb[18].mxu1 %vm637_vm0, %v8407_v31 }
 0x18b   : > { %7058 = vmatprep.mubr.msk.f32.mxu1 %vm637_vm0, %v8414_v55  ;;  %7539 = vmatpush3.bf16.msra.mxu1 %v8034_v11 }
 0x18c   : > { %7541 = vmatprep.subr.bf16.mxu1 %v8080_v20 }
 0x18e   : > { %7059 = vmatmul.mubr.msk.f32.gmra.mrb[20].mxu1 %vm637_vm0, %v8417_v63 }
 0x18f   : > { %7061 = vmatprep.mubr.msk.f32.mxu1 %vm637_vm0, %v8430_v4  ;;  %7543 = vmatpush3.bf16.msra.mxu1 %v8080_v20 }
 0x190   : > { %7545 = vmatprep.subr.bf16.mxu1 %v8112_v27 }
 0x192   : > { %7062 = vmatmul.mubr.msk.f32.gmra.mrb[22].mxu1 %vm637_vm0, %v8433_v24 }
 0x193   : > { %7064 = vmatprep.mubr.msk.f32.mxu1 %vm637_vm0, %v8449_v56  ;;  %7547 = vmatpush3.bf16.msra.mxu1 %v8112_v27 }
 0x196   : > { %7065 = vmatmul.mubr.msk.f32.gmra.mrb[24].mxu1 %vm637_vm0, %v8452_v22 }
 0x197   : > { %7067 = vmatprep.mubr.msk.f32.mxu1 %vm637_vm0, %v8469_v13 }
 0x19a   : > { %7068 = vmatmul.mubr.msk.f32.gmra.mrb[26].mxu1 %vm637_vm0, %v8472_v52 }
 0x19b   : > { %7070 = vmatprep.mubr.msk.f32.mxu1 %vm637_vm0, %v8489_v26 }
 0x19e   : > { %7071 = vmatmul.mubr.msk.f32.gmra.mrb[28].mxu1 %vm637_vm0, %v8492_v46 }
 0x19f   : > { %7073 = vmatprep.mubr.msk.f32.mxu1 %vm637_vm0, %v8507_v58 }
 0x1a2   : > { %7074 = vmatmul.mubr.msk.f32.gmra.mrb[30].mxu1 %vm637_vm0, %v8510_v51 }
 0x1a3   : > { %7092 = vmatprep.mubr.msk.f32.mxu1 %vm637_vm0, %v8398_v0 }
 0x1a6   : > { %7093 = vmatmul.mubr.msk.f32.vlgmr.msra.gmra.mrb[16].mxu1 %vm637_vm0, %v8393_v30 }
 0x1a7   : > { %7095 = vmatprep.mubr.msk.f32.mxu1 %vm637_vm0, %v8403_v1 }
 0x1aa   : > { %7096 = vmatmul.mubr.msk.f32.gmra.mrb[18].mxu1 %vm637_vm0, %v8407_v31 }
 0x1ab   : > { %7098 = vmatprep.mubr.msk.f32.mxu1 %vm637_vm0, %v8414_v55 }
 0x1ae   : > { %7099 = vmatmul.mubr.msk.f32.gmra.mrb[20].mxu1 %vm637_vm0, %v8417_v63 }
 0x1af   : > { %7101 = vmatprep.mubr.msk.f32.mxu1 %vm637_vm0, %v8430_v4 }
 0x1b2   : > { %7102 = vmatmul.mubr.msk.f32.gmra.mrb[22].mxu1 %vm637_vm0, %v8433_v24 }
 0x1b3   : > { %7104 = vmatprep.mubr.msk.f32.mxu1 %vm637_vm0, %v8449_v56 }
 0x1b5   : > { %v6854_v10 = vpop.f32.mrb[0].mxu0 }
 0x1b6   : > { %v1774_v11 = vpop.f32.mrb[1].mxu0  ;;  %7105 = vmatmul.mubr.msk.f32.gmra.mrb[24].mxu1 %vm637_vm0, %v8452_v22  ;;  %v8906_v22 = vld [vmem:[%s10821_s2] ss:$0 sm:$0xff] }
 0x1b7   : > { %7107 = vmatprep.mubr.msk.f32.mxu1 %vm637_vm0, %v8469_v13 }
 0x1b9   : > { %v6734_v20 = vpop.f32.mrb[0].mxu1  ;;  %v6857_v27 = vpop.f32.mrb[2].mxu0 }
 0x1ba   : > { %v8893_v1 = vadd.f32 %v6854_v10, %v6734_v20  ;;  %v1204_v30 = vpop.f32.mrb[1].mxu1  ;;  %v1786_v0 = vpop.f32.mrb[3].mxu0  ;;  %7108 = vmatmul.mubr.msk.f32.gmra.mrb[26].mxu1 %vm637_vm0, %v8472_v52 }
 0x1bb   : > { %v8897_v31 = vadd.f32 %v1774_v11, %v1204_v30  ;;  %7110 = vmatprep.mubr.msk.f32.mxu1 %vm637_vm0, %v8489_v26  ;;  %v8914_v26 = vld [vmem:[%s10822_s3] ss:$0 sm:$0xff] }
 0x1bd   : > { %v6737_v55 = vpop.f32.mrb[2].mxu1  ;;  %v6860_v63 = vpop.f32.mrb[4].mxu0 }
 0x1be   : > { %v7646_v4 = vadd.f32 %v6857_v27, %v6737_v55  ;;  %v1218_v24 = vpop.f32.mrb[3].mxu1  ;;  %v1798_v56 = vpop.f32.mrb[5].mxu0  ;;  %7111 = vmatmul.mubr.msk.f32.gmra.mrb[28].mxu1 %vm637_vm0, %v8492_v46 }
 0x1bf   : > { %v7647_v13 = vadd.f32 %v1786_v0, %v1218_v24  ;;  %7113 = vmatprep.mubr.msk.f32.mxu1 %vm637_vm0, %v8507_v58 }
 0x1c0   : > { %v3108_v52 = vmul.f32 %v7646_v4, %v8906_v22 }
 0x1c1   : > { %v3107_v35 = vmul.f32 %v7647_v13, %v8906_v22  ;;  %v6740_v36 = vpop.f32.mrb[4].mxu1  ;;  %v6863_v46 = vpop.f32.mrb[6].mxu0 }
 0x1c2   : > { %v8918_v37 = vadd.f32 %v8914_v26, %v3108_v52  ;;  %v7648_v49 = vadd.f32 %v6860_v63, %v6740_v36  ;;  %v1232_v57 = vpop.f32.mrb[5].mxu1  ;;  %v1810_v60 = vpop.f32.mrb[7].mxu0  ;;  %7114 = vmatmul.mubr.msk.f32.gmra.mrb[30].mxu1 %vm637_vm0, %v8510_v51  ;;  %v8976_v36 = vld [vmem:[%s10823_s4] ss:$0 sm:$0xff] }
 0x1c3   : > { %v8923_v58 = vadd.f32 %v8914_v26, %v3107_v35  ;;  %v7649_v3 = vadd.f32 %v1798_v56, %v1232_v57  ;;  %v8983_v57 = vld [vmem:[%s10824_s5] ss:$0 sm:$0xff] }
 0x1c4   : > { %v3110_v38 = vmul.f32 %v7648_v49, %v8906_v22 }
 0x1c5   : > { %v3109_v50 = vmul.f32 %v7649_v3, %v8906_v22  ;;  %v6743_v61 = vpop.f32.mrb[6].mxu1  ;;  %v6866_v9 = vpop.f32.mrb[8].mxu0 }
 0x1c6   : > { %v8928_v33 = vadd.f32 %v8914_v26, %v3110_v38  ;;  %v7650_v39 = vadd.f32 %v6863_v46, %v6743_v61  ;;  %v1246_v5 = vpop.f32.mrb[7].mxu1  ;;  %v1822_v25 = vpop.f32.mrb[9].mxu0  ;;  %v3105_v46 = vmul.f32 %v8897_v31, %v8906_v22 }
 0x1c7   : > { %v8931_v45 = vadd.f32 %v8914_v26, %v3109_v50  ;;  %v7651_v51 = vadd.f32 %v1810_v60, %v1246_v5 }
 0x1c8   : > { %v3112_v23 = vmul.f32 %v7650_v39, %v8906_v22  ;;  %v8989_v61 = vadd.f32 %v8914_v26, %v3105_v46 }
 0x1c9   : > { %v3111_v42 = vmul.f32 %v7651_v51, %v8906_v22  ;;  %v6746_v43 = vpop.f32.mrb[8].mxu1  ;;  %v6869_v34 = vpop.f32.mrb[10].mxu0 }
 0x1ca   : > { %v8936_v7 = vadd.f32 %v8914_v26, %v3112_v23  ;;  %v7652_v53 = vadd.f32 %v6866_v9, %v6746_v43  ;;  %v1260_v12 = vpop.f32.mrb[9].mxu1  ;;  %v1834_v6 = vpop.f32.mrb[11].mxu0 }
 0x1cb   : > { %v8939_v48 = vadd.f32 %v8914_v26, %v3111_v42  ;;  %v7653_v44 = vadd.f32 %v1822_v25, %v1260_v12 }
 0x1cc   : > { %v3114_v15 = vmul.f32 %v7652_v53, %v8906_v22 }
 0x1cd   : > { %v3113_v16 = vmul.f32 %v7653_v44, %v8906_v22  ;;  %v6749_v59 = vpop.f32.mrb[10].mxu1  ;;  %v6872_v41 = vpop.f32.mrb[12].mxu0 }
 0x1ce   : > { %v8944_v40 = vadd.f32 %v8914_v26, %v3114_v15  ;;  %v7654_v17 = vadd.f32 %v6869_v34, %v6749_v59  ;;  %v1274_v29 = vpop.f32.mrb[11].mxu1  ;;  %v1846_v32 = vpop.f32.mrb[13].mxu0 }
 0x1cf   : > { %v8947_v2 = vadd.f32 %v8914_v26, %v3113_v16  ;;  %v7655_v8 = vadd.f32 %v1834_v6, %v1274_v29  ;;  %v3106_v29 = vmul.f32 %v8893_v1, %v8906_v22 }
 0x1d0   : > { %v3116_v47 = vmul.f32 %v7654_v17, %v8906_v22 }
 0x1d1   : > { %v3115_v54 = vmul.f32 %v7655_v8, %v8906_v22  ;;  %v6752_v62 = vpop.f32.mrb[12].mxu1  ;;  %v6875_v14 = vpop.f32.mrb[14].mxu0 }
 0x1d2   : > { %v8952_v18 = vadd.f32 %v8914_v26, %v3116_v47  ;;  %v7656_v19 = vadd.f32 %v6872_v41, %v6752_v62  ;;  %v1288_v21 = vpop.f32.mrb[13].mxu1  ;;  %v1858_v28 = vpop.f32.mrb[15].mxu0 }
 0x1d3   : > { %v8955_v10 = vadd.f32 %v8914_v26, %v3115_v54  ;;  %v7657_v11 = vadd.f32 %v1846_v32, %v1288_v21 }
 0x1d4   : > { %v3118_v20 = vmul.f32 %v7656_v19, %v8906_v22  ;;  %v9031_v19 = vadd.f32 %v8914_v26, %v3106_v29 }
 0x1d5   : > { %v3117_v27 = vmul.f32 %v7657_v11, %v8906_v22  ;;  %v6755_v30 = vpop.f32.mrb[14].mxu1 }
 0x1d6   : > { %v8960_v0 = vadd.f32 %v8914_v26, %v3118_v20  ;;  %v7658_v55 = vadd.f32 %v6875_v14, %v6755_v30  ;;  %v1302_v63 = vpop.f32.mrb[15].mxu1 }
 0x1d7   : > { %v8963_v4 = vadd.f32 %v8914_v26, %v3117_v27  ;;  %v7659_v24 = vadd.f32 %v1858_v28, %v1302_v63 }
 0x1d8   : > { %v3120_v56 = vmul.f32 %v7658_v55, %v8906_v22 }
 0x1d9   : > { %v3119_v13 = vmul.f32 %v7659_v24, %v8906_v22 }
 0x1da   : > { %v8968_v52 = vadd.f32 %v8914_v26, %v3120_v56 }
 0x1db   : > { %v8971_v35 = vadd.f32 %v8914_v26, %v3119_v13 }
 0x279   : > { %v7094_v49 = vpop.f32.mrb[16].mxu1 }
 0x27a   : > { %v3152_v60 = vmul.f32 %v7094_v49, %v8976_v36  ;;  %v3004_v3 = vpop.f32.mrb[17].mxu1 }
 0x27b   : > { %v3151_v38 = vmul.f32 %v8976_v36, %v3004_v3 }
 0x27c   : > { %v3175_v50 = vadd.f32 %v8983_v57, %v3152_v60 }
 0x27d   : > { %v3174_v9 = vadd.f32 %v8983_v57, %v3151_v38  ;;  %v7097_v39 = vpop.f32.mrb[18].mxu1 }
 0x27e   : > { %3607 = vrot.lane.b32.xlu0 %v3175_v50, %s7929_s19  ;;  %3311 = vrot.lane.b32.xlu1 %v3175_v50, %s7930_s20  ;;  %v3016_v31 = vpop.f32.mrb[19].mxu1  ;;  %v3193_v11 = vmul.f32 %v3175_v50, %v9031_v19 }
 0x27f   : > { %v3153_v5 = vmul.f32 %v8976_v36, %v3016_v31  ;;  %v3192_v25 = vmul.f32 %v3174_v9, %v8989_v61 }
 0x281   : > { %v8997_v51 = vadd.f32 %v8983_v57, %v3153_v5  ;;  %v7100_v23 = vpop.f32.mrb[20].mxu1  ;;  %v3209_v38 = vsel %vm3208_vm3, %v3192_v25, 0.0 }
 0x282   : > { %v3156_v42 = vmul.f32 %v7100_v23, %v8976_v36  ;;  %3459 = vrot.lane.b32.xlu0 %v3175_v50, %s7931_s21  ;;  %3833 = vrot.lane.b32.xlu1 %v3192_v25, %s7930_s20  ;;  %v3028_v43 = vpop.f32.mrb[21].mxu1  ;;  %v3212_v50 = vsel %vm3208_vm3, %v3193_v11, 0.0 }
 0x283   : > { %v3155_v34 = vmul.f32 %v8976_v36, %v3028_v43 }
 0x284   : > { %v9004_v53 = vadd.f32 %v8983_v57, %v3156_v42 }
 0x285   : > { %v9007_v12 = vadd.f32 %v8983_v57, %v3155_v34  ;;  %v7103_v6 = vpop.f32.mrb[22].mxu1 }
 0x286   : > { %v3158_v44 = vmul.f32 %v7103_v6, %v8976_v36  ;;  %3309 = vrot.lane.b32.xlu0 %v3174_v9, %s7930_s20  ;;  %4393 = vrot.lane.b32.xlu1 %v3192_v25, %s7931_s21  ;;  %v3040_v15 = vpop.f32.mrb[23].mxu1  ;;  %v3197_v25 = vmul.f32 %v9004_v53, %v8928_v33 }
 0x287   : > { %v3157_v16 = vmul.f32 %v8976_v36, %v3040_v15  ;;  %v3196_v23 = vmul.f32 %v9007_v12, %v8931_v45 }
 0x288   : > { %v9014_v59 = vadd.f32 %v8983_v57, %v3158_v44 }
 0x289   : > { %v9017_v41 = vadd.f32 %v8983_v57, %v3157_v16  ;;  %v7106_v17 = vpop.f32.mrb[24].mxu1  ;;  %v3221_v42 = vsel %vm3208_vm3, %v3196_v23, 0.0 }
 0x28a   : > { %v3160_v32 = vmul.f32 %v7106_v17, %v8976_v36  ;;  %3605 = vrot.lane.b32.xlu0 %v3174_v9, %s7929_s19  ;;  %v3052_v8 = vpop.f32.mrb[25].mxu1  ;;  %v3199_v43 = vmul.f32 %v9014_v59, %v8936_v7 }
 0x28b   : > { %v3159_v47 = vmul.f32 %v8976_v36, %v3052_v8 }
 0x28c   : > { %v9025_v54 = vadd.f32 %v8983_v57, %v3160_v32  ;;  %v3230_v34 = vsel %vm3208_vm3, %v3199_v43, 0.0 }
 0x28d   : > { %v9028_v62 = vadd.f32 %v8983_v57, %v3159_v47  ;;  %v7109_v14 = vpop.f32.mrb[26].mxu1 }
 0x28e   : > { %v3162_v21 = vmul.f32 %v7109_v14, %v8976_v36  ;;  %3457 = vrot.lane.b32.xlu0 %v3174_v9, %s7931_s21  ;;  %v3064_v1 = vpop.f32.mrb[27].mxu1  ;;  %v3154_v9 = vmul.f32 %v7097_v39, %v8976_v36  ;;  %v3201_v6 = vmul.f32 %v9025_v54, %v8944_v40 }
 0x28f   : > { %v3161_v22 = vmul.f32 %v8976_v36, %v3064_v1  ;;  %v3200_v15 = vmul.f32 %v9028_v62, %v8947_v2 }
 0x290   : > { %v9037_v28 = vadd.f32 %v8983_v57, %v3162_v21  ;;  %v3177_v31 = vadd.f32 %v8983_v57, %v3154_v9  ;;  %v3236_v44 = vsel %vm3208_vm3, %v3201_v6, 0.0 }
 0x291   : > { %v9041_v20 = vadd.f32 %v8983_v57, %v3161_v22  ;;  %v7112_v27 = vpop.f32.mrb[28].mxu1  ;;  %v3233_v16 = vsel %vm3208_vm3, %v3200_v15, 0.0 }
 0x292   : > { %v3164_v30 = vmul.f32 %v7112_v27, %v8976_v36  ;;  %3835 = vrot.lane.b32.xlu0 %v3193_v11, %s7930_s20  ;;  %v3076_v26 = vpop.f32.mrb[29].mxu1  ;;  %v3195_v5 = vmul.f32 %v3177_v31, %v8918_v37 }
 0x293   : > { %v3163_v55 = vmul.f32 %v8976_v36, %v3076_v26  ;;  %v3202_v17 = vmul.f32 %v9041_v20, %v8955_v10 }
 0x294   : > { %v9047_v63 = vadd.f32 %v8983_v57, %v3164_v30 }
 0x295   : > { %v9050_v24 = vadd.f32 %v8983_v57, %v3163_v55  ;;  %v7115_v56 = vpop.f32.mrb[30].mxu1  ;;  %v3239_v29 = vsel %vm3208_vm3, %v3202_v17, 0.0 }
 0x296   : > { %v3166_v13 = vmul.f32 %v7115_v56, %v8976_v36  ;;  %4395 = vrot.lane.b32.xlu0 %v3193_v11, %s7931_s21  ;;  %v3088_v46 = vpop.f32.mrb[31].mxu1  ;;  %v3205_v32 = vmul.f32 %v9047_v63, %v8960_v0 }
 0x297   : > { %v3165_v49 = vmul.f32 %v8976_v36, %v3088_v46  ;;  %v3218_v36 = vsel %vm3208_vm3, %v3195_v5, 0.0  ;;  %v3204_v47 = vmul.f32 %v9050_v24, %v8963_v4 }
 0x298   : > { %v9056_v60 = vadd.f32 %v8983_v57, %v3166_v13  ;;  %v3248_v8 = vsel %vm3208_vm3, %v3205_v32, 0.0 }
 0x299   : > { %v9059_v3 = vadd.f32 %v8983_v57, %v3165_v49  ;;  %v3194_v57 = vmul.f32 %v8997_v51, %v8923_v58 }
 0x29b   : > { %v3215_v39 = vsel %vm3208_vm3, %v3194_v57, 0.0 }
 0x2aa   : > { %3210 = vadd.xlane.f32.xlu1 %v3209_v38 }
 0x2b5   : > { %3213 = vadd.xlane.f32.xlu0 %v3212_v50 }
 0x2bb   : > { %3463 = vrot.lane.b32.xlu1 %v3177_v31, %s7931_s21 }
 0x2bf   : > { %3313 = vrot.lane.b32.xlu1 %v8997_v51, %s7930_s20 }
 0x2c3   : > { %3839 = vrot.lane.b32.xlu1 %v3195_v5, %s7930_s20 }
 0x2cb   : > { %3315 = vrot.lane.b32.xlu0 %v3177_v31, %s7930_s20 }
 0x2cf   : > { %3611 = vrot.lane.b32.xlu0 %v3177_v31, %s7929_s19 }
 0x2d3   : > { %3609 = vrot.lane.b32.xlu0 %v8997_v51, %s7929_s19 }
 0x2d7   : > { %3461 = vrot.lane.b32.xlu0 %v8997_v51, %s7931_s21  ;;  %v3224_v51 = vsel %vm3208_vm3, %v3197_v25, 0.0 }
 0x2db   : > { %4399 = vrot.lane.b32.xlu0 %v3195_v5, %s7931_s21 }
 0x2e7   : > { %3219 = vadd.xlane.f32.xlu1 %v3218_v36 }
 0x2f0   : > { %v3608_v21 = vpop.permute.xlu0 %3607  ;;  %v3312_v26 = vpop.permute.xlu1 %3311 }
 0x2f4   : > { %v3460_v1 = vpop.permute.xlu0 %3459 }
 0x2f5   : > { %v3506_v50 = vmul.f32 %v3460_v1, %v9031_v19 }
 0x2f8   : > { %3837 = vrot.lane.b32.xlu1 %v3194_v57, %s7930_s20  ;;  %v3310_v22 = vpop.permute.xlu0 %3309 }
 0x2fa   : > { %3216 = vadd.xlane.f32.xlu0 %v3215_v39 }
 0x2fc   : > { %4397 = vrot.lane.b32.xlu1 %v3194_v57, %s7931_s21  ;;  %v3606_v11 = vpop.permute.xlu0 %3605 }
 0x300   : > { %3317 = vrot.lane.b32.xlu1 %v9007_v12, %s7930_s20  ;;  %v3458_v30 = vpop.permute.xlu0 %3457 }
 0x304   : > { %v3836_v55 = vpop.permute.xlu0 %3835 }
 0x308   : > { %v4396_v13 = vpop.permute.xlu0 %4395 }
 0x310   : > { %3319 = vrot.lane.b32.xlu0 %v9004_v53, %s7930_s20 }
 0x314   : > { %3615 = vrot.lane.b32.xlu0 %v9004_v53, %s7929_s19 }
 0x318   : > { %3467 = vrot.lane.b32.xlu0 %v9004_v53, %s7931_s21  ;;  %v3198_v53 = vmul.f32 %v9017_v41, %v8939_v48 }
 0x31c   : > { %3613 = vrot.lane.b32.xlu0 %v9007_v12, %s7929_s19 }
 0x320   : > { %3465 = vrot.lane.b32.xlu0 %v9007_v12, %s7931_s21  ;;  %v3227_v12 = vsel %vm3208_vm3, %v3198_v53, 0.0 }
 0x324   : > { %3843 = vrot.lane.b32.xlu0 %v3197_v25, %s7930_s20  ;;  %3225 = vadd.xlane.f32.xlu1 %v3224_v51 }
 0x328   : > { %4403 = vrot.lane.b32.xlu0 %v3197_v25, %s7931_s21 }
 0x335   : > { %3841 = vrot.lane.b32.xlu1 %v3196_v23, %s7930_s20 }
 0x339   : > { %4401 = vrot.lane.b32.xlu1 %v3196_v23, %s7931_s21 }
 0x33d   : > { %3321 = vrot.lane.b32.xlu1 %v9017_v41, %s7930_s20 }
 0x341   : > { %3469 = vrot.lane.b32.xlu1 %v9017_v41, %s7931_s21 }
 0x342   : > { %v9222_v49 = vpop.xlane.xlu0 %3213 }
 0x346   : > { %v3316_v38 = vpop.permute.xlu0 %3315 }
 0x347   : > { %3222 = vadd.xlane.f32.xlu0 %v3221_v42  ;;  %v3360_v57 = vmul.f32 %v3316_v38, %v8918_v37 }
 0x34a   : > { %v3612_v31 = vpop.permute.xlu0 %3611 }
 0x34b   : > { %v3656_v36 = vmul.f32 %v3612_v31, %v8918_v37 }
 0x34e   : > { %v3610_v51 = vpop.permute.xlu0 %3609 }
 0x34f   : > { %v3655_v23 = vmul.f32 %v3610_v51, %v8923_v58 }
 0x352   : > { %v3462_v42 = vpop.permute.xlu0 %3461 }
 0x35d   : > { %3323 = vrot.lane.b32.xlu0 %v9014_v59, %s7930_s20 }
 0x361   : > { %3619 = vrot.lane.b32.xlu0 %v9014_v59, %s7929_s19 }
 0x365   : > { %3471 = vrot.lane.b32.xlu0 %v9014_v59, %s7931_s21  ;;  %3231 = vadd.xlane.f32.xlu1 %v3230_v34  ;;  %v3203_v59 = vmul.f32 %v9037_v28, %v8952_v18  ;;  %v3524_v34 = vsel %vm3208_vm3, %v3506_v50, 0.0 }
 0x369   : > { %3617 = vrot.lane.b32.xlu0 %v9017_v41, %s7929_s19  ;;  %v3242_v41 = vsel %vm3208_vm3, %v3203_v59, 0.0 }
 0x36d   : > { %3847 = vrot.lane.b32.xlu0 %v3199_v43, %s7930_s20 }
 0x371   : > { %4407 = vrot.lane.b32.xlu0 %v3199_v43, %s7931_s21  ;;  %v4400_v43 = vpop.permute.xlu0 %4399 }
 0x376   : > { %3845 = vrot.lane.b32.xlu1 %v3198_v53, %s7930_s20 }
 0x37a   : > { %4405 = vrot.lane.b32.xlu1 %v3198_v53, %s7931_s21 }
 0x37e   : > { %3325 = vrot.lane.b32.xlu1 %v9028_v62, %s7930_s20 }
 0x382   : > { %3621 = vrot.lane.b32.xlu1 %v9028_v62, %s7929_s19 }
 0x386   : > { %3473 = vrot.lane.b32.xlu1 %v9028_v62, %s7931_s21  ;;  %v3207_v62 = vmul.f32 %v9056_v60, %v8968_v52 }
 0x387   : > { %v9245_v53 = vpop.xlane.xlu0 %3216 }
 0x388   : > { %v3254_v14 = vsel %vm3208_vm3, %v3207_v62, 0.0  ;;  %10897 = vst [vmem:[#allocation4_spill] sm:$0xff] %v9245_v53 }
 0x390   : > { %3228 = vadd.xlane.f32.xlu0 %v3227_v12  ;;  %v3320_v12 = vpop.permute.xlu0 %3319 }
 0x3a6   : > { %3327 = vrot.lane.b32.xlu0 %v9025_v54, %s7930_s20 }
 0x3aa   : > { %3623 = vrot.lane.b32.xlu0 %v9025_v54, %s7929_s19  ;;  %3237 = vadd.xlane.f32.xlu1 %v3236_v44 }
 0x3ae   : > { %3475 = vrot.lane.b32.xlu0 %v9025_v54, %s7931_s21  ;;  %v3245_v54 = vsel %vm3208_vm3, %v3204_v47, 0.0 }
 0x3b2   : > { %3851 = vrot.lane.b32.xlu0 %v3201_v6, %s7930_s20 }
 0x3b6   : > { %4411 = vrot.lane.b32.xlu0 %v3201_v6, %s7931_s21 }
 0x3bb   : > { %3849 = vrot.lane.b32.xlu1 %v3200_v15, %s7930_s20 }
 0x3bf   : > { %4409 = vrot.lane.b32.xlu1 %v3200_v15, %s7931_s21  ;;  %v3382_v15 = vsel %vm3208_vm3, %v3360_v57, 0.0 }
 0x3c3   : > { %3329 = vrot.lane.b32.xlu1 %v9041_v20, %s7930_s20 }
 0x3c7   : > { %3625 = vrot.lane.b32.xlu1 %v9041_v20, %s7929_s19 }
 0x3cb   : > { %3477 = vrot.lane.b32.xlu1 %v9041_v20, %s7931_s21  ;;  %v3653_v20 = vmul.f32 %v3606_v11, %v8989_v61 }
 0x3d5   : > { %3234 = vadd.xlane.f32.xlu0 %v3233_v16  ;;  %v3616_v16 = vpop.permute.xlu0 %3615 }
 0x3eb   : > { %3331 = vrot.lane.b32.xlu0 %v9037_v28, %s7930_s20 }
 0x3ef   : > { %3627 = vrot.lane.b32.xlu0 %v9037_v28, %s7929_s19  ;;  %3243 = vadd.xlane.f32.xlu1 %v3242_v41 }
 0x3f3   : > { %3479 = vrot.lane.b32.xlu0 %v9037_v28, %s7931_s21  ;;  %v3206_v28 = vmul.f32 %v9059_v3, %v8971_v35 }
 0x3f5   : > { %v3251_v27 = vsel %vm3208_vm3, %v3206_v28, 0.0 }
 0x3f7   : > { %3855 = vrot.lane.b32.xlu0 %v3203_v59, %s7930_s20 }
 0x3fb   : > { %4415 = vrot.lane.b32.xlu0 %v3203_v59, %s7931_s21 }
 0x400   : > { %3853 = vrot.lane.b32.xlu1 %v3202_v17, %s7930_s20 }
 0x404   : > { %4413 = vrot.lane.b32.xlu1 %v3202_v17, %s7931_s21 }
 0x408   : > { %3333 = vrot.lane.b32.xlu1 %v9050_v24, %s7930_s20 }
 0x40c   : > { %3629 = vrot.lane.b32.xlu1 %v9050_v24, %s7929_s19 }
 0x410   : > { %3481 = vrot.lane.b32.xlu1 %v9050_v24, %s7931_s21  ;;  %v3357_v24 = vmul.f32 %v3310_v22, %v8989_v61 }
 0x412   : > { %v3373_v46 = vsel %vm3208_vm3, %v3357_v24, 0.0 }
 0x41a   : > { %3240 = vadd.xlane.f32.xlu0 %v3239_v29 }
 0x430   : > { %3335 = vrot.lane.b32.xlu0 %v9047_v63, %s7930_s20 }
 0x434   : > { %3631 = vrot.lane.b32.xlu0 %v9047_v63, %s7929_s19  ;;  %3249 = vadd.xlane.f32.xlu1 %v3248_v8 }
 0x438   : > { %3483 = vrot.lane.b32.xlu0 %v9047_v63, %s7931_s21  ;;  %v3358_v63 = vmul.f32 %v3312_v26, %v9031_v19 }
 0x43a   : > { %v3376_v56 = vsel %vm3208_vm3, %v3358_v63, 0.0 }
 0x43c   : > { %3859 = vrot.lane.b32.xlu0 %v3205_v32, %s7930_s20 }
 0x440   : > { %4419 = vrot.lane.b32.xlu0 %v3205_v32, %s7931_s21  ;;  %v3468_v32 = vpop.permute.xlu0 %3467 }
 0x444   : > { %4417 = vrot.lane.b32.xlu0 %v3204_v47, %s7931_s21 }
 0x445   : > { %3857 = vrot.lane.b32.xlu1 %v3204_v47, %s7930_s20 }
 0x449   : > { %3337 = vrot.lane.b32.xlu1 %v9059_v3, %s7930_s20 }
 0x44d   : > { %3633 = vrot.lane.b32.xlu1 %v9059_v3, %s7929_s19 }
 0x451   : > { %3485 = vrot.lane.b32.xlu1 %v9059_v3, %s7931_s21  ;;  %v3834_v3 = vpop.permute.xlu1 %3833 }
 0x452   : > { %v3881_v59 = vsel %vm3208_vm3, %v3834_v3, 0.0 }
 0x455   : > { %v4394_v9 = vpop.permute.xlu1 %4393 }
 0x456   : > { %v4441_v29 = vsel %vm3208_vm3, %v4394_v9, 0.0 }
 0x459   : > { %v9229_v5 = vpop.xlane.xlu1 %3210 }
 0x45a   : > { %10896 = vst [vmem:[#allocation3_spill] sm:$0xff] %v9229_v5 }
 0x45d   : > { %v3464_v39 = vpop.permute.xlu1 %3463 }
 0x45e   : > { %v3508_v25 = vmul.f32 %v3464_v39, %v8918_v37  ;;  %v3884_v37 = vsel %vm3208_vm3, %v3836_v55, 0.0 }
 0x460   : > { %v3530_v41 = vsel %vm3208_vm3, %v3508_v25, 0.0 }
 0x461   : > { %v3314_v44 = vpop.permute.xlu1 %3313 }
 0x462   : > { %v3359_v8 = vmul.f32 %v3314_v44, %v8923_v58 }
 0x463   : > { %3246 = vadd.xlane.f32.xlu0 %v3245_v54  ;;  %v3507_v54 = vmul.f32 %v3462_v42, %v8923_v58  ;;  %v3510_v58 = vmul.f32 %v3468_v32, %v8928_v33 }
 0x465   : > { %v3840_v17 = vpop.permute.xlu1 %3839 }
 0x466   : > { %v3890_v47 = vsel %vm3208_vm3, %v3840_v17, 0.0 }
 0x469   : > { %v9259_v1 = vpop.xlane.xlu1 %3219 }
 0x46d   : > { %v3838_v11 = vpop.permute.xlu1 %3837 }
 0x475   : > { %3255 = vadd.xlane.f32.xlu1 %v3254_v14  ;;  %v3527_v14 = vsel %vm3208_vm3, %v3507_v54, 0.0 }
 0x479   : > { %3339 = vrot.lane.b32.xlu0 %v9056_v60, %s7930_s20 }
 0x47d   : > { %3635 = vrot.lane.b32.xlu0 %v9056_v60, %s7929_s19 }
 0x481   : > { %3487 = vrot.lane.b32.xlu0 %v9056_v60, %s7931_s21  ;;  %v3654_v60 = vmul.f32 %v3608_v21, %v9031_v19  ;;  %v3505_v19 = vmul.f32 %v3458_v30, %v8989_v61  ;;  %v4444_v61 = vsel %vm3208_vm3, %v4396_v13, 0.0  ;;  %v3614_v21 = vpop.permute.xlu0 %3613 }
 0x482   : > { %v3657_v30 = vmul.f32 %v3614_v21, %v8931_v45 }
 0x483   : > { %v3521_v6 = vsel %vm3208_vm3, %v3505_v19, 0.0 }
 0x485   : > { %3863 = vrot.lane.b32.xlu0 %v3207_v62, %s7930_s20  ;;  %v3466_v22 = vpop.permute.xlu0 %3465 }
 0x486   : > { %3861 = vrot.lane.b32.xlu1 %v3206_v28, %s7930_s20  ;;  %v3509_v38 = vmul.f32 %v3466_v22, %v8931_v45 }
 0x488   : > { %v3533_v9 = vsel %vm3208_vm3, %v3509_v38, 0.0 }
 0x489   : > { %4423 = vrot.lane.b32.xlu0 %v3207_v62, %s7931_s21  ;;  %v3379_v62 = vsel %vm3208_vm3, %v3359_v8, 0.0 }
 0x48a   : > { %4421 = vrot.lane.b32.xlu1 %v3206_v28, %s7931_s21  ;;  %v3362_v28 = vmul.f32 %v3320_v12, %v8928_v33 }
 0x48c   : > { %v3388_v44 = vsel %vm3208_vm3, %v3362_v28, 0.0 }
 0x48e   : > { %3685 = vrot.lane.b32.xlu1 %v3653_v20, %s7930_s20 }
 0x492   : > { %4261 = vrot.lane.b32.xlu1 %v3653_v20, %s7931_s21  ;;  %v3844_v20 = vpop.permute.xlu0 %3843 }
 0x496   : > { %v4404_v55 = vpop.permute.xlu0 %4403 }
 0x4a8   : > { %3252 = vadd.xlane.f32.xlu0 %v3251_v27  ;;  %v4398_v27 = vpop.permute.xlu1 %4397 }
 0x4a9   : > { %v4447_v13 = vsel %vm3208_vm3, %v4398_v27, 0.0 }
 0x4ac   : > { %v3318_v26 = vpop.permute.xlu1 %3317 }
 0x4b0   : > { %v9277_v3 = vpop.xlane.xlu1 %3225 }
 0x4b1   : > { %10899 = vst [vmem:[#allocation6_spill] sm:$0xff] %v9277_v3 }
 0x4b4   : > { %v3842_v31 = vpop.permute.xlu1 %3841 }
 0x4b6   : > { %3377 = vadd.xlane.f32.xlu1 %v3376_v56  ;;  %v3887_v56 = vsel %vm3208_vm3, %v3838_v11, 0.0 }
 0x4ba   : > { %3374 = vadd.xlane.f32.xlu1 %v3373_v46 }
 0x4be   : > { %3687 = vrot.lane.b32.xlu0 %v3654_v60, %s7930_s20 }
 0x4c2   : > { %3983 = vrot.lane.b32.xlu0 %v3358_v63, %s7930_s20  ;;  %v4450_v63 = vsel %vm3208_vm3, %v4400_v43, 0.0 }
 0x4c6   : > { %4131 = vrot.lane.b32.xlu0 %v3506_v50, %s7931_s21 }
 0x4ca   : > { %4263 = vrot.lane.b32.xlu0 %v3654_v60, %s7931_s21  ;;  %v3361_v60 = vmul.f32 %v3318_v26, %v8931_v45 }
 0x4cb   : > { %3691 = vrot.lane.b32.xlu1 %v3656_v36, %s7930_s20 }
 0x4cc   : > { %v3385_v50 = vsel %vm3208_vm3, %v3361_v60, 0.0 }
 0x4ce   : > { %3981 = vrot.lane.b32.xlu0 %v3357_v24, %s7930_s20  ;;  %v9272_v24 = vpop.xlane.xlu0 %3222 }
 0x4cf   : > { %3987 = vrot.lane.b32.xlu1 %v3360_v57, %s7930_s20  ;;  %10898 = vst [vmem:[#allocation5_spill] sm:$0xff] %v9272_v24  ;;  %v3658_v57 = vmul.f32 %v3616_v16, %v8928_v33  ;;  %v3536_v16 = vsel %vm3208_vm3, %v3510_v58, 0.0 }
 0x4d2   : > { %4129 = vrot.lane.b32.xlu0 %v3505_v19, %s7931_s21  ;;  %v3324_v46 = vpop.permute.xlu0 %3323  ;;  %v4402_v19 = vpop.permute.xlu1 %4401 }
 0x4d3   : > { %4135 = vrot.lane.b32.xlu1 %v3508_v25, %s7931_s21  ;;  %v3364_v25 = vmul.f32 %v3324_v46, %v8936_v7  ;;  %v4453_v11 = vsel %vm3208_vm3, %v4402_v19, 0.0 }
 0x4d6   : > { %v3322_v51 = vpop.permute.xlu1 %3321 }
 0x4d7   : > { %3689 = vrot.lane.b32.xlu1 %v3655_v23, %s7930_s20 }
 0x4da   : > { %v3470_v43 = vpop.permute.xlu1 %3469 }
 0x4db   : > { %4265 = vrot.lane.b32.xlu1 %v3655_v23, %s7931_s21  ;;  %v3511_v21 = vmul.f32 %v3470_v43, %v8939_v48 }
 0x4dd   : > { %v3539_v27 = vsel %vm3208_vm3, %v3511_v21, 0.0 }
 0x4f1   : > { %3525 = vadd.xlane.f32.xlu0 %v3524_v34  ;;  %v9295_v34 = vpop.xlane.xlu1 %3231 }
 0x4f2   : > { %10900 = vst [vmem:[#allocation7_spill] sm:$0xff] %v9295_v34 }
 0x4f5   : > { %3885 = vadd.xlane.f32.xlu0 %v3884_v37 }
 0x4f9   : > { %4445 = vadd.xlane.f32.xlu0 %v4444_v61  ;;  %v9300_v61 = vpop.permute.xlu1 %3845 }
 0x4fd   : > { %3522 = vadd.xlane.f32.xlu0 %v3521_v6  ;;  %v9304_v6 = vpop.permute.xlu1 %4405 }
 0x4ff   : > { %3383 = vadd.xlane.f32.xlu1 %v3382_v15 }
 0x501   : > { %3882 = vadd.xlane.f32.xlu0 %v3881_v59  ;;  %v9308_v59 = vpop.permute.xlu1 %3325 }
 0x503   : > { %3531 = vadd.xlane.f32.xlu1 %v3530_v41  ;;  %v3896_v41 = vsel %vm3208_vm3, %v3844_v20, 0.0 }
 0x505   : > { %4442 = vadd.xlane.f32.xlu0 %v4441_v29  ;;  %v3394_v29 = vsel %vm3208_vm3, %v3364_v25, 0.0  ;;  %v3622_v32 = vpop.permute.xlu1 %3621 }
 0x507   : > { %3891 = vadd.xlane.f32.xlu1 %v3890_v47  ;;  %v3363_v47 = vmul.f32 %v3322_v51, %v8939_v48 }
 0x509   : > { %v3474_v22 = vpop.permute.xlu1 %3473 }
 0x50b   : > { %3380 = vadd.xlane.f32.xlu1 %v3379_v62 }
 0x50d   : > { %v9323_v20 = vpop.xlane.xlu1 %3237 }
 0x50e   : > { %10902 = vst [vmem:[#allocation9_spill] sm:$0xff] %v9323_v20 }
 0x50f   : > { %3528 = vadd.xlane.f32.xlu1 %v3527_v14  ;;  %v3893_v14 = vsel %vm3208_vm3, %v3842_v31, 0.0 }
 0x51b   : > { %4267 = vrot.lane.b32.xlu0 %v3656_v36, %s7931_s21  ;;  %v3620_v36 = vpop.permute.xlu0 %3619 }
 0x51f   : > { %3985 = vrot.lane.b32.xlu0 %v3359_v8, %s7930_s20  ;;  %v3472_v39 = vpop.permute.xlu0 %3471  ;;  %v4456_v8 = vsel %vm3208_vm3, %v4404_v55, 0.0 }
 0x520   : > { %3991 = vrot.lane.b32.xlu1 %v3362_v28, %s7930_s20  ;;  %v3512_v23 = vmul.f32 %v3472_v39, %v8936_v7  ;;  %v3391_v28 = vsel %vm3208_vm3, %v3363_v47, 0.0 }
 0x523   : > { %4133 = vrot.lane.b32.xlu0 %v3507_v54, %s7931_s21  ;;  %v3618_v45 = vpop.permute.xlu0 %3617  ;;  %v3542_v54 = vsel %vm3208_vm3, %v3512_v23, 0.0 }
 0x524   : > { %4139 = vrot.lane.b32.xlu1 %v3510_v58, %s7931_s21  ;;  %v3659_v33 = vmul.f32 %v3618_v45, %v8939_v48 }
 0x527   : > { %v9291_v42 = vpop.permute.xlu0 %3847 }
 0x528   : > { %3693 = vrot.lane.b32.xlu1 %v3657_v30, %s7930_s20  ;;  %v3902_v43 = vsel %vm3208_vm3, %v9291_v42, 0.0  ;;  %v3899_v42 = vsel %vm3208_vm3, %v9300_v61, 0.0 }
 0x52b   : > { %v9298_v37 = vpop.permute.xlu0 %4407 }
 0x52c   : > { %4269 = vrot.lane.b32.xlu1 %v3657_v30, %s7931_s21  ;;  %v9326_v30 = vpop.permute.xlu1 %3849 }
 0x52f   : > { %v9302_v12 = vpop.xlane.xlu0 %3228 }
 0x530   : > { %10901 = vst [vmem:[#allocation8_spill] sm:$0xff] %v9302_v12  ;;  %v9328_v26 = vpop.permute.xlu1 %4409 }
 0x533   : > { %v3328_v15 = vpop.permute.xlu0 %3327 }
 0x534   : > { %v3366_v48 = vmul.f32 %v3328_v15, %v8944_v40 }
 0x536   : > { %v3400_v15 = vsel %vm3208_vm3, %v3366_v48, 0.0 }
 0x537   : > { %v9311_v17 = vpop.permute.xlu0 %3623 }
 0x53b   : > { %v3476_v62 = vpop.permute.xlu0 %3475 }
 0x53f   : > { %v9321_v58 = vpop.permute.xlu0 %3851 }
 0x542   : > { %4451 = vadd.xlane.f32.xlu0 %v4450_v63  ;;  %v9333_v63 = vpop.permute.xlu1 %3329 }
 0x543   : > { %v9331_v55 = vpop.permute.xlu0 %4411 }
 0x546   : > { %3888 = vadd.xlane.f32.xlu0 %v3887_v56  ;;  %v3660_v56 = vmul.f32 %v3620_v36, %v8936_v7 }
 0x547   : > { %v9338_v46 = vpop.xlane.xlu0 %3234 }
 0x548   : > { %10903 = vst [vmem:[#allocation10_spill] sm:$0xff] %v9338_v46 }
 0x54a   : > { %4448 = vadd.xlane.f32.xlu0 %v4447_v13  ;;  %v3514_v13 = vmul.f32 %v3476_v62, %v8944_v40 }
 0x550   : > { %3386 = vadd.xlane.f32.xlu1 %v3385_v50  ;;  %v3332_v50 = vpop.permute.xlu0 %3331 }
 0x554   : > { %3534 = vadd.xlane.f32.xlu1 %v3533_v9  ;;  %v9349_v7 = vpop.permute.xlu0 %3627 }
 0x560   : > { %3695 = vrot.lane.b32.xlu0 %v3658_v57, %s7930_s20 }
 0x564   : > { %4271 = vrot.lane.b32.xlu0 %v3658_v57, %s7931_s21  ;;  %v3480_v57 = vpop.permute.xlu0 %3479 }
 0x565   : > { %3995 = vrot.lane.b32.xlu1 %v3364_v25, %s7930_s20 }
 0x568   : > { %3989 = vrot.lane.b32.xlu0 %v3361_v60, %s7930_s20  ;;  %v3661_v60 = vmul.f32 %v3622_v32, %v8947_v2  ;;  %v9358_v19 = vpop.permute.xlu0 %3855 }
 0x569   : > { %4143 = vrot.lane.b32.xlu1 %v3512_v23, %s7931_s21 }
 0x56c   : > { %4137 = vrot.lane.b32.xlu0 %v3509_v38, %s7931_s21  ;;  %v3626_v38 = vpop.permute.xlu1 %3625  ;;  %v9362_v45 = vpop.permute.xlu0 %4415 }
 0x56d   : > { %3697 = vrot.lane.b32.xlu1 %v3659_v33, %s7930_s20 }
 0x570   : > { %v9346_v9 = vpop.permute.xlu1 %3477  ;;  %v9364_v51 = vpop.xlane.xlu0 %3240 }
 0x571   : > { %4273 = vrot.lane.b32.xlu1 %v3659_v33, %s7931_s21  ;;  %10905 = vst [vmem:[#allocation12_spill] sm:$0xff] %v9364_v51  ;;  %v3367_v51 = vmul.f32 %v9333_v63, %v8955_v10  ;;  %v4465_v63 = vsel %vm3208_vm3, %v9328_v26, 0.0 }
 0x574   : > { %v9352_v31 = vpop.xlane.xlu1 %3243  ;;  %v9368_v33 = vpop.permute.xlu0 %3335 }
 0x575   : > { %10904 = vst [vmem:[#allocation11_spill] sm:$0xff] %v9352_v31 }
 0x578   : > { %v9354_v36 = vpop.permute.xlu1 %3853  ;;  %v9381_v32 = vpop.permute.xlu0 %3631 }
 0x57c   : > { %v9356_v39 = vpop.permute.xlu1 %4413  ;;  %v9390_v62 = vpop.permute.xlu0 %3483 }
 0x57d   : > { %v3518_v20 = vmul.f32 %v9390_v62, %v8960_v0 }
 0x580   : > { %v9360_v25 = vpop.permute.xlu1 %3333  ;;  %v9397_v61 = vpop.permute.xlu0 %3859 }
 0x584   : > { %v9366_v23 = vpop.permute.xlu1 %3629 }
 0x58b   : > { %3389 = vadd.xlane.f32.xlu0 %v3388_v44  ;;  %v9372_v44 = vpop.permute.xlu1 %3481 }
 0x58f   : > { %3537 = vadd.xlane.f32.xlu0 %v3536_v16  ;;  %v4462_v16 = vsel %vm3208_vm3, %v9298_v37, 0.0 }
 0x593   : > { %3897 = vadd.xlane.f32.xlu0 %v3896_v41  ;;  %v9377_v41 = vpop.xlane.xlu1 %3249 }
 0x594   : > { %10906 = vst [vmem:[#allocation13_spill] sm:$0xff] %v9377_v41  ;;  %v4468_v41 = vsel %vm3208_vm3, %v9331_v55, 0.0  ;;  %v3403_v55 = vsel %vm3208_vm3, %v3367_v51, 0.0 }
 0x595   : > { %3395 = vadd.xlane.f32.xlu1 %v3394_v29  ;;  %v3365_v29 = vmul.f32 %v9308_v59, %v8947_v2  ;;  %v4459_v59 = vsel %vm3208_vm3, %v9304_v6, 0.0  ;;  %v3662_v6 = vmul.f32 %v9311_v17, %v8944_v40 }
 0x597   : > { %4457 = vadd.xlane.f32.xlu0 %v4456_v8  ;;  %v3548_v8 = vsel %vm3208_vm3, %v3514_v13, 0.0  ;;  %v9388_v37 = vpop.permute.xlu1 %3857 }
 0x599   : > { %3543 = vadd.xlane.f32.xlu1 %v3542_v54  ;;  %v3397_v54 = vsel %vm3208_vm3, %v3365_v29, 0.0 }
 0x59b   : > { %3894 = vadd.xlane.f32.xlu0 %v3893_v14 }
 0x59d   : > { %3392 = vadd.xlane.f32.xlu1 %v3391_v28 }
 0x59f   : > { %4454 = vadd.xlane.f32.xlu0 %v4453_v11  ;;  %v3368_v11 = vmul.f32 %v3332_v50, %v8952_v18 }
 0x5a1   : > { %3540 = vadd.xlane.f32.xlu1 %v3539_v27 }
 0x5b2   : > { %3999 = vrot.lane.b32.xlu1 %v3366_v48, %s7930_s20 }
 0x5b5   : > { %3699 = vrot.lane.b32.xlu0 %v3660_v56, %s7930_s20 }
 0x5b6   : > { %4147 = vrot.lane.b32.xlu1 %v3514_v13, %s7931_s21 }
 0x5b9   : > { %4275 = vrot.lane.b32.xlu0 %v3660_v56, %s7931_s21  ;;  %v3516_v56 = vmul.f32 %v3480_v57, %v8952_v18 }
 0x5ba   : > { %3701 = vrot.lane.b32.xlu1 %v3661_v60, %s7930_s20 }
 0x5bb   : > { %v3554_v31 = vsel %vm3208_vm3, %v3516_v56, 0.0 }
 0x5bd   : > { %3993 = vrot.lane.b32.xlu0 %v3363_v47, %s7930_s20  ;;  %v3513_v47 = vmul.f32 %v3474_v22, %v8947_v2  ;;  %v9401_v2 = vpop.permute.xlu0 %4419 }
 0x5be   : > { %4277 = vrot.lane.b32.xlu1 %v3661_v60, %s7931_s21  ;;  %v3663_v60 = vmul.f32 %v3626_v38, %v8955_v10 }
 0x5bf   : > { %v3545_v14 = vsel %vm3208_vm3, %v3513_v47, 0.0 }
 0x5c1   : > { %4141 = vrot.lane.b32.xlu0 %v3511_v21, %s7931_s21  ;;  %v9395_v21 = vpop.permute.xlu1 %3337  ;;  %v9406_v27 = vpop.permute.xlu0 %4417 }
 0x5c5   : > { %v9399_v28 = vpop.permute.xlu1 %3633  ;;  %v9414_v13 = vpop.xlane.xlu0 %3246 }
 0x5c6   : > { %10907 = vst [vmem:[#allocation14_spill] sm:$0xff] %v9414_v13 }
 0x5c9   : > { %v9403_v22 = vpop.permute.xlu1 %3485 }
 0x5cd   : > { %v9411_v48 = vpop.xlane.xlu1 %3255 }
 0x5d1   : > { %v9419_v50 = vpop.permute.xlu1 %3861 }
 0x5d5   : > { %v9427_v40 = vpop.permute.xlu1 %4421 }
 0x5d9   : > { %v9432_v57 = vpop.permute.xlu1 %3685 }
 0x5e0   : > { %3903 = vadd.xlane.f32.xlu0 %v3902_v43  ;;  %v9422_v43 = vpop.permute.xlu0 %3339 }
 0x5e2   : > { %3401 = vadd.xlane.f32.xlu1 %v3400_v15  ;;  %v9436_v15 = vpop.permute.xlu1 %4261 }
 0x5e4   : > { %4463 = vadd.xlane.f32.xlu0 %v4462_v16  ;;  %v9429_v17 = vpop.permute.xlu0 %3635 }
 0x5e6   : > { %3549 = vadd.xlane.f32.xlu1 %v3548_v8  ;;  %v9440_v8 = vpop.xlane.xlu1 %3377 }
 0x5e8   : > { %3900 = vadd.xlane.f32.xlu0 %v3899_v42  ;;  %v9434_v38 = vpop.permute.xlu0 %3487 }
 0x5ea   : > { %3398 = vadd.xlane.f32.xlu1 %v3397_v54 }
 0x5ec   : > { %4460 = vadd.xlane.f32.xlu0 %v4459_v59  ;;  %v9438_v16 = vpop.permute.xlu0 %3863 }
 0x5ee   : > { %3546 = vadd.xlane.f32.xlu1 %v3545_v14 }
 0x5f0   : > { %v9442_v42 = vpop.permute.xlu0 %4423 }
 0x5f4   : > { %v9446_v54 = vpop.xlane.xlu0 %3252 }
 0x5f8   : > { %v9450_v14 = vpop.permute.xlu0 %3687 }
 0x5fc   : > { %v9457_v13 = vpop.permute.xlu0 %3983 }
 0x5ff   : > { %4003 = vrot.lane.b32.xlu1 %v3368_v11, %s7930_s20 }
 0x602   : > { %3703 = vrot.lane.b32.xlu0 %v3662_v6, %s7930_s20 }
 0x603   : > { %4151 = vrot.lane.b32.xlu1 %v3516_v56, %s7931_s21 }
 0x606   : > { %4279 = vrot.lane.b32.xlu0 %v3662_v6, %s7931_s21 }
 0x607   : > { %3705 = vrot.lane.b32.xlu1 %v3663_v60, %s7930_s20 }
 0x60a   : > { %3997 = vrot.lane.b32.xlu0 %v3365_v29, %s7930_s20  ;;  %v9444_v29 = vpop.xlane.xlu1 %3374 }
 0x60b   : > { %4281 = vrot.lane.b32.xlu1 %v3663_v60, %s7931_s21  ;;  %v3406_v60 = vsel %vm3208_vm3, %v3368_v11, 0.0  ;;  %v3515_v11 = vmul.f32 %v9346_v9, %v8955_v10 }
 0x60e   : > { %4145 = vrot.lane.b32.xlu0 %v3513_v47, %s7931_s21  ;;  %v9448_v59 = vpop.permute.xlu1 %3691  ;;  %v3908_v47 = vsel %vm3208_vm3, %v9321_v58, 0.0  ;;  %v3905_v58 = vsel %vm3208_vm3, %v9326_v30, 0.0  ;;  %v4471_v30 = vsel %vm3208_vm3, %v9356_v39, 0.0 }
 0x612   : > { %v9454_v6 = vpop.permute.xlu1 %3987 }
 0x616   : > { %v9464_v46 = vpop.permute.xlu1 %4135 }
 0x62d   : > { %3909 = vadd.xlane.f32.xlu0 %v3908_v47  ;;  %v9468_v47 = vpop.permute.xlu0 %4131 }
 0x62f   : > { %3407 = vadd.xlane.f32.xlu1 %v3406_v60 }
 0x631   : > { %4469 = vadd.xlane.f32.xlu0 %v4468_v41  ;;  %v9475_v41 = vpop.permute.xlu1 %3689  ;;  %v9478_v56 = vpop.permute.xlu0 %4263 }
 0x633   : > { %3555 = vadd.xlane.f32.xlu1 %v3554_v31  ;;  %v3551_v31 = vsel %vm3208_vm3, %v3515_v11, 0.0 }
 0x635   : > { %3906 = vadd.xlane.f32.xlu0 %v3905_v58  ;;  %v9482_v60 = vpop.permute.xlu1 %4265  ;;  %v9484_v10 = vpop.permute.xlu0 %3981 }
 0x637   : > { %3404 = vadd.xlane.f32.xlu1 %v3403_v55 }
 0x639   : > { %4466 = vadd.xlane.f32.xlu0 %v4465_v63  ;;  %v9486_v9 = vpop.xlane.xlu1 %3383  ;;  %v9488_v58 = vpop.permute.xlu0 %4129  ;;  %v3664_v63 = vmul.f32 %v9349_v7, %v8952_v18  ;;  %v9510_v18 = vmul.f32 %v9366_v23, %v8963_v4 }
 0x63b   : > { %3552 = vadd.xlane.f32.xlu1 %v3551_v31  ;;  %v3370_v31 = vmul.f32 %v9368_v33, %v8960_v0 }
 0x63d   : > { %v9490_v26 = vpop.xlane.xlu1 %3531  ;;  %v9492_v55 = vpop.xlane.xlu0 %3525 }
 0x63f   : > { %4472 = vadd.xlane.f32.xlu1 %v4471_v30 }
 0x641   : > { %v9499_v39 = vpop.xlane.xlu1 %3891  ;;  %v9502_v30 = vpop.xlane.xlu0 %3885 }
 0x642   : > { %10908 = vst [vmem:[#allocation15_spill] sm:$0xff] %v9499_v39 }
 0x645   : > { %v9512_v7 = vpop.xlane.xlu1 %3380  ;;  %v9514_v33 = vpop.xlane.xlu0 %4445 }
 0x646   : > { %10909 = vst [vmem:[#allocation16_spill] sm:$0xff] %v9512_v7  ;;  %10910 = vst [vmem:[#allocation17_spill] sm:$0xff] %v9514_v33 }
 0x649   : > { %v9520_v62 = vpop.xlane.xlu1 %3528 }
 0x64a   : > { %10911 = vst [vmem:[#allocation18_spill] sm:$0xff] %v9520_v62  ;;  %v3914_v62 = vsel %vm3208_vm3, %v9358_v19, 0.0  ;;  %v3911_v19 = vsel %vm3208_vm3, %v9354_v36, 0.0 }
 0x64d   : > { %v9524_v12 = vpop.permute.xlu1 %3991 }
 0x64f   : > { %3707 = vrot.lane.b32.xlu0 %v3664_v63, %s7930_s20 }
 0x650   : > { %4007 = vrot.lane.b32.xlu1 %v3370_v31, %s7930_s20 }
 0x651   : > { %v9528_v23 = vpop.permute.xlu1 %4139 }
 0x653   : > { %4283 = vrot.lane.b32.xlu0 %v3664_v63, %s7931_s21  ;;  %v9522_v63 = vpop.xlane.xlu0 %3522 }
 0x654   : > { %4155 = vrot.lane.b32.xlu1 %v3518_v20, %s7931_s21  ;;  %10912 = vst [vmem:[#allocation19_spill] sm:$0xff] %v9522_v63  ;;  %v3369_v63 = vmul.f32 %v9360_v25, %v8963_v4 }
 0x655   : > { %v9532_v3 = vpop.permute.xlu1 %3693 }
 0x657   : > { %4001 = vrot.lane.b32.xlu0 %v3367_v51, %s7930_s20  ;;  %v9526_v34 = vpop.xlane.xlu0 %3882 }
 0x658   : > { %3709 = vrot.lane.b32.xlu1 %v9510_v18, %s7930_s20  ;;  %10913 = vst [vmem:[#allocation20_spill] sm:$0xff] %v9526_v34  ;;  %v3412_v34 = vsel %vm3208_vm3, %v3370_v31, 0.0 }
 0x659   : > { %v9536_v53 = vpop.permute.xlu1 %4269 }
 0x65b   : > { %4149 = vrot.lane.b32.xlu0 %v3515_v11, %s7931_s21  ;;  %v9530_v24 = vpop.xlane.xlu0 %4442 }
 0x65c   : > { %10914 = vst [vmem:[#allocation21_spill] sm:$0xff] %v9530_v24  ;;  %v4474_v24 = vsel %vm3208_vm3, %v9362_v45, 0.0  ;;  %v3409_v45 = vsel %vm3208_vm3, %v3369_v63, 0.0 }
 0x65d   : > { %v9540_v11 = vpop.xlane.xlu1 %3386 }
 0x65e   : > { %10915 = vst [vmem:[#allocation22_spill] sm:$0xff] %v9540_v11  ;;  %v3560_v11 = vsel %vm3208_vm3, %v3518_v20, 0.0 }
 0x65f   : > { %v9534_v51 = vpop.permute.xlu0 %4267 }
 0x661   : > { %v9549_v33 = vpop.xlane.xlu1 %3534 }
 0x662   : > { %10916 = vst [vmem:[#allocation23_spill] sm:$0xff] %v9549_v33 }
 0x663   : > { %v9538_v7 = vpop.permute.xlu0 %3985 }
 0x665   : > { %v9561_v31 = vpop.permute.xlu1 %3995 }
 0x667   : > { %v9544_v39 = vpop.permute.xlu0 %4133 }
 0x66b   : > { %v9553_v5 = vpop.xlane.xlu0 %4451 }
 0x66c   : > { %10917 = vst [vmem:[#allocation24_spill] sm:$0xff] %v9553_v5 }
 0x67a   : > { %3915 = vadd.xlane.f32.xlu0 %v3914_v62  ;;  %v9566_v62 = vpop.permute.xlu1 %4143 }
 0x67c   : > { %3413 = vadd.xlane.f32.xlu1 %v3412_v34  ;;  %v3517_v34 = vmul.f32 %v9372_v44, %v8963_v4  ;;  %v3666_v4 = vmul.f32 %v9381_v32, %v8960_v0  ;;  %v3667_v0 = vmul.f32 %v9399_v28, %v8971_v35  ;;  %v3519_v28 = vmul.f32 %v9403_v22, %v8971_v35 }
 0x67e   : > { %4475 = vadd.xlane.f32.xlu0 %v4474_v24  ;;  %v9563_v24 = vpop.xlane.xlu0 %3888  ;;  %v3557_v25 = vsel %vm3208_vm3, %v3517_v34, 0.0 }
 0x67f   : > { %10918 = vst [vmem:[#allocation25_spill] sm:$0xff] %v9563_v24 }
 0x680   : > { %3561 = vadd.xlane.f32.xlu1 %v3560_v11  ;;  %v9570_v11 = vpop.permute.xlu1 %3697 }
 0x682   : > { %3912 = vadd.xlane.f32.xlu0 %v3911_v19  ;;  %v9568_v20 = vpop.xlane.xlu0 %4448  ;;  %v3372_v19 = vmul.f32 %v9422_v43, %v8968_v52  ;;  %v3371_v43 = vmul.f32 %v9395_v21, %v8971_v35 }
 0x683   : > { %10919 = vst [vmem:[#allocation26_spill] sm:$0xff] %v9568_v20  ;;  %v3520_v20 = vmul.f32 %v9434_v38, %v8968_v52 }
 0x684   : > { %3410 = vadd.xlane.f32.xlu1 %v3409_v45  ;;  %v9576_v44 = vpop.permute.xlu1 %4273 }
 0x686   : > { %v9572_v36 = vpop.permute.xlu0 %3695 }
 0x688   : > { %3558 = vadd.xlane.f32.xlu1 %v3557_v25  ;;  %v9584_v25 = vpop.xlane.xlu1 %3395 }
 0x689   : > { %10920 = vst [vmem:[#allocation27_spill] sm:$0xff] %v9584_v25 }
 0x68a   : > { %v9580_v45 = vpop.permute.xlu0 %4271 }
 0x68c   : > { %v9594_v32 = vpop.xlane.xlu1 %3543 }
 0x68d   : > { %10921 = vst [vmem:[#allocation28_spill] sm:$0xff] %v9594_v32 }
 0x68e   : > { %v9589_v24 = vpop.permute.xlu0 %3989 }
 0x690   : > { %v9604_v38 = vpop.xlane.xlu1 %3392 }
 0x691   : > { %10922 = vst [vmem:[#allocation29_spill] sm:$0xff] %v9604_v38 }
 0x692   : > { %v9600_v25 = vpop.permute.xlu0 %4137 }
 0x698   : > { %3711 = vrot.lane.b32.xlu0 %v3666_v4, %s7930_s20 }
 0x699   : > { %4011 = vrot.lane.b32.xlu1 %v3372_v19, %s7930_s20 }
 0x69c   : > { %4287 = vrot.lane.b32.xlu0 %v3666_v4, %s7931_s21  ;;  %v9608_v4 = vpop.xlane.xlu0 %3389 }
 0x69d   : > { %4159 = vrot.lane.b32.xlu1 %v3520_v20, %s7931_s21  ;;  %10923 = vst [vmem:[#allocation30_spill] sm:$0xff] %v9608_v4 }
 0x6a0   : > { %4005 = vrot.lane.b32.xlu0 %v3369_v63, %s7930_s20  ;;  %v9613_v63 = vpop.xlane.xlu1 %3540  ;;  %v9615_v21 = vpop.xlane.xlu0 %3537 }
 0x6a1   : > { %3713 = vrot.lane.b32.xlu1 %v3667_v0, %s7930_s20  ;;  %10924 = vst [vmem:[#allocation31_spill] sm:$0xff] %v9613_v63  ;;  %10925 = vst [vmem:[#allocation32_spill] sm:$0xff] %v9615_v21  ;;  %v3920_v63 = vsel %vm3208_vm3, %v9397_v61, 0.0 }
 0x6a4   : > { %4153 = vrot.lane.b32.xlu0 %v3517_v34, %s7931_s21  ;;  %v9618_v34 = vpop.permute.xlu1 %3999  ;;  %v9620_v32 = vpop.xlane.xlu0 %3897 }
 0x6a5   : > { %4009 = vrot.lane.b32.xlu1 %v3371_v43, %s7930_s20  ;;  %10926 = vst [vmem:[#allocation33_spill] sm:$0xff] %v9620_v32  ;;  %v3917_v32 = vsel %vm3208_vm3, %v9388_v37, 0.0 }
 0x6a8   : > { %4285 = vrot.lane.b32.xlu0 %v9510_v18, %s7931_s21  ;;  %v9622_v38 = vpop.permute.xlu1 %4147  ;;  %v9624_v35 = vpop.xlane.xlu0 %4457 }
 0x6a9   : > { %4157 = vrot.lane.b32.xlu1 %v3519_v28, %s7931_s21  ;;  %10927 = vst [vmem:[#allocation34_spill] sm:$0xff] %v9624_v35 }
 0x6ac   : > { %v9626_v22 = vpop.permute.xlu1 %3701  ;;  %v9628_v5 = vpop.xlane.xlu0 %3894 }
 0x6ad   : > { %4289 = vrot.lane.b32.xlu1 %v3667_v0, %s7931_s21  ;;  %10928 = vst [vmem:[#allocation35_spill] sm:$0xff] %v9628_v5  ;;  %v4477_v5 = vsel %vm3208_vm3, %v9406_v27, 0.0  ;;  %v3563_v27 = vsel %vm3208_vm3, %v3519_v28, 0.0 }
 0x6b0   : > { %v9630_v18 = vpop.permute.xlu1 %4277  ;;  %v9632_v4 = vpop.xlane.xlu0 %4454 }
 0x6b1   : > { %10929 = vst [vmem:[#allocation36_spill] sm:$0xff] %v9632_v4  ;;  %v3418_v4 = vsel %vm3208_vm3, %v3372_v19, 0.0 }
 0x6b4   : > { %v9636_v0 = vpop.xlane.xlu1 %3401  ;;  %v9640_v21 = vpop.permute.xlu0 %3699 }
 0x6b8   : > { %v9642_v35 = vpop.xlane.xlu1 %3549  ;;  %v9647_v33 = vpop.permute.xlu0 %4275 }
 0x6b9   : > { %10930 = vst [vmem:[#allocation37_spill] sm:$0xff] %v9642_v35 }
 0x6bc   : > { %v9649_v61 = vpop.xlane.xlu1 %3398  ;;  %v9652_v37 = vpop.permute.xlu0 %3993 }
 0x6bd   : > { %10931 = vst [vmem:[#allocation38_spill] sm:$0xff] %v9649_v61 }
 0x6c0   : > { %v9655_v35 = vpop.xlane.xlu1 %3546 }
 0x6c1   : > { %10932 = vst [vmem:[#allocation39_spill] sm:$0xff] %v9655_v35 }
 0x6c4   : > { %v9660_v19 = vpop.permute.xlu1 %4003 }
 0x6c7   : > { %3921 = vadd.xlane.f32.xlu0 %v3920_v63  ;;  %v3566_v63 = vsel %vm3208_vm3, %v3520_v20, 0.0  ;;  %v3668_v20 = vmul.f32 %v9429_v17, %v8968_v52  ;;  %v3742_v52 = vsel %vm3208_vm3, %v9448_v59, 0.0  ;;  %v4035_v59 = vsel %vm3208_vm3, %v9538_v7, 0.0 }
 0x6c8   : > { %v9671_v28 = vpop.permute.xlu1 %4151  ;;  %v4192_v7 = vsel %vm3208_vm3, %v9528_v23, 0.0  ;;  %v4189_v23 = vsel %vm3208_vm3, %v9600_v25, 0.0  ;;  %v4198_v25 = vsel %vm3208_vm3, %v9566_v62, 0.0 }
 0x6cb   : > { %3918 = vadd.xlane.f32.xlu0 %v3917_v32  ;;  %v3415_v32 = vsel %vm3208_vm3, %v3371_v43, 0.0  ;;  %v4029_v43 = vsel %vm3208_vm3, %v9484_v10, 0.0  ;;  %v4038_v10 = vsel %vm3208_vm3, %v9454_v6, 0.0  ;;  %v4183_v6 = vsel %vm3208_vm3, %v9544_v39, 0.0 }
 0x6cc   : > { %v4041_v39 = vsel %vm3208_vm3, %v9589_v24, 0.0  ;;  %v4050_v24 = vsel %vm3208_vm3, %v9561_v31, 0.0  ;;  %v4047_v31 = vsel %vm3208_vm3, %v9652_v37, 0.0  ;;  %v4056_v37 = vsel %vm3208_vm3, %v9618_v34, 0.0 }
 0x6cf   : > { %4478 = vadd.xlane.f32.xlu0 %v4477_v5  ;;  %v9658_v5 = vpop.permute.xlu0 %4141 }
 0x6d0   : > { %v4195_v62 = vsel %vm3208_vm3, %v9658_v5, 0.0  ;;  %v4204_v5 = vsel %vm3208_vm3, %v9622_v38, 0.0  ;;  %v3748_v38 = vsel %vm3208_vm3, %v9572_v36, 0.0  ;;  %v9787_v36 = vld [vmem:[%s10827_s8] sm:$0xff] }
 0x6d1   : > { %3419 = vadd.xlane.f32.xlu1 %v3418_v4  ;;  %v3923_v4 = vsel %vm3208_vm3, %v9419_v50, 0.0  ;;  %v9678_v50 = vpop.permute.xlu1 %3705 }
 0x6d3   : > { %v9664_v61 = vpop.xlane.xlu0 %3903 }
 0x6d5   : > { %3567 = vadd.xlane.f32.xlu1 %v3566_v63 }
 0x6d7   : > { %v9673_v63 = vpop.xlane.xlu0 %4463 }
 0x6d9   : > { %3416 = vadd.xlane.f32.xlu1 %v3415_v32  ;;  %v4177_v32 = vsel %vm3208_vm3, %v9488_v58, 0.0  ;;  %v4186_v58 = vsel %vm3208_vm3, %v9464_v46, 0.0  ;;  %v4044_v46 = vsel %vm3208_vm3, %v9524_v12, 0.0  ;;  %v3736_v12 = vsel %vm3208_vm3, %v9450_v14, 0.0 }
 0x6da   : > { %v4180_v14 = vsel %vm3208_vm3, %v9468_v47, 0.0 }
 0x6db   : > { %v9682_v17 = vpop.xlane.xlu0 %3900 }
 0x6dd   : > { %3564 = vadd.xlane.f32.xlu1 %v3563_v27  ;;  %v9686_v27 = vpop.permute.xlu1 %4281 }
 0x6e1   : > { %3924 = vadd.xlane.f32.xlu1 %v3923_v4  ;;  %v9688_v4 = vpop.xlane.xlu0 %4460 }
 0x6e2   : > { %10933 = vst [vmem:[#allocation40_spill] sm:$0xff] %v9688_v4 }
 0x6e5   : > { %4030 = vadd.xlane.f32.xlu1 %v4029_v43  ;;  %3715 = vrot.lane.b32.xlu0 %v3668_v20, %s7930_s20  ;;  %v9696_v43 = vpop.permute.xlu0 %3703 }
 0x6e9   : > { %4178 = vadd.xlane.f32.xlu1 %v4177_v32  ;;  %4291 = vrot.lane.b32.xlu0 %v3668_v20, %s7931_s21  ;;  %v9692_v20 = vpop.xlane.xlu1 %3407 }
 0x6ea   : > { %10934 = vst [vmem:[#allocation41_spill] sm:$0xff] %v9692_v20 }
 0x6ed   : > { %3743 = vadd.xlane.f32.xlu1 %v3742_v52  ;;  %v9698_v32 = vpop.xlane.xlu1 %3555  ;;  %v9702_v52 = vpop.permute.xlu0 %4279 }
 0x6ee   : > { %10935 = vst [vmem:[#allocation42_spill] sm:$0xff] %v9698_v32 }
 0x6f1   : > { %4039 = vadd.xlane.f32.xlu1 %v4038_v10  ;;  %v9706_v10 = vpop.xlane.xlu1 %3404 }
 0x6f2   : > { %10936 = vst [vmem:[#allocation43_spill] sm:$0xff] %v9706_v10  ;;  %v10971_v10 = vld [vmem:[#allocation4_spill] sm:$0xff] }
 0x6f5   : > { %4187 = vadd.xlane.f32.xlu1 %v4186_v58  ;;  %v3998_v58 = vpop.permute.xlu0 %3997  ;;  %v9712_v32 = vpop.xlane.xlu1 %3552 }
 0x6f6   : > { %10937 = vst [vmem:[#allocation44_spill] sm:$0xff] %v9712_v32  ;;  %v4053_v34 = vsel %vm3208_vm3, %v3998_v58, 0.0 }
 0x6f9   : > { %4036 = vadd.xlane.f32.xlu1 %v4035_v59  ;;  %v3926_v59 = vsel %vm3208_vm3, %v9438_v16, 0.0  ;;  %v4032_v16 = vsel %vm3208_vm3, %v9457_v13, 0.0  ;;  %v4312_v13 = vsel %vm3208_vm3, %v9478_v56, 0.0  ;;  %v4309_v56 = vsel %vm3208_vm3, %v9436_v15, 0.0 }
 0x6fd   : > { %4184 = vadd.xlane.f32.xlu1 %v4183_v6  ;;  %v4146_v6 = vpop.permute.xlu0 %4145 }
 0x701   : > { %4045 = vadd.xlane.f32.xlu1 %v4044_v46  ;;  %v9720_v46 = vpop.xlane.xlu1 %4472 }
 0x702   : > { %10938 = vst [vmem:[#allocation45_spill] sm:$0xff] %v9720_v46 }
 0x705   : > { %4193 = vadd.xlane.f32.xlu1 %v4192_v7  ;;  %v9722_v7 = vpop.xlane.xlu0 %3909 }
 0x706   : > { %10939 = vst [vmem:[#allocation46_spill] sm:$0xff] %v9722_v7 }
 0x708   : > { %3927 = vadd.xlane.f32.xlu0 %v3926_v59  ;;  %v9730_v59 = vpop.permute.xlu1 %4007 }
 0x709   : > { %4042 = vadd.xlane.f32.xlu1 %v4041_v39  ;;  %v9734_v39 = vpop.xlane.xlu0 %4469 }
 0x70a   : > { %10940 = vst [vmem:[#allocation47_spill] sm:$0xff] %v9734_v39  ;;  %v10978_v39 = vld [vmem:[#allocation21_spill] sm:$0xff] }
 0x70c   : > { %3737 = vadd.xlane.f32.xlu0 %v3736_v12  ;;  %v9740_v12 = vpop.permute.xlu1 %4155 }
 0x70d   : > { %4190 = vadd.xlane.f32.xlu1 %v4189_v23  ;;  %v9742_v47 = vpop.xlane.xlu0 %3906  ;;  %v3733_v23 = vsel %vm3208_vm3, %v9432_v57, 0.0  ;;  %v4318_v57 = vsel %vm3208_vm3, %v9534_v51, 0.0  ;;  %v4315_v51 = vsel %vm3208_vm3, %v9482_v60, 0.0  ;;  %v4324_v60 = vsel %vm3208_vm3, %v9580_v45, 0.0 }
 0x70e   : > { %10941 = vst [vmem:[#allocation48_spill] sm:$0xff] %v9742_v47 }
 0x710   : > { %4033 = vadd.xlane.f32.xlu0 %v4032_v16  ;;  %v9750_v16 = vpop.permute.xlu1 %3709 }
 0x711   : > { %4051 = vadd.xlane.f32.xlu1 %v4050_v24  ;;  %v9754_v24 = vpop.xlane.xlu0 %4466 }
 0x712   : > { %10942 = vst [vmem:[#allocation49_spill] sm:$0xff] %v9754_v24  ;;  %v10968_v24 = vld [vmem:[#allocation15_spill] sm:$0xff] }
 0x714   : > { %4181 = vadd.xlane.f32.xlu0 %v4180_v14  ;;  %v9758_v14 = vpop.xlane.xlu1 %3413 }
 0x715   : > { %4199 = vadd.xlane.f32.xlu1 %v4198_v25  ;;  %10943 = vst [vmem:[#allocation50_spill] sm:$0xff] %v9758_v14  ;;  %v9762_v15 = vpop.permute.xlu0 %3707  ;;  %v3739_v25 = vsel %vm3208_vm3, %v9475_v41, 0.0  ;;  %v4062_v41 = vsel %vm3208_vm3, %v9660_v19, 0.0 }
 0x718   : > { %4313 = vadd.xlane.f32.xlu0 %v4312_v13  ;;  %v9767_v13 = vpop.xlane.xlu1 %3561 }
 0x719   : > { %4048 = vadd.xlane.f32.xlu1 %v4047_v31  ;;  %10944 = vst [vmem:[#allocation51_spill] sm:$0xff] %v9767_v13  ;;  %v4201_v31 = vsel %vm3208_vm3, %v4146_v6, 0.0  ;;  %v4210_v6 = vsel %vm3208_vm3, %v9671_v28, 0.0  ;;  %v3745_v28 = vsel %vm3208_vm3, %v9532_v3, 0.0  ;;  %v9815_v3 = vld [vmem:[%s10827_s8 + $0x18] sm:$0xff] }
 0x71c   : > { %3734 = vadd.xlane.f32.xlu0 %v3733_v23  ;;  %v9772_v23 = vpop.permute.xlu0 %4283 }
 0x71d   : > { %4196 = vadd.xlane.f32.xlu1 %v4195_v62  ;;  %v9776_v62 = vpop.xlane.xlu1 %3410 }
 0x71e   : > { %10945 = vst [vmem:[#allocation52_spill] sm:$0xff] %v9776_v62 }
 0x720   : > { %4310 = vadd.xlane.f32.xlu0 %v4309_v56  ;;  %v4002_v58 = vpop.permute.xlu0 %4001  ;;  %v9792_v56 = vld [vmem:[%s10827_s8 + $0x8] sm:$0xff] }
 0x721   : > { %4057 = vadd.xlane.f32.xlu1 %v4056_v37  ;;  %v9794_v19 = vpop.xlane.xlu1 %3558  ;;  %v10849_v37 = vand.u32 4294901760, %v9787_v36  ;;  %v10846_v45 = vand.u32 4294901760, %v9792_v56 }
 0x722   : > { %10946 = vst [vmem:[#allocation53_spill] sm:$0xff] %v9794_v19 }
 0x724   : > { %4319 = vadd.xlane.f32.xlu0 %v4318_v57  ;;  %v4059_v57 = vsel %vm3208_vm3, %v4002_v58, 0.0 }
 0x725   : > { %4205 = vadd.xlane.f32.xlu1 %v4204_v5  ;;  %v9805_v5 = vpack.c.bf16 %v10846_v45, %v10849_v37 }
 0x727   : > { %10947 = vst [vmem:[#allocation54_spill] sm:$0xff] %v9805_v5  ;;  %7549 = vmatprep.subr.bf16.mxu0 %v9805_v5 }
 0x728   : > { %3740 = vadd.xlane.f32.xlu0 %v3739_v25  ;;  %v4150_v25 = vpop.permute.xlu0 %4149  ;;  %7551 = vmatpush3.bf16.msra.mxu0 %v9805_v5 }
 0x729   : > { %4054 = vadd.xlane.f32.xlu1 %v4053_v34  ;;  %v9810_v34 = vld [vmem:[%s10827_s8 + $0x10] sm:$0xff]  ;;  %v4207_v58 = vsel %vm3208_vm3, %v4150_v25, 0.0  ;;  %v3754_v25 = vsel %vm3208_vm3, %v9640_v21, 0.0  ;;  %v9864_v21 = vld [vmem:[%s10827_s8 + $0x38] sm:$0xff] }
 0x72a   : > { %v10850_v45 = vand.u32 4294901760, %v9864_v21 }
 0x72c   : > { %4316 = vadd.xlane.f32.xlu0 %v4315_v51  ;;  %v10845_v51 = vand.u32 4294901760, %v9810_v34 }
 0x72d   : > { %4202 = vadd.xlane.f32.xlu1 %v4201_v31  ;;  %v10844_v31 = vand.u32 4294901760, %v9815_v3 }
 0x730   : > { %3749 = vadd.xlane.f32.xlu0 %v3748_v38  ;;  %v4321_v38 = vsel %vm3208_vm3, %v9536_v53, 0.0  ;;  %v9838_v53 = vld [vmem:[%s10827_s8 + $0x28] sm:$0xff] }
 0x731   : > { %4063 = vadd.xlane.f32.xlu1 %v4062_v41  ;;  %v4012_v41 = vpop.permute.xlu1 %4011 }
 0x734   : > { %4325 = vadd.xlane.f32.xlu0 %v4324_v60  ;;  %v9828_v60 = vpack.c.bf16 %v10844_v31, %v10845_v51  ;;  %v9859_v51 = vld [vmem:[%s10827_s8 + $0x30] sm:$0xff] }
 0x735   : > { %4211 = vadd.xlane.f32.xlu1 %v4210_v6  ;;  %v9833_v6 = vld [vmem:[%s10827_s8 + $0x20] sm:$0xff] }
 0x736   : > { %10948 = vst [vmem:[#allocation55_spill] sm:$0xff] %v9828_v60  ;;  %7553 = vmatprep.subr.bf16.mxu0 %v9828_v60 }
 0x737   : > { %7555 = vmatpush3.bf16.msra.mxu0 %v9828_v60  ;;  %v3766_v60 = vsel %vm3208_vm3, %v9762_v15, 0.0  ;;  %v4483_v15 = vsel %vm3208_vm3, %v9427_v40, 0.0 }
 0x738   : > { %3746 = vadd.xlane.f32.xlu0 %v3745_v28  ;;  %v10848_v28 = vand.u32 4294901760, %v9833_v6 }
 0x739   : > { %4060 = vadd.xlane.f32.xlu1 %v4059_v57  ;;  %v10847_v57 = vand.u32 4294901760, %v9838_v53 }
 0x73b   : > { %v9854_v31 = vpack.c.bf16 %v10847_v57, %v10848_v28  ;;  %v4068_v57 = vsel %vm3208_vm3, %v9730_v59, 0.0  ;;  %v4216_v59 = vsel %vm3208_vm3, %v9740_v12, 0.0  ;;  %v4336_v12 = vsel %vm3208_vm3, %v9702_v52, 0.0 }
 0x73c   : > { %4322 = vadd.xlane.f32.xlu0 %v4321_v38  ;;  %v9846_v38 = vpop.xlane.xlu0 %3915 }
 0x73d   : > { %4208 = vadd.xlane.f32.xlu1 %v4207_v58  ;;  %10949 = vst [vmem:[#allocation56_spill] sm:$0xff] %v9846_v38  ;;  %v4339_v58 = vsel %vm3208_vm3, %v9686_v27, 0.0  ;;  %10950 = vst [vmem:[#allocation57_spill] sm:$0xff] %v9854_v31  ;;  %7557 = vmatprep.subr.bf16.mxu0 %v9854_v31  ;;  %v10851_v27 = vand.u32 4294901760, %v9859_v51 }
 0x73e   : > { %7559 = vmatpush3.bf16.msra.mxu0 %v9854_v31 }
 0x73f   : > { %v9878_v28 = vpack.c.bf16 %v10850_v45, %v10851_v27  ;;  %v4327_v45 = vsel %vm3208_vm3, %v9576_v44, 0.0 }
 0x740   : > { %3755 = vadd.xlane.f32.xlu0 %v3754_v25  ;;  %v4160_v25 = vpop.permute.xlu1 %4159  ;;  %v9880_v37 = vpop.xlane.xlu0 %4475 }
 0x741   : > { %4340 = vadd.xlane.f32.xlu1 %v4339_v58  ;;  %v4330_v58 = vsel %vm3208_vm3, %v9647_v33, 0.0  ;;  %10951 = vst [vmem:[#allocation58_spill] sm:$0xff] %v9878_v28  ;;  %10952 = vst [vmem:[#allocation59_spill] sm:$0xff] %v9880_v37  ;;  %7561 = vmatprep.subr.bf16.mxu0 %v9878_v28  ;;  %v3751_v33 = vsel %vm3208_vm3, %v9570_v11, 0.0  ;;  %v3760_v11 = vsel %vm3208_vm3, %v9696_v43, 0.0 }
 0x742   : > { %7563 = vmatpush3.bf16.msra.mxu0 %v9878_v28 }
 0x744   : > { %4331 = vadd.xlane.f32.xlu0 %v4330_v58  ;;  %v3714_v58 = vpop.permute.xlu1 %3713  ;;  %v9890_v27 = vpop.xlane.xlu0 %3912 }
 0x745   : > { %4069 = vadd.xlane.f32.xlu1 %v4068_v57  ;;  %10953 = vst [vmem:[#allocation60_spill] sm:$0xff] %v9890_v27  ;;  %v4074_v57 = vsel %vm3208_vm3, %v4012_v41, 0.0  ;;  %v3775_v44 = vsel %vm3208_vm3, %v3714_v58, 0.0  ;;  %v4333_v58 = vsel %vm3208_vm3, %v9630_v18, 0.0 }
 0x748   : > { %3752 = vadd.xlane.f32.xlu0 %v3751_v33  ;;  %v4010_v31 = vpop.permute.xlu1 %4009  ;;  %v4222_v33 = vsel %vm3208_vm3, %v4160_v25, 0.0  ;;  %v3712_v28 = vpop.permute.xlu0 %3711 }
 0x749   : > { %4217 = vadd.xlane.f32.xlu1 %v4216_v59  ;;  %v3772_v40 = vsel %vm3208_vm3, %v3712_v28, 0.0 }
 0x74c   : > { %4328 = vadd.xlane.f32.xlu0 %v4327_v45  ;;  %v4158_v59 = vpop.permute.xlu1 %4157  ;;  %v10954_v45 = vlaneseq  ;;  %v4288_v43 = vpop.permute.xlu0 %4287 }
 0x74d   : > { %4075 = vadd.xlane.f32.xlu1 %v4074_v57  ;;  %v3757_v57 = vsel %vm3208_vm3, %v9626_v22, 0.0  ;;  %v4219_v22 = vsel %vm3208_vm3, %v4158_v59, 0.0 }
 0x74e   : > { %v9900_v41 = vshrl.u32 %v10954_v45, 7 }
 0x750   : > { %3761 = vadd.xlane.f32.xlu0 %v3760_v11  ;;  %v4071_v11 = vsel %vm3208_vm3, %v4010_v31, 0.0  ;;  %v3423_v25 = vsub.s32 1, %v9900_v41  ;;  %v3259_v52 = vsub.s32 0, %v9900_v41  ;;  %v4006_v45 = vpop.permute.xlu0 %4005 }
 0x751   : > { %4223 = vadd.xlane.f32.xlu1 %v4222_v33  ;;  %v4290_v33 = vpop.permute.xlu1 %4289  ;;  %v4065_v28 = vsel %vm3208_vm3, %v4006_v45, 0.0 }
 0x752   : > { %v4351_v5 = vsel %vm3208_vm3, %v4290_v33, 0.0 }
 0x754   : > { %4337 = vadd.xlane.f32.xlu0 %v4336_v12  ;;  %v9912_v12 = vld [vmem:[%s10825_s6] sm:$0xff]  ;;  %v4154_v13 = vpop.permute.xlu0 %4153 }
 0x755   : > { %3776 = vadd.xlane.f32.xlu1 %v3775_v44  ;;  %v9916_v31 = vrot.slane %v9912_v12, %v3423_v25  ;;  %v3571_v44 = vsub.s32 2, %v9900_v41 }
 0x757   : > { %v9929_v25 = vrot.slane %v9912_v12, %v3571_v44 }
 0x758   : > { %3758 = vadd.xlane.f32.xlu0 %v3757_v57 }
 0x759   : > { %4072 = vadd.xlane.f32.xlu1 %v4071_v11  ;;  %v9920_v11 = vrot.slane %v9912_v12, %v3259_v52 }
 0x75b   : > { %v3276_v59 = vmul.f32 %v9920_v11, %v9411_v48  ;;  %v3275_v44 = vmul.f32 %v9920_v11, %v9446_v54  ;;  %v3769_v54 = vsel %vm3208_vm3, %v9750_v16, 0.0 }
 0x75c   : > { %4334 = vadd.xlane.f32.xlu0 %v4333_v58 }
 0x75d   : > { %4220 = vadd.xlane.f32.xlu1 %v4219_v22 }
 0x75e   : > { %v3420_v57 = vpop.xlane.xlu1 %3419 }
 0x75f   : > { %v3440_v18 = vmul.f32 %v9916_v31, %v3420_v57  ;;  %v4342_v57 = vsel %vm3208_vm3, %v9772_v23, 0.0 }
 0x760   : > { %3767 = vadd.xlane.f32.xlu0 %v3766_v60 }
 0x761   : > { %4352 = vadd.xlane.f32.xlu1 %v4351_v5  ;;  %v3456_v22 = vadd.f32 %v3440_v18, %v3276_v59  ;;  %v3763_v5 = vsel %vm3208_vm3, %v9678_v50, 0.0  ;;  %v4286_v18 = vpop.permute.xlu0 %4285  ;;  %v4348_v50 = vsel %vm3208_vm3, %v4288_v43, 0.0  ;;  %v4213_v43 = vsel %vm3208_vm3, %v4154_v13, 0.0 }
 0x762   : > { %v3568_v58 = vpop.xlane.xlu1 %3567 }
 0x763   : > { %v3588_v52 = vmul.f32 %v9929_v25, %v3568_v58 }
 0x764   : > { %4343 = vadd.xlane.f32.xlu0 %v4342_v57 }
 0x765   : > { %v9936_v60 = vadd.f32 %v3588_v52, %v3456_v22  ;;  %4484 = vadd.xlane.f32.xlu1 %v4483_v15  ;;  %v9947_v52 = vpop.xlane.xlu0 %3921 }
 0x766   : > { %v3417_v48 = vpop.xlane.xlu1 %3416  ;;  %10957 = vst [vmem:[#allocation63_spill] sm:$0xff] %v9947_v52 }
 0x767   : > { %10955 = vst [vmem:[#allocation61_spill] sm:$0xff] %v9936_v60  ;;  %v3439_v33 = vmul.f32 %v9916_v31, %v3417_v48 }
 0x768   : > { %3764 = vadd.xlane.f32.xlu0 %v3763_v5 }
 0x769   : > { %v3455_v59 = vadd.f32 %v3439_v33, %v3275_v44  ;;  %v9956_v48 = vpop.xlane.xlu0 %3918 }
 0x76a   : > { %v3565_v23 = vpop.xlane.xlu1 %3564  ;;  %10959 = vst [vmem:[#allocation65_spill] sm:$0xff] %v9956_v48 }
 0x76b   : > { %v3587_v58 = vmul.f32 %v9929_v25, %v3565_v23 }
 0x76c   : > { %3773 = vadd.xlane.f32.xlu0 %v3772_v40 }
 0x76d   : > { %v9945_v22 = vadd.f32 %v3587_v58, %v3455_v59  ;;  %v9961_v5 = vpop.xlane.xlu0 %4478  ;;  %v4345_v59 = vsel %vm3208_vm3, %v4286_v18, 0.0 }
 0x76e   : > { %v9949_v57 = vpop.xlane.xlu1 %3924  ;;  %10960 = vst [vmem:[#allocation66_spill] sm:$0xff] %v9961_v5 }
 0x76f   : > { %10956 = vst [vmem:[#allocation62_spill] sm:$0xff] %v9945_v22  ;;  %10958 = vst [vmem:[#allocation64_spill] sm:$0xff] %v9949_v57  ;;  %v10979_v22 = vld [vmem:[#allocation23_spill] sm:$0xff] }
 0x770   : > { %4349 = vadd.xlane.f32.xlu0 %v4348_v50  ;;  %v4480_v50 = vsel %vm3208_vm3, %v9401_v2, 0.0  ;;  %v3783_v2 = vsub.s32 3, %v9900_v41  ;;  %v3577_v57 = vmul.f32 %v9929_v25, %v10979_v22 }
 0x771   : > { %v3716_v16 = vpop.permute.xlu0 %3715 }
 0x772   : > { %v9952_v15 = vpop.xlane.xlu1 %4030  ;;  %v3778_v40 = vsel %vm3208_vm3, %v3716_v16, 0.0  ;;  %v3426_v16 = vmul.f32 %v9916_v31, %v9440_v8  ;;  %v10963_v8 = vand.u32 4294901760, %v9792_v56  ;;  %v10008_v52 = vrot.slane %v9912_v12, %v3783_v2 }
 0x773   : > { %v4227_v2 = vsub.s32 6, %v9900_v41 }
 0x774   : > { %3770 = vadd.xlane.f32.xlu0 %v3769_v54  ;;  %v10005_v5 = vsub.f32 %v9792_v56, %v10963_v8 }
 0x775   : > { %v4292_v54 = vpop.permute.xlu0 %4291 }
 0x776   : > { %v9958_v33 = vpop.xlane.xlu1 %4178  ;;  %10964 = vst [vmem:[#allocation68_spill] sm:$0xff] %v10005_v5 }
 0x778   : > { %4066 = vadd.xlane.f32.xlu0 %v4065_v28  ;;  %v4354_v28 = vsel %vm3208_vm3, %v4292_v54, 0.0  ;;  %v3931_v54 = vsub.s32 4, %v9900_v41 }
 0x77a   : > { %v9963_v44 = vpop.xlane.xlu1 %3743  ;;  %v10013_v19 = vrot.slane %v9912_v12, %v3931_v54 }
 0x77c   : > { %4214 = vadd.xlane.f32.xlu0 %v4213_v43  ;;  %v4486_v43 = vsel %vm3208_vm3, %v9442_v42, 0.0  ;;  %v10962_v42 = vand.u32 4294901760, %v9787_v36 }
 0x77e   : > { %v9966_v23 = vpop.xlane.xlu1 %4039 }
 0x780   : > { %4346 = vadd.xlane.f32.xlu0 %v4345_v59 }
 0x782   : > { %v9969_v58 = vpop.xlane.xlu1 %4187 }
 0x784   : > { %3779 = vadd.xlane.f32.xlu0 %v3778_v40  ;;  %v3262_v40 = vmul.f32 %v9920_v11, %v9222_v49 }
 0x786   : > { %v9972_v45 = vpop.xlane.xlu1 %4036  ;;  %v3442_v49 = vadd.f32 %v3426_v16, %v3262_v40 }
 0x788   : > { %4481 = vadd.xlane.f32.xlu0 %v4480_v50  ;;  %v3574_v50 = vmul.f32 %v9929_v25, %v9492_v55 }
 0x78a   : > { %v9976_v13 = vpop.xlane.xlu1 %4184  ;;  %v3590_v48 = vadd.f32 %v3574_v50, %v3442_v49  ;;  %v3934_v49 = vmul.f32 %v10013_v19, %v9502_v30  ;;  %v3264_v30 = vmul.f32 %v9920_v11, %v9259_v1  ;;  %v10060_v1 = vld [vmem:[%s10825_s6 + $0x8] ss:$0 sm:$0xff] }
 0x78b   : > { %v4493_v20 = vmul.f32 %v10060_v1, %v10978_v39 }
 0x78c   : > { %4355 = vadd.xlane.f32.xlu0 %v4354_v28 }
 0x78e   : > { %v9979_v18 = vpop.xlane.xlu1 %4045 }
 0x790   : > { %4487 = vadd.xlane.f32.xlu0 %v4486_v43  ;;  %v10000_v43 = vsub.f32 %v9787_v36, %v10962_v42  ;;  %v4079_v36 = vsub.s32 5, %v9900_v41 }
 0x792   : > { %v9983_v59 = vpop.xlane.xlu1 %4193  ;;  %v10860_v55 = vand.u32 4294901760, %v10000_v43 }
 0x794   : > { %v4896_v56 = vsub.f32 %v10000_v43, %v10860_v55  ;;  %v4359_v55 = vsub.s32 7, %v9900_v41 }
 0x795   : > { %v9993_v28 = vpop.xlane.xlu0 %3927 }
 0x796   : > { %10961 = vst [vmem:[#allocation67_spill] sm:$0xff] %v9993_v28  ;;  %v9995_v60 = vpop.xlane.xlu1 %4042  ;;  %v10861_v28 = vand.u32 4294901760, %v10005_v5  ;;  %v4897_v50 = vand.u32 4294901760, %v4896_v56 }
 0x798   : > { %v4903_v16 = vsub.f32 %v10005_v5, %v10861_v28  ;;  %v3428_v28 = vmul.f32 %v9916_v31, %v9486_v9  ;;  %v10051_v9 = vrot.slane %v9912_v12, %v4359_v55 }
 0x799   : > { %v3738_v46 = vpop.xlane.xlu0 %3737 }
 0x79a   : > { %v3786_v42 = vmul.f32 %v10008_v52, %v3738_v46  ;;  %v10017_v62 = vpop.xlane.xlu1 %4190  ;;  %v4904_v54 = vand.u32 4294901760, %v4903_v16  ;;  %v10029_v46 = vrot.slane %v9912_v12, %v4079_v36  ;;  %v3576_v36 = vmul.f32 %v9929_v25, %v9490_v26 }
 0x79c   : > { %v3802_v40 = vadd.f32 %v3786_v42, %v3590_v48  ;;  %v10034_v27 = vpack.c.bf16 %v4904_v54, %v4897_v50  ;;  %v10039_v48 = vrot.slane %v9912_v12, %v4227_v2  ;;  %v3444_v2 = vadd.f32 %v3428_v28, %v3264_v30  ;;  %v10966_v12 = vld [vmem:[#allocation19_spill] sm:$0xff] }
 0x79d   : > { %v4034_v8 = vpop.xlane.xlu0 %4033  ;;  %v3425_v54 = vmul.f32 %v9916_v31, %v9444_v29  ;;  %v3573_v28 = vmul.f32 %v9929_v25, %v10966_v12 }
 0x79e   : > { %v10031_v14 = vpop.xlane.xlu1 %4051  ;;  %v3950_v42 = vadd.f32 %v3934_v49, %v3802_v40  ;;  %v4082_v56 = vmul.f32 %v10029_v46, %v4034_v8  ;;  %7565 = vmatprep.subr.bf16.mxu0 %v10034_v27  ;;  %v3788_v40 = vmul.f32 %v10008_v52, %v9963_v44  ;;  %v3592_v26 = vadd.f32 %v3576_v36, %v3444_v2  ;;  %v10076_v2 = vld [vmem:[%s10826_s7] ss:$0 sm:$0xff] }
 0x79f   : > { %v3936_v36 = vmul.f32 %v10013_v19, %v10968_v24  ;;  %v10970_v24 = vld [vmem:[#allocation16_spill] sm:$0xff] }
 0x7a0   : > { %v4098_v8 = vadd.f32 %v4082_v56, %v3950_v42  ;;  %v3804_v29 = vadd.f32 %v3788_v40, %v3592_v26  ;;  %v10967_v56 = vld [vmem:[#allocation17_spill] sm:$0xff]  ;;  %v4084_v40 = vmul.f32 %v10029_v46, %v9966_v23  ;;  %v4232_v23 = vmul.f32 %v10039_v48, %v9969_v58 }
 0x7a1   : > { %v4182_v41 = vpop.xlane.xlu0 %4181  ;;  %v4494_v32 = vmul.f32 %v10060_v1, %v10967_v56 }
 0x7a2   : > { %v4230_v16 = vmul.f32 %v10039_v48, %v4182_v41  ;;  %v10048_v50 = vpop.xlane.xlu1 %4199  ;;  %v10965_v41 = vld [vmem:[#allocation3_spill] sm:$0xff] }
 0x7a3   : > { %v3261_v37 = vmul.f32 %v9920_v11, %v10965_v41 }
 0x7a4   : > { %v4246_v55 = vadd.f32 %v4230_v16, %v4098_v8 }
 0x7a5   : > { %v4314_v49 = vpop.xlane.xlu0 %4313  ;;  %v3441_v42 = vadd.f32 %v3425_v54, %v3261_v37  ;;  %v3952_v37 = vadd.f32 %v3936_v36, %v3804_v29  ;;  %v10969_v54 = vld [vmem:[#allocation20_spill] sm:$0xff] }
 0x7a6   : > { %v4362_v44 = vmul.f32 %v10051_v9, %v4314_v49  ;;  %v10067_v30 = vpop.xlane.xlu1 %4048  ;;  %v3933_v26 = vmul.f32 %v10013_v19, %v10969_v54 }
 0x7a7   : > { %v3589_v16 = vadd.f32 %v3573_v28, %v3441_v42  ;;  %v10973_v42 = vld [vmem:[#allocation5_spill] sm:$0xff]  ;;  %v4100_v58 = vadd.f32 %v4084_v40, %v3952_v37 }
 0x7a8   : > { %v4378_v38 = vadd.f32 %v4362_v44, %v4246_v55  ;;  %v3427_v55 = vmul.f32 %v9916_v31, %v10970_v24  ;;  %v3265_v29 = vmul.f32 %v9920_v11, %v10973_v42  ;;  %v10976_v24 = vld [vmem:[#allocation18_spill] sm:$0xff] }
 0x7a9   : > { %v3735_v41 = vpop.xlane.xlu0 %3734  ;;  %v10977_v42 = vld [vmem:[#allocation22_spill] sm:$0xff]  ;;  %v4248_v35 = vadd.f32 %v4232_v23, %v4100_v58 }
 0x7aa   : > { %v4510_v8 = vadd.f32 %v4494_v32, %v4378_v38  ;;  %v3785_v49 = vmul.f32 %v10008_v52, %v3735_v41  ;;  %v10079_v12 = vpop.xlane.xlu1 %4196  ;;  %v3263_v32 = vmul.f32 %v9920_v11, %v10971_v10  ;;  %v10972_v38 = vld [vmem:[#allocation6_spill] sm:$0xff]  ;;  %v4081_v41 = vmul.f32 %v10029_v46, %v9952_v15 }
 0x7ab   : > { %v3266_v28 = vmul.f32 %v9920_v11, %v10972_v38  ;;  %v3575_v38 = vmul.f32 %v9929_v25, %v10976_v24  ;;  %v3429_v47 = vmul.f32 %v9916_v31, %v10977_v42 }
 0x7ac   : > { %v4533_v44 = vadd.f32 %v10076_v2, %v4510_v8  ;;  %v3801_v56 = vadd.f32 %v3785_v49, %v3589_v16  ;;  %v10975_v49 = vld [vmem:[#allocation7_spill] sm:$0xff]  ;;  %v3443_v15 = vadd.f32 %v3427_v55, %v3263_v32  ;;  %v10981_v55 = vand.u32 4294901760, %v9810_v34 }
 0x7ad   : > { %v4311_v36 = vpop.xlane.xlu0 %4310  ;;  %v10102_v10 = vmul.f32 %v9920_v11, %v10975_v49  ;;  %v10980_v49 = vld [vmem:[#allocation30_spill] sm:$0xff]  ;;  %v3445_v22 = vadd.f32 %v3429_v47, %v3265_v29 }
 0x7ae   : > { %vm4549_vm4 = vcmp.gt.f32.partialorder %v4533_v44, 0.0  ;;  %v4565_v54 = vmul.f32 0.01, %v4533_v44  ;;  %v3949_v8 = vadd.f32 %v3933_v26, %v3801_v56  ;;  %v10098_v16 = vpop.xlane.xlu1 %4057  ;;  %v4229_v26 = vmul.f32 %v10039_v48, %v9958_v33 }
 0x7af   : > { %10974 = vst [vmem:[#allocation3_spill] sm:$0xff] %v10098_v16  ;;  %v3430_v16 = vmul.f32 %v9916_v31, %v10980_v49  ;;  %v4361_v37 = vmul.f32 %v10051_v9, %v4311_v36  ;;  %v10123_v33 = vsub.f32 %v9810_v34, %v10981_v55  ;;  %v3591_v32 = vadd.f32 %v3575_v38, %v3443_v15  ;;  %v10986_v36 = vld [vmem:[#allocation24_spill] sm:$0xff]  ;;  %v10988_v38 = vld [vmem:[#allocation26_spill] sm:$0xff] }
 0x7b0   : > { %v4097_v56 = vadd.f32 %v4081_v41, %v3949_v8  ;;  %v4581_v24 = vsel %vm4549_vm4, %v4533_v44, %v4565_v54  ;;  %v10983_v41 = vld [vmem:[#allocation32_spill] sm:$0xff]  ;;  %v10984_v44 = vand.u32 4294901760, %v9815_v3  ;;  %v10139_v47 = vmul.f32 %v10060_v1, %v10988_v38 }
 0x7b1   : > { %v4320_v7 = vpop.xlane.xlu0 %4319  ;;  %10982 = vst [vmem:[#allocation19_spill] sm:$0xff] %v10123_v33  ;;  %v3578_v8 = vmul.f32 %v9929_v25, %v10983_v41  ;;  %v4615_v54 = vsel %vm637_vm0, %v4581_v24, 0  ;;  %v10141_v29 = vadd.f32 %v3577_v57, %v3445_v22  ;;  %v3446_v15 = vadd.f32 %v3430_v16, %v3266_v28  ;;  %v10989_v24 = vld [vmem:[#allocation33_spill] sm:$0xff] }
 0x7b2   : > { %v4245_v4 = vadd.f32 %v4229_v26, %v4097_v56  ;;  %v4364_v40 = vmul.f32 %v10051_v9, %v4320_v7  ;;  %v10118_v39 = vpop.xlane.xlu1 %4205  ;;  %v10130_v23 = vsub.f32 %v9815_v3, %v10984_v44  ;;  %v4496_v7 = vmul.f32 %v10060_v1, %v10986_v36  ;;  %v10987_v26 = vld [vmem:[#allocation25_spill] sm:$0xff]  ;;  %v10992_v36 = vld [vmem:[#allocation27_spill] sm:$0xff] }
 0x7b3   : > { %v3935_v34 = vmul.f32 %v10013_v19, %v10987_v26  ;;  %v10990_v16 = vand.u32 4294901760, %v9833_v6  ;;  %v10994_v38 = vand.u32 4294901760, %v9838_v53 }
 0x7b4   : > { %10985 = vst [vmem:[#allocation17_spill] sm:$0xff] %v10130_v23  ;;  %v4377_v42 = vadd.f32 %v4361_v37, %v4245_v4  ;;  %v4380_v58 = vadd.f32 %v4364_v40, %v4248_v35  ;;  %v10862_v4 = vand.u32 4294901760, %v10123_v33  ;;  %v3594_v35 = vadd.f32 %v3578_v8, %v3446_v15 }
 0x7b5   : > { %v3741_v56 = vpop.xlane.xlu0 %3740  ;;  %v3938_v37 = vmul.f32 %v10013_v19, %v10989_v24  ;;  %v10149_v40 = vand.u32 4294901760, %v4615_v54  ;;  %v10863_v44 = vand.u32 4294901760, %v10130_v23  ;;  %v10157_v22 = vsub.f32 %v9833_v6, %v10990_v16 }
 0x7b6   : > { %v4509_v3 = vadd.f32 %v4493_v20, %v4377_v42  ;;  %v4512_v49 = vadd.f32 %v4496_v7, %v4380_v58  ;;  %v3787_v55 = vmul.f32 %v10008_v52, %v3741_v56  ;;  %v10144_v41 = vpop.xlane.xlu1 %4054  ;;  %v10161_v8 = vmul.f32 %v9916_v31, %v10992_v36  ;;  %v10993_v7 = vld [vmem:[#allocation34_spill] sm:$0xff] }
 0x7b7   : > { %10991 = vst [vmem:[#allocation15_spill] sm:$0xff] %v10157_v22  ;;  %v10165_v42 = vmul.f32 %v10060_v1, %v10993_v7  ;;  %v4083_v58 = vmul.f32 %v10029_v46, %v9972_v45  ;;  %v10182_v45 = vsub.f32 %v4615_v54, %v10149_v40  ;;  %v10190_v36 = vpack.c.bf16 %v10130_v23, %v10123_v33 }
 0x7b8   : > { %v4532_v57 = vadd.f32 %v10076_v2, %v4509_v3  ;;  %v4535_v28 = vadd.f32 %v10076_v2, %v4512_v49  ;;  %v3803_v20 = vadd.f32 %v3787_v55, %v3591_v32  ;;  %v10172_v32 = vsub.f32 %v9838_v53, %v10994_v38 }
 0x7b9   : > { %v4317_v26 = vpop.xlane.xlu0 %4316  ;;  %v4910_v3 = vsub.f32 %v10123_v33, %v10862_v4  ;;  %v4231_v49 = vmul.f32 %v10039_v48, %v9976_v13  ;;  %10996 = vst [vmem:[#allocation16_spill] sm:$0xff] %v10182_v45  ;;  %v4917_v53 = vsub.f32 %v10130_v23, %v10863_v44  ;;  %v10997_v4 = vand.u32 4294901760, %v9859_v51 }
 0x7ba   : > { %10995 = vst [vmem:[#allocation20_spill] sm:$0xff] %v10172_v32  ;;  %vm4548_vm5 = vcmp.gt.f32.partialorder %v4532_v57, 0.0  ;;  %v4564_v6 = vmul.f32 0.01, %v4532_v57  ;;  %v4567_v15 = vmul.f32 0.01, %v4535_v28  ;;  %v10174_v56 = vpop.xlane.xlu1 %4202  ;;  %v3951_v55 = vadd.f32 %v3935_v34, %v3803_v20 }
 0x7bb   : > { %vm4551_vm6 = vcmp.gt.f32.partialorder %v4535_v28, 0.0  ;;  %v10197_v34 = vsub.f32 %v9859_v51, %v10997_v4  ;;  %v4911_v16 = vand.u32 4294901760, %v4910_v3  ;;  %v11002_v33 = vand.u32 4294901760, %v10157_v22 }
 0x7bc   : > { %v4580_v24 = vsel %vm4548_vm5, %v4532_v57, %v4564_v6  ;;  %v4099_v7 = vadd.f32 %v4083_v58, %v3951_v55  ;;  %v4583_v44 = vsel %vm4551_vm6, %v4535_v28, %v4567_v15  ;;  %v4363_v58 = vmul.f32 %v10051_v9, %v4317_v26 }
 0x7bd   : > { %v3750_v38 = vpop.xlane.xlu0 %3749  ;;  %v4612_v13 = vsel %vm637_vm0, %v4580_v24, 0  ;;  %10998 = vst [vmem:[#allocation4_spill] sm:$0xff] %v10197_v34  ;;  %v10866_v55 = vand.u32 4294901760, %v10182_v45  ;;  %v10999_v24 = vand.u32 4294901760, %v9864_v21  ;;  %v4924_v28 = vsub.f32 %v10157_v22, %v11002_v33 }
 0x7be   : > { %v3790_v57 = vmul.f32 %v10008_v52, %v3750_v38  ;;  %v10200_v20 = vpop.xlane.xlu1 %4063  ;;  %v10202_v6 = vand.u32 4294901760, %v4612_v13  ;;  %v4247_v23 = vadd.f32 %v4231_v49, %v4099_v7  ;;  %v4918_v38 = vand.u32 4294901760, %v4917_v53 }
 0x7bf   : > { %v10209_v54 = vsub.f32 %v9864_v21, %v10999_v24  ;;  %v4621_v26 = vsel %vm637_vm0, %v4583_v44, 0  ;;  %v11003_v49 = vand.u32 4294901760, %v10172_v32  ;;  %v4234_v53 = vmul.f32 %v10039_v48, %v9983_v59 }
 0x7c0   : > { %v3806_v51 = vadd.f32 %v3790_v57, %v3594_v35  ;;  %v10212_v4 = vsub.f32 %v4612_v13, %v10202_v6  ;;  %v4379_v15 = vadd.f32 %v4363_v58, %v4247_v23  ;;  %v4086_v35 = vmul.f32 %v10029_v46, %v9979_v18 }
 0x7c1   : > { %11000 = vst [vmem:[#allocation6_spill] sm:$0xff] %v10209_v54  ;;  %v4326_v3 = vpop.xlane.xlu0 %4325  ;;  %v4931_v7 = vsub.f32 %v10172_v32, %v11003_v49  ;;  %v4745_v44 = vsub.f32 %v10182_v45, %v10866_v55  ;;  %v10236_v24 = vpack.c.bf16 %v10172_v32, %v10157_v22  ;;  %v4925_v49 = vand.u32 4294901760, %v4924_v28 }
 0x7c2   : > { %11001 = vst [vmem:[#allocation5_spill] sm:$0xff] %v10212_v4  ;;  %v3954_v13 = vadd.f32 %v3938_v37, %v3806_v51  ;;  %v10226_v57 = vpop.xlane.xlu1 %4211  ;;  %v10870_v33 = vand.u32 4294901760, %v10212_v4  ;;  %v4511_v23 = vadd.f32 %v10139_v47, %v4379_v15  ;;  %v10241_v37 = vand.u32 4294901760, %v4621_v26 }
 0x7c3   : > { %v7568_v51 = vpack.c.bf16 %v4918_v38, %v4911_v16  ;;  %v4932_v21 = vand.u32 4294901760, %v4931_v7  ;;  %v11004_v55 = vand.u32 4294901760, %v10197_v34  ;;  %v4366_v32 = vmul.f32 %v10051_v9, %v4326_v3  ;;  %v11006_v7 = vld [vmem:[#allocation35_spill] sm:$0xff] }
 0x7c4   : > { %v4102_v18 = vadd.f32 %v4086_v35, %v3954_v13  ;;  %v4735_v59 = vsub.f32 %v10212_v4, %v10870_v33  ;;  %v4534_v47 = vadd.f32 %v10076_v2, %v4511_v23  ;;  %v4746_v16 = vand.u32 4294901760, %v4745_v44 }
 0x7c5   : > { %v3747_v15 = vpop.xlane.xlu0 %3746  ;;  %v4938_v58 = vsub.f32 %v10197_v34, %v11004_v55  ;;  %v11005_v38 = vand.u32 4294901760, %v10209_v54  ;;  %v3937_v23 = vmul.f32 %v10013_v19, %v11006_v7  ;;  %v10258_v3 = vsub.f32 %v4621_v26, %v10241_v37 }
 0x7c6   : > { %v4250_v45 = vadd.f32 %v4234_v53, %v4102_v18  ;;  %v3789_v35 = vmul.f32 %v10008_v52, %v3747_v15  ;;  %v10249_v13 = vpop.xlane.xlu1 %4060  ;;  %v4736_v33 = vand.u32 4294901760, %v4735_v59  ;;  %vm4550_vm7 = vcmp.gt.f32.partialorder %v4534_v47, 0.0  ;;  %v11007_v18 = vld [vmem:[#allocation28_spill] sm:$0xff] }
 0x7c7   : > { %v4566_v22 = vmul.f32 0.01, %v4534_v47  ;;  %v4945_v28 = vsub.f32 %v10209_v54, %v11005_v38  ;;  %v3448_v53 = vadd.f32 %v10161_v8, %v10102_v10  ;;  %v3580_v44 = vmul.f32 %v9929_v25, %v11007_v18  ;;  %v11009_v18 = vld [vmem:[#allocation36_spill] sm:$0xff] }
 0x7c8   : > { %v4382_v4 = vadd.f32 %v4366_v32, %v4250_v45  ;;  %v3805_v55 = vadd.f32 %v3789_v35, %v10141_v29  ;;  %7132 = vmatprep.mubr.f32.mxu0 %v4736_v33  ;;  %v4085_v59 = vmul.f32 %v10029_v46, %v9995_v60  ;;  %v7572_v33 = vpack.c.bf16 %v4932_v21, %v4925_v49 }
 0x7c9   : > { %7133 = vmatmul.mubr.f32.vlgmr.msra.gmra.mrb[16].mxu0 %v4746_v16  ;;  %v4323_v15 = vpop.xlane.xlu0 %4322  ;;  %v4582_v38 = vsel %vm4550_vm7, %v4534_v47, %v4566_v22  ;;  %v4939_v8 = vand.u32 4294901760, %v4938_v58  ;;  %v4946_v35 = vand.u32 4294901760, %v4945_v28  ;;  %v10275_v60 = vpack.c.bf16 %v10209_v54, %v10197_v34  ;;  %v11020_v34 = vld [vmem:[#allocation64_spill] sm:$0xff] }
 0x7ca   : > { %v4514_v32 = vadd.f32 %v10165_v42, %v4382_v4  ;;  %v3953_v45 = vadd.f32 %v3937_v23, %v3805_v55  ;;  %v10267_v29 = vpop.xlane.xlu1 %4208  ;;  %v4618_v26 = vsel %vm637_vm0, %v4582_v38, 0  ;;  %7567 = vmatpush3.bf16.msra.mxu0 %v10034_v27  ;;  %v4233_v22 = vmul.f32 %v10039_v48, %v10017_v62  ;;  %v11008_v27 = vld [vmem:[#allocation29_spill] sm:$0xff] }
 0x7cb   : > { %v10271_v10 = vand.u32 4294901760, %v4618_v26  ;;  %7569 = vmatprep.subr.bf16.mxu0 %v7568_v51  ;;  %v10875_v47 = vand.u32 4294901760, %v10258_v3  ;;  %v3596_v16 = vadd.f32 %v3580_v44, %v3448_v53  ;;  %v3431_v21 = vmul.f32 %v9916_v31, %v11008_v27 }
 0x7cc   : > { %v4537_v42 = vadd.f32 %v10076_v2, %v4514_v32  ;;  %v4101_v4 = vadd.f32 %v4085_v59, %v3953_v45  ;;  %v4365_v49 = vmul.f32 %v10051_v9, %v4323_v15  ;;  %v4497_v53 = vmul.f32 %v10060_v1, %v11009_v18 }
 0x7cd   : > { %v3756_v58 = vpop.xlane.xlu0 %3755  ;;  %v10285_v28 = vsub.f32 %v4618_v26, %v10271_v10  ;;  %v3940_v44 = vmul.f32 %v10013_v19, %v9664_v61  ;;  %v7576_v15 = vpack.c.bf16 %v4946_v35, %v4939_v8  ;;  %v4765_v45 = vsub.f32 %v10258_v3, %v10875_v47 }
 0x7ce   : > { %vm4553_vm8 = vcmp.gt.f32.partialorder %v4537_v42, 0.0  ;;  %v4569_v7 = vmul.f32 0.01, %v4537_v42  ;;  %v4249_v23 = vadd.f32 %v4233_v22, %v4101_v4  ;;  %v3792_v62 = vmul.f32 %v10008_v52, %v3756_v58  ;;  %v10288_v55 = vpop.xlane.xlu1 %4340  ;;  %7571 = vmatpush3.bf16.msra.mxu0 %v7568_v51  ;;  %v11010_v22 = vld [vmem:[#allocation8_spill] sm:$0xff]  ;;  %v11011_v4 = vld [vmem:[#allocation31_spill] sm:$0xff] }
 0x7cf   : > { %v10876_v59 = vand.u32 4294901760, %v10285_v28  ;;  %7573 = vmatprep.subr.bf16.mxu0 %v7572_v33  ;;  %v3267_v51 = vmul.f32 %v9920_v11, %v11010_v22  ;;  %v3579_v27 = vmul.f32 %v9929_v25, %v11011_v4  ;;  %v4088_v35 = vmul.f32 %v10029_v46, %v10031_v14 }
 0x7d0   : > { %v4381_v38 = vadd.f32 %v4365_v49, %v4249_v23  ;;  %v3808_v32 = vadd.f32 %v3792_v62, %v3596_v16  ;;  %v4585_v26 = vsel %vm4553_vm8, %v4537_v42, %v4569_v7  ;;  %v4236_v7 = vmul.f32 %v10039_v48, %v10048_v50 }
 0x7d1   : > { %v4332_v58 = vpop.xlane.xlu0 %4331  ;;  %v4755_v61 = vsub.f32 %v10285_v28, %v10876_v59  ;;  %v4627_v8 = vsel %vm637_vm0, %v4585_v26, 0  ;;  %v3447_v42 = vadd.f32 %v3431_v21, %v3267_v51  ;;  %v10314_v18 = vpack.c.bf16 %v10005_v5, %v10000_v43 }
 0x7d2   : > { %v4513_v16 = vadd.f32 %v4497_v53, %v4381_v38  ;;  %v3956_v49 = vadd.f32 %v3940_v44, %v3808_v32  ;;  %v10308_v23 = vpop.xlane.xlu1 %4069  ;;  %7575 = vmatpush3.bf16.msra.mxu0 %v7572_v33  ;;  %v4766_v4 = vand.u32 4294901760, %v4765_v45  ;;  %v10317_v14 = vand.u32 4294901760, %v4627_v8 }
 0x7d3   : > { %v4756_v62 = vand.u32 4294901760, %v4755_v61  ;;  %7577 = vmatprep.subr.bf16.mxu0 %v7576_v15  ;;  %v3595_v53 = vadd.f32 %v3579_v27, %v3447_v42  ;;  %v4368_v44 = vmul.f32 %v10051_v9, %v4332_v58  ;;  %v3434_v51 = vmul.f32 %v9916_v31, %v9636_v0 }
 0x7d4   : > { %v4536_v26 = vadd.f32 %v10076_v2, %v4513_v16  ;;  %v4104_v22 = vadd.f32 %v4088_v35, %v3956_v49  ;;  %v4500_v45 = vmul.f32 %v10060_v1, %v9673_v63  ;;  %v3939_v27 = vmul.f32 %v10013_v19, %v9682_v17  ;;  %v11012_v49 = vld [vmem:[#allocation9_spill] sm:$0xff] }
 0x7d5   : > { %7135 = vmatprep.mubr.f32.mxu0 %v4756_v62  ;;  %v3753_v33 = vpop.xlane.xlu0 %3752  ;;  %v10330_v16 = vsub.f32 %v4627_v8, %v10317_v14  ;;  %v3270_v42 = vmul.f32 %v9920_v11, %v11012_v49  ;;  %v4087_v17 = vmul.f32 %v10029_v46, %v10067_v30  ;;  %v11015_v49 = vld [vmem:[#allocation40_spill] sm:$0xff] }
 0x7d6   : > { %vm4552_vm9 = vcmp.gt.f32.partialorder %v4536_v26, 0.0  ;;  %v4568_v21 = vmul.f32 0.01, %v4536_v26  ;;  %v4252_v50 = vadd.f32 %v4236_v7, %v4104_v22  ;;  %7136 = vmatmul.mubr.f32.gmra.mrb[18].mxu0 %v4766_v4  ;;  %v3791_v38 = vmul.f32 %v10008_v52, %v3753_v33  ;;  %v10321_v32 = vpop.xlane.xlu1 %4217  ;;  %v11013_v7 = vld [vmem:[#allocation37_spill] sm:$0xff] }
 0x7d7   : > { %7579 = vmatpush3.bf16.msra.mxu0 %v7576_v15  ;;  %v3582_v0 = vmul.f32 %v9929_v25, %v11013_v7  ;;  %v3450_v4 = vadd.f32 %v3434_v51, %v3270_v42  ;;  %v4499_v42 = vmul.f32 %v10060_v1, %v11015_v49  ;;  %v11016_v7 = vld [vmem:[#allocation46_spill] sm:$0xff] }
 0x7d8   : > { %v4384_v58 = vadd.f32 %v4368_v44, %v4252_v50  ;;  %v3807_v61 = vadd.f32 %v3791_v38, %v3595_v53  ;;  %v4584_v35 = vsel %vm4552_vm9, %v4536_v26, %v4568_v21  ;;  %7581 = vmatprep.subr.bf16.mxu0 %v10314_v18  ;;  %v4235_v53 = vmul.f32 %v10039_v48, %v10079_v12  ;;  %v11014_v12 = vld [vmem:[#allocation38_spill] sm:$0xff] }
 0x7d9   : > { %v4329_v62 = vpop.xlane.xlu0 %4328  ;;  %v4624_v63 = vsel %vm637_vm0, %v4584_v35, 0  ;;  %v10874_v50 = vand.u32 4294901760, %v10330_v16  ;;  %v3598_v38 = vadd.f32 %v3582_v0, %v3450_v4  ;;  %v3433_v35 = vmul.f32 %v9916_v31, %v11014_v12  ;;  %v11017_v4 = vld [vmem:[#allocation10_spill] sm:$0xff] }
 0x7da   : > { %v4516_v15 = vadd.f32 %v4500_v45, %v4384_v58  ;;  %v3955_v22 = vadd.f32 %v3939_v27, %v3807_v61  ;;  %v10340_v26 = vpop.xlane.xlu1 %4075  ;;  %v10342_v8 = vand.u32 4294901760, %v4624_v63  ;;  %v4367_v30 = vmul.f32 %v10051_v9, %v4329_v62 }
 0x7dc   : > { %v4539_v44 = vadd.f32 %v10076_v2, %v4516_v15  ;;  %v4103_v33 = vadd.f32 %v4087_v17, %v3955_v22  ;;  %v10348_v21 = vsub.f32 %v4624_v63, %v10342_v8  ;;  %v3942_v63 = vmul.f32 %v10013_v19, %v11016_v7 }
 0x7dd   : > { %v3762_v45 = vpop.xlane.xlu0 %3761  ;;  %v4785_v15 = vsub.f32 %v10330_v16, %v10874_v50 }
 0x7de   : > { %vm4555_vm10 = vcmp.gt.f32.partialorder %v4539_v44, 0.0  ;;  %v4571_v27 = vmul.f32 0.01, %v4539_v44  ;;  %v4251_v58 = vadd.f32 %v4235_v53, %v4103_v33  ;;  %v3794_v51 = vmul.f32 %v10008_v52, %v3762_v45  ;;  %v10353_v61 = vpop.xlane.xlu1 %4223  ;;  %v11018_v33 = vld [vmem:[#allocation39_spill] sm:$0xff] }
 0x7df   : > { %v10878_v0 = vand.u32 4294901760, %v10348_v21  ;;  %v3269_v53 = vmul.f32 %v9920_v11, %v11017_v4  ;;  %v3581_v45 = vmul.f32 %v9929_v25, %v11018_v33  ;;  %v4786_v54 = vand.u32 4294901760, %v4785_v15 }
 0x7e0   : > { %v4383_v62 = vadd.f32 %v4367_v30, %v4251_v58  ;;  %v3810_v17 = vadd.f32 %v3794_v51, %v3598_v38  ;;  %v4587_v22 = vsel %vm4555_vm10, %v4539_v44, %v4571_v27  ;;  %v11019_v30 = vld [vmem:[#allocation3_spill] sm:$0xff]  ;;  %v4238_v27 = vmul.f32 %v10039_v48, %v10118_v39 }
 0x7e1   : > { %v4338_v12 = vpop.xlane.xlu0 %4337  ;;  %v4775_v49 = vsub.f32 %v10348_v21, %v10878_v0  ;;  %v4633_v7 = vsel %vm637_vm0, %v4587_v22, 0  ;;  %v4090_v38 = vmul.f32 %v10029_v46, %v11019_v30  ;;  %v3449_v44 = vadd.f32 %v3433_v35, %v3269_v53  ;;  %v11022_v53 = vld [vmem:[#allocation41_spill] sm:$0xff] }
 0x7e2   : > { %v4515_v58 = vadd.f32 %v4499_v42, %v4383_v62  ;;  %v3958_v51 = vadd.f32 %v3942_v63, %v3810_v17  ;;  %v3777_v50 = vpop.xlane.xlu1 %3776  ;;  %v10379_v0 = vand.u32 4294901760, %v4633_v7  ;;  %v3947_v30 = vmul.f32 %v10013_v19, %v11020_v34  ;;  %v11021_v63 = vld [vmem:[#allocation62_spill] sm:$0xff] }
 0x7e3   : > { %v3799_v4 = vmul.f32 %v10008_v52, %v3777_v50  ;;  %v4776_v33 = vand.u32 4294901760, %v4775_v49  ;;  %v3597_v22 = vadd.f32 %v3581_v45, %v3449_v44  ;;  %v4370_v42 = vmul.f32 %v10051_v9, %v4338_v12  ;;  %v11023_v49 = vld [vmem:[#allocation47_spill] sm:$0xff] }
 0x7e4   : > { %v4538_v47 = vadd.f32 %v10076_v2, %v4515_v58  ;;  %v4106_v59 = vadd.f32 %v4090_v38, %v3958_v51  ;;  %v3436_v15 = vmul.f32 %v9916_v31, %v11022_v53  ;;  %v4502_v45 = vmul.f32 %v10060_v1, %v11023_v49  ;;  %v11024_v38 = vld [vmem:[#allocation48_spill] sm:$0xff] }
 0x7e5   : > { %v3815_v35 = vadd.f32 %v3799_v4, %v11021_v63  ;;  %7138 = vmatprep.mubr.f32.mxu0 %v4776_v33  ;;  %v3759_v62 = vpop.xlane.xlu0 %3758  ;;  %v3941_v34 = vmul.f32 %v10013_v19, %v11024_v38  ;;  %v10395_v4 = vsub.f32 %v4633_v7, %v10379_v0  ;;  %v4089_v53 = vmul.f32 %v10029_v46, %v10144_v41 }
 0x7e6   : > { %vm4554_vm11 = vcmp.gt.f32.partialorder %v4538_v47, 0.0  ;;  %v4570_v39 = vmul.f32 0.01, %v4538_v47  ;;  %v4254_v50 = vadd.f32 %v4238_v27, %v4106_v59  ;;  %7139 = vmatmul.mubr.f32.gmra.mrb[20].mxu0 %v4786_v54  ;;  %v3793_v17 = vmul.f32 %v10008_v52, %v3759_v62  ;;  %v11026_v54 = vld [vmem:[#allocation11_spill] sm:$0xff]  ;;  %v11027_v27 = vld [vmem:[#allocation42_spill] sm:$0xff]  ;;  %v4073_v38 = vpop.xlane.xlu1 %4072 }
 0x7e7   : > { %v10392_v12 = vadd.f32 %v3947_v30, %v3815_v35  ;;  %11025 = vst [vmem:[#allocation7_spill] sm:$0xff] %v10395_v4  ;;  %v3272_v59 = vmul.f32 %v9920_v11, %v11026_v54  ;;  %v3584_v33 = vmul.f32 %v9929_v25, %v11027_v27  ;;  %v4237_v7 = vmul.f32 %v10039_v48, %v10174_v56 }
 0x7e8   : > { %v4386_v58 = vadd.f32 %v4370_v42, %v4254_v50  ;;  %v3809_v51 = vadd.f32 %v3793_v17, %v3597_v22  ;;  %v4586_v44 = vsel %vm4554_vm11, %v4538_v47, %v4570_v39  ;;  %v10880_v17 = vand.u32 4294901760, %v10395_v4 }
 0x7e9   : > { %v4335_v63 = vpop.xlane.xlu0 %4334  ;;  %v4630_v62 = vsel %vm637_vm0, %v4586_v44, 0  ;;  %v3452_v47 = vadd.f32 %v3436_v15, %v3272_v59  ;;  %v11029_v44 = vld [vmem:[#allocation49_spill] sm:$0xff]  ;;  %v11030_v59 = vld [vmem:[#allocation56_spill] sm:$0xff] }
 0x7ea   : > { %v4518_v30 = vadd.f32 %v4502_v45, %v4386_v58  ;;  %v3957_v35 = vadd.f32 %v3941_v34, %v3809_v51  ;;  %v10404_v42 = vand.u32 4294901760, %v4630_v62  ;;  %v4369_v41 = vmul.f32 %v10051_v9, %v4335_v63  ;;  %v11028_v51 = vld [vmem:[#allocation43_spill] sm:$0xff] }
 0x7eb   : > { %v3600_v49 = vadd.f32 %v3584_v33, %v3452_v47  ;;  %v3435_v56 = vmul.f32 %v9916_v31, %v11028_v51  ;;  %v4501_v54 = vmul.f32 %v10060_v1, %v11029_v44  ;;  %v3944_v27 = vmul.f32 %v10013_v19, %v11030_v59 }
 0x7ec   : > { %v4541_v22 = vadd.f32 %v10076_v2, %v4518_v30  ;;  %v4105_v39 = vadd.f32 %v4089_v53, %v3957_v35  ;;  %v10410_v50 = vsub.f32 %v4630_v62, %v10404_v42  ;;  %v4805_v63 = vsub.f32 %v10395_v4, %v10880_v17  ;;  %v11031_v35 = vld [vmem:[#allocation12_spill] sm:$0xff] }
 0x7ed   : > { %v3768_v45 = vpop.xlane.xlu0 %3767  ;;  %v3271_v47 = vmul.f32 %v9920_v11, %v11031_v35 }
 0x7ee   : > { %vm4557_vm12 = vcmp.gt.f32.partialorder %v4541_v22, 0.0  ;;  %v4573_v34 = vmul.f32 0.01, %v4541_v22  ;;  %v4253_v58 = vadd.f32 %v4237_v7, %v4105_v39  ;;  %v3796_v15 = vmul.f32 %v10008_v52, %v3768_v45  ;;  %v11032_v7 = vld [vmem:[#allocation44_spill] sm:$0xff] }
 0x7ef   : > { %v10883_v33 = vand.u32 4294901760, %v10410_v50  ;;  %v3583_v39 = vmul.f32 %v9929_v25, %v11032_v7  ;;  %v4806_v17 = vand.u32 4294901760, %v4805_v63 }
 0x7f0   : > { %v4385_v62 = vadd.f32 %v4369_v41, %v4253_v58  ;;  %v3812_v53 = vadd.f32 %v3796_v15, %v3600_v49  ;;  %v4589_v30 = vsel %vm4557_vm12, %v4541_v22, %v4573_v34  ;;  %v4092_v49 = vmul.f32 %v10029_v46, %v10200_v20  ;;  %v4221_v34 = vpop.xlane.xlu1 %4220 }
 0x7f1   : > { %v4344_v45 = vpop.xlane.xlu0 %4343  ;;  %v4795_v51 = vsub.f32 %v10410_v50, %v10883_v33  ;;  %v4639_v44 = vsel %vm637_vm0, %v4589_v30, 0  ;;  %v3451_v15 = vadd.f32 %v3435_v56, %v3271_v47  ;;  %v4240_v22 = vmul.f32 %v10039_v48, %v10226_v57  ;;  %v11033_v57 = vld [vmem:[#allocation59_spill] sm:$0xff] }
 0x7f2   : > { %v4517_v41 = vadd.f32 %v4501_v54, %v4385_v62  ;;  %v3960_v58 = vadd.f32 %v3944_v27, %v3812_v53  ;;  %v10438_v4 = vand.u32 4294901760, %v4639_v44  ;;  %v4372_v30 = vmul.f32 %v10051_v9, %v4344_v45  ;;  %v11034_v62 = vld [vmem:[#allocation60_spill] sm:$0xff]  ;;  %v11035_v45 = vld [vmem:[#allocation13_spill] sm:$0xff] }
 0x7f3   : > { %v4796_v59 = vand.u32 4294901760, %v4795_v51  ;;  %v3599_v33 = vadd.f32 %v3583_v39, %v3451_v15  ;;  %v4504_v27 = vmul.f32 %v10060_v1, %v11033_v57  ;;  %v3943_v53 = vmul.f32 %v10013_v19, %v11034_v62 }
 0x7f4   : > { %v4540_v35 = vadd.f32 %v10076_v2, %v4517_v41  ;;  %v4108_v7 = vadd.f32 %v4092_v49, %v3960_v58  ;;  %v10447_v39 = vsub.f32 %v4639_v44, %v10438_v4  ;;  %v3274_v49 = vmul.f32 %v9920_v11, %v11035_v45  ;;  %v11036_v41 = vld [vmem:[#allocation50_spill] sm:$0xff]  ;;  %v4353_v58 = vpop.xlane.xlu1 %4352 }
 0x7f5   : > { %7141 = vmatprep.mubr.f32.mxu0 %v4796_v59  ;;  %v3765_v5 = vpop.xlane.xlu0 %3764 }
 0x7f6   : > { %vm4556_vm13 = vcmp.gt.f32.partialorder %v4540_v35, 0.0  ;;  %v4572_v20 = vmul.f32 0.01, %v4540_v35  ;;  %v4256_v54 = vadd.f32 %v4240_v22, %v4108_v7  ;;  %7142 = vmatmul.mubr.f32.gmra.mrb[22].mxu0 %v4806_v17  ;;  %v3795_v56 = vmul.f32 %v10008_v52, %v3765_v5 }
 0x7f7   : > { %v3438_v17 = vmul.f32 %v9916_v31, %v11036_v41  ;;  %v4091_v22 = vmul.f32 %v10029_v46, %v10249_v13 }
 0x7f8   : > { %v4388_v63 = vadd.f32 %v4372_v30, %v4256_v54  ;;  %v3811_v47 = vadd.f32 %v3795_v56, %v3599_v33  ;;  %v4588_v51 = vsel %vm4556_vm13, %v4540_v35, %v4572_v20  ;;  %v11037_v35 = vld [vmem:[#allocation14_spill] sm:$0xff]  ;;  %v11038_v30 = vld [vmem:[#allocation52_spill] sm:$0xff]  ;;  %v4239_v54 = vmul.f32 %v10039_v48, %v10267_v29 }
 0x7f9   : > { %v3774_v5 = vpop.xlane.xlu0 %3773  ;;  %v4636_v15 = vsel %vm637_vm0, %v4588_v51, 0  ;;  %v3273_v44 = vmul.f32 %v9920_v11, %v11037_v35  ;;  %v3437_v20 = vmul.f32 %v9916_v31, %v11038_v30  ;;  %v4095_v56 = vmul.f32 %v10029_v46, %v4073_v38 }
 0x7fa   : > { %v4520_v59 = vadd.f32 %v4504_v27, %v4388_v63  ;;  %v3959_v7 = vadd.f32 %v3943_v53, %v3811_v47  ;;  %v10456_v33 = vand.u32 4294901760, %v4636_v15  ;;  %v10885_v27 = vand.u32 4294901760, %v10447_v39  ;;  %v11039_v53 = vld [vmem:[#allocation45_spill] sm:$0xff] }
 0x7fb   : > { %v4503_v63 = vmul.f32 %v10060_v1, %v11039_v53  ;;  %v3454_v11 = vadd.f32 %v3438_v17, %v3274_v49  ;;  %v11040_v47 = vld [vmem:[#allocation53_spill] sm:$0xff]  ;;  %v4371_v29 = vmul.f32 %v10051_v9, %v10288_v55  ;;  %v4243_v38 = vmul.f32 %v10039_v48, %v4221_v34  ;;  %v4485_v49 = vpop.xlane.xlu1 %4484 }
 0x7fc   : > { %v4543_v57 = vadd.f32 %v10076_v2, %v4520_v59  ;;  %v4107_v62 = vadd.f32 %v4091_v22, %v3959_v7  ;;  %v10467_v13 = vsub.f32 %v4636_v15, %v10456_v33  ;;  %v3585_v31 = vmul.f32 %v9929_v25, %v11040_v47  ;;  %v11041_v15 = vld [vmem:[#allocation51_spill] sm:$0xff] }
 0x7fd   : > { %v10476_v51 = vpop.xlane.xlu0 %4349  ;;  %v3586_v22 = vmul.f32 %v9929_v25, %v11041_v15  ;;  %v3453_v59 = vadd.f32 %v3437_v20, %v3273_v44  ;;  %v4111_v7 = vadd.f32 %v4095_v56, %v10392_v12  ;;  %v4375_v35 = vmul.f32 %v10051_v9, %v4353_v58 }
 0x7fe   : > { %vm4559_vm14 = vcmp.gt.f32.partialorder %v4543_v57, 0.0  ;;  %v4575_v45 = vmul.f32 0.01, %v4543_v57  ;;  %v4255_v41 = vadd.f32 %v4239_v54, %v4107_v62  ;;  %v4814_v17 = vand.u32 4294901760, %v10467_v13 }
 0x7ff   : > { %v4825_v55 = vsub.f32 %v10447_v39, %v10885_v27  ;;  %v3601_v53 = vadd.f32 %v3585_v31, %v3453_v59  ;;  %v3798_v54 = vmul.f32 %v10008_v52, %v3774_v5  ;;  %v4259_v44 = vadd.f32 %v4243_v38, %v4111_v7  ;;  %v11042_v27 = vld [vmem:[#allocation65_spill] sm:$0xff] }
 0x800   : > { %v4387_v30 = vadd.f32 %v4371_v29, %v4255_v41  ;;  %v4591_v34 = vsel %vm4559_vm14, %v4543_v57, %v4575_v45  ;;  %v4815_v25 = vsub.f32 %v10467_v13, %v4814_v17  ;;  %v4507_v20 = vmul.f32 %v10060_v1, %v4485_v49  ;;  %v11043_v49 = vld [vmem:[#allocation63_spill] sm:$0xff] }
 0x801   : > { %v3771_v62 = vpop.xlane.xlu0 %3770  ;;  %v4645_v12 = vsel %vm637_vm0, %v4591_v34, 0  ;;  %v3602_v47 = vadd.f32 %v3586_v22, %v3454_v11  ;;  %v4391_v57 = vadd.f32 %v4375_v35, %v4259_v44  ;;  %v4826_v45 = vand.u32 4294901760, %v4825_v55 }
 0x802   : > { %v4519_v58 = vadd.f32 %v4503_v63, %v4387_v30  ;;  %v3797_v56 = vmul.f32 %v10008_v52, %v3771_v62  ;;  %v4816_v29 = vand.u32 4294901760, %v4815_v25  ;;  %v10494_v41 = vand.u32 4294901760, %v4645_v12 }
 0x803   : > { %v3814_v15 = vadd.f32 %v3798_v54, %v3602_v47  ;;  %v3945_v38 = vmul.f32 %v10013_v19, %v11042_v27  ;;  %v4523_v7 = vadd.f32 %v4507_v20, %v4391_v57  ;;  %v3946_v11 = vmul.f32 %v10013_v19, %v11043_v49 }
 0x804   : > { %v4542_v5 = vadd.f32 %v10076_v2, %v4519_v58  ;;  %v3813_v31 = vadd.f32 %v3797_v56, %v3601_v53  ;;  %7144 = vmatprep.mubr.f32.mxu0 %v4816_v29  ;;  %v10502_v22 = vsub.f32 %v4645_v12, %v10494_v41  ;;  %v4094_v44 = vmul.f32 %v10029_v46, %v10308_v23 }
 0x805   : > { %v4067_v59 = vpop.xlane.xlu0 %4066  ;;  %7145 = vmatmul.mubr.f32.gmra.mrb[24].mxu0 %v4826_v45  ;;  %v3962_v34 = vadd.f32 %v3946_v11, %v3814_v15  ;;  %v4546_v27 = vadd.f32 %v10076_v2, %v4523_v7  ;;  %v4242_v45 = vmul.f32 %v10039_v48, %v10321_v32  ;;  %v11044_v15 = vld [vmem:[#allocation66_spill] sm:$0xff] }
 0x806   : > { %vm4558_vm15 = vcmp.gt.f32.partialorder %v4542_v5, 0.0  ;;  %v4574_v63 = vmul.f32 0.01, %v4542_v5  ;;  %v3961_v35 = vadd.f32 %v3945_v38, %v3813_v31  ;;  %v4093_v30 = vmul.f32 %v10029_v46, %v4067_v59 }
 0x807   : > { %v4844_v12 = vand.u32 4294901760, %v10502_v22  ;;  %v4110_v56 = vadd.f32 %v4094_v44, %v3962_v34  ;;  %v4578_v29 = vmul.f32 0.01, %v4546_v27  ;;  %vm4562_vm1 = vcmp.gt.f32.partialorder %v4546_v27, 0.0  ;;  %v11046_v44 = vld [vmem:[#allocation61_spill] sm:$0xff] }
 0x808   : > { %v4590_v55 = vsel %vm4558_vm15, %v4542_v5, %v4574_v63  ;;  %v4109_v20 = vadd.f32 %v4093_v30, %v3961_v35  ;;  %v4505_v59 = vmul.f32 %v10060_v1, %v11044_v15 }
 0x809   : > { %v4215_v53 = vpop.xlane.xlu0 %4214  ;;  %v4642_v54 = vsel %vm637_vm0, %v4590_v55, 0  ;;  %v4845_v23 = vsub.f32 %v10502_v22, %v4844_v12  ;;  %v4258_v63 = vadd.f32 %v4242_v45, %v4110_v56  ;;  %v4594_v11 = vsel %vm4562_vm1, %v4546_v27, %v4578_v29 }
 0x80a   : > { %v4241_v62 = vmul.f32 %v10039_v48, %v4215_v53  ;;  %v10508_v25 = vand.u32 4294901760, %v4642_v54  ;;  %v4374_v55 = vmul.f32 %v10051_v9, %v10476_v51  ;;  %v11045_v53 = vld [vmem:[#allocation67_spill] sm:$0xff]  ;;  %v4096_v56 = vmul.f32 %v10029_v46, %v10340_v26 }
 0x80b   : > { %v4846_v34 = vand.u32 4294901760, %v4845_v23 }
 0x80c   : > { %v10514_v58 = vsub.f32 %v4642_v54, %v10508_v25  ;;  %v4257_v57 = vadd.f32 %v4241_v62, %v4109_v20  ;;  %v3948_v54 = vmul.f32 %v10013_v19, %v11045_v53  ;;  %v4390_v27 = vadd.f32 %v4374_v55, %v4258_v63 }
 0x80d   : > { %v4347_v47 = vpop.xlane.xlu0 %4346  ;;  %v4244_v19 = vmul.f32 %v10039_v48, %v10353_v61 }
 0x80e   : > { %v4373_v5 = vmul.f32 %v10051_v9, %v4347_v47  ;;  %v4834_v31 = vand.u32 4294901760, %v10514_v58 }
 0x810   : > { %v4389_v38 = vadd.f32 %v4373_v5, %v4257_v57  ;;  %v4835_v7 = vsub.f32 %v10514_v58, %v4834_v31 }
 0x811   : > { %v3780_v49 = vpop.xlane.xlu0 %3779 }
 0x812   : > { %v4521_v35 = vadd.f32 %v4505_v59, %v4389_v38  ;;  %v3800_v30 = vmul.f32 %v10008_v52, %v3780_v49  ;;  %v4836_v32 = vand.u32 4294901760, %v4835_v7  ;;  %v4654_v52 = vsel %vm637_vm0, %v4594_v11, 0 }
 0x813   : > { %v10542_v46 = vand.u32 4294901760, %v4654_v52 }
 0x814   : > { %v4544_v62 = vadd.f32 %v10076_v2, %v4521_v35  ;;  %v3816_v20 = vadd.f32 %v3800_v30, %v11046_v44  ;;  %7147 = vmatprep.mubr.f32.mxu0 %v4836_v32 }
 0x815   : > { %7148 = vmatmul.mubr.f32.gmra.mrb[26].mxu0 %v4846_v34  ;;  %v4482_v47 = vpop.xlane.xlu0 %4481  ;;  %v10552_v61 = vsub.f32 %v4654_v52, %v10542_v46 }
 0x816   : > { %vm4560_vm2 = vcmp.gt.f32.partialorder %v4544_v62, 0.0  ;;  %v4576_v29 = vmul.f32 0.01, %v4544_v62  ;;  %v3964_v51 = vadd.f32 %v3948_v54, %v3816_v20  ;;  %v4506_v57 = vmul.f32 %v10060_v1, %v4482_v47 }
 0x818   : > { %v4522_v5 = vadd.f32 %v4506_v57, %v4390_v27  ;;  %v4112_v45 = vadd.f32 %v4096_v56, %v3964_v51  ;;  %v4592_v23 = vsel %vm4560_vm2, %v4544_v62, %v4576_v29  ;;  %v4874_v62 = vand.u32 4294901760, %v10552_v61 }
 0x819   : > { %v4356_v15 = vpop.xlane.xlu0 %4355  ;;  %v4648_v59 = vsel %vm637_vm0, %v4592_v23, 0 }
 0x81a   : > { %v4545_v26 = vadd.f32 %v10076_v2, %v4522_v5  ;;  %v4260_v38 = vadd.f32 %v4244_v19, %v4112_v45  ;;  %v4376_v7 = vmul.f32 %v10051_v9, %v4356_v15  ;;  %v10546_v63 = vand.u32 4294901760, %v4648_v59 }
 0x81b   : > { %v4875_v47 = vsub.f32 %v10552_v61, %v4874_v62 }
 0x81c   : > { %vm4561_vm3 = vcmp.gt.f32.partialorder %v4545_v26, 0.0  ;;  %v4577_v49 = vmul.f32 0.01, %v4545_v26  ;;  %v10549_v11 = vsub.f32 %v4648_v59, %v10546_v63  ;;  %v4392_v30 = vadd.f32 %v4376_v7, %v4260_v38  ;;  %v11051_v59 = vld [vmem:[#allocation57_spill] sm:$0xff]  ;;  %v11054_v7 = vld [vmem:[#allocation68_spill] sm:$0xff] }
 0x81d   : > { %v4488_v48 = vpop.xlane.xlu0 %4487  ;;  %v4876_v19 = vand.u32 4294901760, %v4875_v47  ;;  %v11053_v38 = vand.u32 4294901760, %v10000_v43 }
 0x81e   : > { %v4593_v35 = vsel %vm4561_vm3, %v4545_v26, %v4577_v49  ;;  %v4508_v32 = vmul.f32 %v10060_v1, %v4488_v48  ;;  %v4854_v55 = vand.u32 4294901760, %v10549_v11  ;;  %v11052_v26 = vld [vmem:[#allocation58_spill] sm:$0xff]  ;;  %v11055_v49 = vand.u32 4294901760, %v11054_v7 }
 0x81f   : > { %v4651_v34 = vsel %vm637_vm0, %v4593_v35, 0  ;;  %v11056_v35 = vld [vmem:[#allocation7_spill] sm:$0xff]  ;;  %v11075_v7 = vand.u32 4294901760, %v10410_v50 }
 0x820   : > { %v4524_v9 = vadd.f32 %v4508_v32, %v4392_v30  ;;  %v4855_v53 = vsub.f32 %v10549_v11, %v4854_v55  ;;  %v10560_v54 = vand.u32 4294901760, %v4651_v34  ;;  %v7612_v48 = vpack.c.bf16 %v11055_v49, %v11053_v38  ;;  %v11058_v30 = vld [vmem:[#allocation19_spill] sm:$0xff] }
 0x821   : > { %v11059_v32 = vand.u32 4294901760, %v11058_v30  ;;  %v11074_v38 = vand.u32 4294901760, %v10330_v16 }
 0x822   : > { %v4547_v44 = vadd.f32 %v10076_v2, %v4524_v9  ;;  %v4856_v20 = vand.u32 4294901760, %v4855_v53  ;;  %v10565_v56 = vsub.f32 %v4651_v34, %v10560_v54  ;;  %v11060_v34 = vld [vmem:[#allocation17_spill] sm:$0xff] }
 0x823   : > { %v11061_v9 = vand.u32 4294901760, %v11060_v34 }
 0x824   : > { %vm4563_vm4 = vcmp.gt.f32.partialorder %v4547_v44, 0.0  ;;  %v4579_v1 = vmul.f32 0.01, %v4547_v44  ;;  %7150 = vmatprep.mubr.f32.mxu0 %v4856_v20  ;;  %v4864_v27 = vand.u32 4294901760, %v10565_v56  ;;  %v11063_v20 = vand.u32 4294901760, %v10285_v28 }
 0x825   : > { %v7616_v53 = vpack.c.bf16 %v11061_v9, %v11059_v32 }
 0x826   : > { %v4595_v52 = vsel %vm4563_vm4, %v4547_v44, %v4579_v1  ;;  %v4865_v29 = vsub.f32 %v10565_v56, %v4864_v27  ;;  %v11064_v1 = vld [vmem:[#allocation15_spill] sm:$0xff] }
 0x827   : > { %v4657_v2 = vsel %vm637_vm0, %v4595_v52, 0  ;;  %v11065_v47 = vand.u32 4294901760, %v11064_v1  ;;  %v11066_v52 = vld [vmem:[#allocation20_spill] sm:$0xff] }
 0x828   : > { %v4866_v51 = vand.u32 4294901760, %v4865_v29  ;;  %v10575_v57 = vand.u32 4294901760, %v4657_v2  ;;  %v11067_v29 = vand.u32 4294901760, %v11066_v52 }
 0x82a   : > { %7151 = vmatmul.mubr.f32.gmra.mrb[28].mxu0 %v4866_v51  ;;  %v10578_v5 = vsub.f32 %v4657_v2, %v10575_v57  ;;  %v7620_v2 = vpack.c.bf16 %v11067_v29, %v11065_v47  ;;  %v11068_v51 = vand.u32 4294901760, %v10258_v3 }
 0x82b   : > { %7153 = vmatprep.mubr.f32.mxu0 %v4876_v19  ;;  %v11069_v19 = vand.u32 4294901760, %v10348_v21 }
 0x82c   : > { %v4884_v45 = vand.u32 4294901760, %v10578_v5 }
 0x82e   : > { %v4885_v23 = vsub.f32 %v10578_v5, %v4884_v45 }
 0x830   : > { %v4886_v15 = vand.u32 4294901760, %v4885_v23  ;;  %v11070_v23 = vld [vmem:[#allocation4_spill] sm:$0xff] }
 0x832   : > { %7154 = vmatmul.mubr.f32.gmra.mrb[30].mxu0 %v4886_v15  ;;  %v11071_v15 = vand.u32 4294901760, %v11070_v23 }
 0x833   : > { %7172 = vmatprep.mubr.f32.mxu0 %v10202_v6 }
 0x836   : > { %7173 = vmatmul.mubr.f32.vlgmr.msra.gmra.mrb[16].mxu0 %v10149_v40 }
 0x837   : > { %7583 = vmatpush3.bf16.msra.mxu0 %v10314_v18  ;;  %7175 = vmatprep.mubr.f32.mxu0 %v10271_v10  ;;  %v11047_v18 = vld [vmem:[#allocation54_spill] sm:$0xff] }
 0x838   : > { %7585 = vmatprep.subr.bf16.mxu0 %v10190_v36 }
 0x83a   : > { %7176 = vmatmul.mubr.f32.gmra.mrb[18].mxu0 %v10241_v37 }
 0x83b   : > { %7178 = vmatprep.mubr.f32.mxu0 %v10342_v8  ;;  %7587 = vmatpush3.bf16.msra.mxu0 %v10190_v36  ;;  %v11048_v36 = vld [vmem:[#allocation5_spill] sm:$0xff] }
 0x83c   : > { %7589 = vmatprep.subr.bf16.mxu0 %v10236_v24  ;;  %v11057_v43 = vand.u32 4294901760, %v11048_v36 }
 0x83e   : > { %7179 = vmatmul.mubr.f32.gmra.mrb[20].mxu0 %v10317_v14 }
 0x83f   : > { %7181 = vmatprep.mubr.f32.mxu0 %v10404_v42  ;;  %7591 = vmatpush3.bf16.msra.mxu0 %v10236_v24  ;;  %v11049_v24 = vld [vmem:[#allocation16_spill] sm:$0xff] }
 0x840   : > { %7593 = vmatprep.subr.bf16.mxu0 %v10275_v60  ;;  %v11062_v44 = vand.u32 4294901760, %v11049_v24 }
 0x842   : > { %7182 = vmatmul.mubr.f32.gmra.mrb[22].mxu0 %v10379_v0 }
 0x843   : > { %7184 = vmatprep.mubr.f32.mxu0 %v10456_v33  ;;  %7595 = vmatpush3.bf16.msra.mxu0 %v10275_v60  ;;  %v11050_v60 = vld [vmem:[#allocation55_spill] sm:$0xff] }
 0x844   : > { %7597 = vmatprep.subr.bf16.mxu0 %v11047_v18 }
 0x846   : > { %7185 = vmatmul.mubr.f32.gmra.mrb[24].mxu0 %v10438_v4 }
 0x847   : > { %7187 = vmatprep.mubr.f32.mxu0 %v10508_v25 }
 0x84a   : > { %7188 = vmatmul.mubr.f32.gmra.mrb[26].mxu0 %v10494_v41 }
 0x84b   : > { %7190 = vmatprep.mubr.f32.mxu0 %v10546_v63 }
 0x84e   : > { %7191 = vmatmul.mubr.f32.gmra.mrb[28].mxu0 %v10560_v54 }
 0x84f   : > { %7193 = vmatprep.mubr.f32.mxu0 %v10542_v46 }
 0x852   : > { %7194 = vmatmul.mubr.f32.gmra.mrb[30].mxu0 %v10575_v57 }
 0x853   : > { %7212 = vmatprep.mubr.f32.mxu0 %v11048_v36  ;;  %v11072_v36 = vld [vmem:[#allocation6_spill] sm:$0xff] }
 0x856   : > { %7213 = vmatmul.mubr.f32.vlgmr.msra.gmra.mrb[16].mxu0 %v11049_v24  ;;  %v11073_v24 = vand.u32 4294901760, %v11072_v36 }
 0x857   : > { %7599 = vmatpush3.bf16.msra.mxu0 %v11047_v18  ;;  %7215 = vmatprep.mubr.f32.mxu0 %v10285_v28 }
 0x858   : > { %7601 = vmatprep.subr.bf16.mxu0 %v11050_v60  ;;  %v7624_v28 = vpack.c.bf16 %v11073_v24, %v11071_v15 }
 0x85a   : > { %7216 = vmatmul.mubr.f32.gmra.mrb[18].mxu0 %v10258_v3  ;;  %v11076_v3 = vand.u32 4294901760, %v11056_v35 }
 0x85b   : > { %7218 = vmatprep.mubr.f32.mxu0 %v10348_v21  ;;  %7603 = vmatpush3.bf16.msra.mxu0 %v11050_v60  ;;  %v11077_v21 = vand.u32 4294901760, %v10447_v39 }
 0x85c   : > { %7605 = vmatprep.subr.bf16.mxu0 %v11051_v59 }
 0x85e   : > { %7219 = vmatmul.mubr.f32.gmra.mrb[20].mxu0 %v10330_v16 }
 0x85f   : > { %7221 = vmatprep.mubr.f32.mxu0 %v10410_v50  ;;  %7607 = vmatpush3.bf16.msra.mxu0 %v11051_v59 }
 0x860   : > { %7609 = vmatprep.subr.bf16.mxu0 %v11052_v26 }
 0x862   : > { %7222 = vmatmul.mubr.f32.gmra.mrb[22].mxu0 %v11056_v35 }
 0x863   : > { %7224 = vmatprep.mubr.f32.mxu0 %v10467_v13  ;;  %7611 = vmatpush3.bf16.msra.mxu0 %v11052_v26 }
 0x864   : > { %7613 = vmatprep.subr.bf16.mxu0 %v7612_v48 }
 0x866   : > { %7225 = vmatmul.mubr.f32.gmra.mrb[24].mxu0 %v10447_v39 }
 0x867   : > { %7227 = vmatprep.mubr.f32.mxu0 %v10514_v58 }
 0x86a   : > { %7228 = vmatmul.mubr.f32.gmra.mrb[26].mxu0 %v10502_v22 }
 0x86b   : > { %7230 = vmatprep.mubr.f32.mxu0 %v10549_v11 }
 0x86e   : > { %7231 = vmatmul.mubr.f32.gmra.mrb[28].mxu0 %v10565_v56 }
 0x86f   : > { %7233 = vmatprep.mubr.f32.mxu0 %v10552_v61 }
 0x872   : > { %7234 = vmatmul.mubr.f32.gmra.mrb[30].mxu0 %v10578_v5 }
 0x873   : > { %7252 = vmatprep.mubr.f32.mxu0 %v11057_v43 }
 0x876   : > { %7253 = vmatmul.mubr.f32.vlgmr.msra.gmra.mrb[16].mxu0 %v11062_v44 }
 0x877   : > { %7615 = vmatpush3.bf16.msra.mxu0 %v7612_v48  ;;  %7255 = vmatprep.mubr.f32.mxu0 %v11063_v20 }
 0x878   : > { %7617 = vmatprep.subr.bf16.mxu0 %v7616_v53 }
 0x87a   : > { %7256 = vmatmul.mubr.f32.gmra.mrb[18].mxu0 %v11068_v51 }
 0x87b   : > { %7258 = vmatprep.mubr.f32.mxu0 %v11069_v19  ;;  %7619 = vmatpush3.bf16.msra.mxu0 %v7616_v53 }
 0x87c   : > { %7621 = vmatprep.subr.bf16.mxu0 %v7620_v2 }
 0x87e   : > { %7259 = vmatmul.mubr.f32.gmra.mrb[20].mxu0 %v11074_v38 }
 0x87f   : > { %7261 = vmatprep.mubr.f32.mxu0 %v11075_v7  ;;  %7623 = vmatpush3.bf16.msra.mxu0 %v7620_v2 }
 0x880   : > { %7625 = vmatprep.subr.bf16.mxu0 %v7624_v28 }
 0x882   : > { %7262 = vmatmul.mubr.f32.gmra.mrb[22].mxu0 %v11076_v3 }
 0x883   : > { %7264 = vmatprep.mubr.f32.mxu0 %v4814_v17  ;;  %7627 = vmatpush3.bf16.msra.mxu0 %v7624_v28 }
 0x884   : > { %7629 = vmatprep.subr.bf16.mxu0 %v11047_v18 }
 0x886   : > { %7265 = vmatmul.mubr.f32.gmra.mrb[24].mxu0 %v11077_v21 }
 0x887   : > { %7267 = vmatprep.mubr.f32.mxu0 %v4834_v31 }
 0x88a   : > { %7268 = vmatmul.mubr.f32.gmra.mrb[26].mxu0 %v4844_v12 }
 0x88b   : > { %7270 = vmatprep.mubr.f32.mxu0 %v4854_v55 }
 0x88e   : > { %7271 = vmatmul.mubr.f32.gmra.mrb[28].mxu0 %v4864_v27 }
 0x88f   : > { %7273 = vmatprep.mubr.f32.mxu0 %v4874_v62 }
 0x892   : > { %7274 = vmatmul.mubr.f32.gmra.mrb[30].mxu0 %v4884_v45 }
 0x893   : > { %7292 = vmatprep.mubr.f32.mxu0 %v10202_v6 }
 0x896   : > { %7293 = vmatmul.mubr.f32.vlgmr.msra.gmra.mrb[16].mxu0 %v10149_v40 }
 0x897   : > { %7631 = vmatpush3.bf16.msra.mxu0 %v11047_v18  ;;  %7295 = vmatprep.mubr.f32.mxu0 %v10271_v10 }
 0x898   : > { %7633 = vmatprep.subr.bf16.mxu0 %v11050_v60 }
 0x89a   : > { %7296 = vmatmul.mubr.f32.gmra.mrb[18].mxu0 %v10241_v37 }
 0x89b   : > { %7298 = vmatprep.mubr.f32.mxu0 %v10342_v8  ;;  %7635 = vmatpush3.bf16.msra.mxu0 %v11050_v60 }
 0x89c   : > { %7637 = vmatprep.subr.bf16.mxu0 %v11051_v59 }
 0x89e   : > { %7299 = vmatmul.mubr.f32.gmra.mrb[20].mxu0 %v10317_v14 }
 0x89f   : > { %7301 = vmatprep.mubr.f32.mxu0 %v10404_v42  ;;  %7639 = vmatpush3.bf16.msra.mxu0 %v11051_v59 }
 0x8a0   : > { %7641 = vmatprep.subr.bf16.mxu0 %v11052_v26 }
 0x8a2   : > { %7302 = vmatmul.mubr.f32.gmra.mrb[22].mxu0 %v10379_v0 }
 0x8a3   : > { %7304 = vmatprep.mubr.f32.mxu0 %v10456_v33  ;;  %7643 = vmatpush3.bf16.msra.mxu0 %v11052_v26 }
 0x8a6   : > { %7305 = vmatmul.mubr.f32.gmra.mrb[24].mxu0 %v10438_v4 }
 0x8a7   : > { %7307 = vmatprep.mubr.f32.mxu0 %v10508_v25 }
 0x8aa   : > { %7308 = vmatmul.mubr.f32.gmra.mrb[26].mxu0 %v10494_v41 }
 0x8ab   : > { %7310 = vmatprep.mubr.f32.mxu0 %v10546_v63 }
 0x8ae   : > { %7311 = vmatmul.mubr.f32.gmra.mrb[28].mxu0 %v10560_v54 }
 0x8af   : > { %7313 = vmatprep.mubr.f32.mxu0 %v10542_v46 }
 0x8b2   : > { %7314 = vmatmul.mubr.f32.gmra.mrb[30].mxu0 %v10575_v57 }
 0x8b3   : > { %7332 = vmatprep.mubr.f32.mxu0 %v10202_v6 }
 0x8b6   : > { %7333 = vmatmul.mubr.f32.vlgmr.msra.gmra.mrb[16].mxu0 %v10149_v40  ;;  %v10722_v40 = vld [vmem:[%s10828_s9] ss:$0 sm:$0xff] }
 0x8b7   : > { %7335 = vmatprep.mubr.f32.mxu0 %v10271_v10 }
 0x8ba   : > { %7336 = vmatmul.mubr.f32.gmra.mrb[18].mxu0 %v10241_v37 }
 0x8bb   : > { %7338 = vmatprep.mubr.f32.mxu0 %v10342_v8  ;;  %v10729_v8 = vld [vmem:[%s10829_s10] ss:$0 sm:$0xff] }
 0x8be   : > { %7339 = vmatmul.mubr.f32.gmra.mrb[20].mxu0 %v10317_v14 }
 0x8bf   : > { %7341 = vmatprep.mubr.f32.mxu0 %v10404_v42 }
 0x8c2   : > { %7342 = vmatmul.mubr.f32.gmra.mrb[22].mxu0 %v10379_v0 }
 0x8c3   : > { %7344 = vmatprep.mubr.f32.mxu0 %v10456_v33 }
 0x8c6   : > { %7345 = vmatmul.mubr.f32.gmra.mrb[24].mxu0 %v10438_v4 }
 0x8c7   : > { %7347 = vmatprep.mubr.f32.mxu0 %v10508_v25 }
 0x8ca   : > { %7348 = vmatmul.mubr.f32.gmra.mrb[26].mxu0 %v10494_v41 }
 0x8cb   : > { %7350 = vmatprep.mubr.f32.mxu0 %v10546_v63 }
 0x8ce   : > { %7351 = vmatmul.mubr.f32.gmra.mrb[28].mxu0 %v10560_v54 }
 0x8cf   : > { %7353 = vmatprep.mubr.f32.mxu0 %v10542_v46 }
 0x8d2   : > { %7354 = vmatmul.mubr.f32.gmra.mrb[30].mxu0 %v10575_v57 }
 0x989   : > { %v7334_v6 = vpop.f32.mrb[16].mxu0 }
 0x98a   : > { %v7660_v37 = vadd.f32 %v7334_v6, %v10722_v40  ;;  %v5747_v10 = vpop.f32.mrb[17].mxu0 }
 0x98b   : > { %v7661_v14 = vadd.f32 %v10722_v40, %v5747_v10 }
 0x98c   : > { %vm5842_vm5 = vcmp.gt.f32.partialorder %v7660_v37, 0.0  ;;  %v5858_v16 = vmul.f32 0.01, %v7660_v37 }
 0x98d   : > { %vm5841_vm6 = vcmp.gt.f32.partialorder %v7661_v14, 0.0  ;;  %v5857_v0 = vmul.f32 0.01, %v7661_v14  ;;  %v7337_v4 = vpop.f32.mrb[18].mxu0 }
 0x98e   : > { %v7662_v42 = vadd.f32 %v7337_v4, %v10722_v40  ;;  %v5759_v50 = vpop.f32.mrb[19].mxu0  ;;  %v5874_v39 = vsel %vm5842_vm5, %v7660_v37, %v5858_v16 }
 0x98f   : > { %v7663_v33 = vadd.f32 %v10722_v40, %v5759_v50  ;;  %v5897_v13 = vmul.f32 %v10729_v8, %v5874_v39  ;;  %v5873_v17 = vsel %vm5841_vm6, %v7661_v14, %v5857_v0  ;;  %vm5983_vm6 = vcmask 7168  }
 0x990   : > { %vm5844_vm7 = vcmp.gt.f32.partialorder %v7662_v42, 0.0  ;;  %v5860_v41 = vmul.f32 0.01, %v7662_v42  ;;  %v5896_v22 = vmul.f32 %v10729_v8, %v5873_v17 }
 0x991   : > { %vm5843_vm8 = vcmp.gt.f32.partialorder %v7663_v33, 0.0  ;;  %v5859_v25 = vmul.f32 0.01, %v7663_v33  ;;  %v7340_v12 = vpop.f32.mrb[20].mxu0  ;;  %v5915_v58 = vsel %vm637_vm0, %v5897_v13, 0.0 }
 0x992   : > { %v7664_v31 = vadd.f32 %v7340_v12, %v10722_v40  ;;  %5916 = vadd.xlane.f32.xlu0 %v5915_v58  ;;  %v5771_v46 = vpop.f32.mrb[21].mxu0  ;;  %v5912_v63 = vsel %vm637_vm0, %v5896_v22, 0.0  ;;  %v5876_v11 = vsel %vm5844_vm7, %v7662_v42, %v5860_v41 }
 0x993   : > { %v7665_v61 = vadd.f32 %v10722_v40, %v5771_v46  ;;  %5913 = vadd.xlane.f32.xlu1 %v5912_v63  ;;  %v5899_v55 = vmul.f32 %v10729_v8, %v5876_v11  ;;  %v5875_v54 = vsel %vm5843_vm8, %v7663_v33, %v5859_v25 }
 0x994   : > { %vm5846_vm9 = vcmp.gt.f32.partialorder %v7664_v31, 0.0  ;;  %v5862_v62 = vmul.f32 0.01, %v7664_v31  ;;  %v5898_v56 = vmul.f32 %v10729_v8, %v5875_v54 }
 0x995   : > { %vm5845_vm10 = vcmp.gt.f32.partialorder %v7665_v61, 0.0  ;;  %v5861_v27 = vmul.f32 0.01, %v7665_v61  ;;  %v7343_v57 = vpop.f32.mrb[22].mxu0  ;;  %v5921_v5 = vsel %vm637_vm0, %v5899_v55, 0.0 }
 0x996   : > { %v7666_v45 = vadd.f32 %v7343_v57, %v10722_v40  ;;  %5922 = vadd.xlane.f32.xlu0 %v5921_v5  ;;  %v5783_v18 = vpop.f32.mrb[23].mxu0  ;;  %v5918_v60 = vsel %vm637_vm0, %v5898_v56, 0.0  ;;  %v5878_v59 = vsel %vm5846_vm9, %v7664_v31, %v5862_v62 }
 0x997   : > { %v7667_v26 = vadd.f32 %v10722_v40, %v5783_v18  ;;  %5919 = vadd.xlane.f32.xlu1 %v5918_v60  ;;  %v5901_v49 = vmul.f32 %v10729_v8, %v5878_v59  ;;  %v5877_v48 = vsel %vm5845_vm10, %v7665_v61, %v5861_v27  ;;  %v6201_v59 = vld [vmem:[#allocation2] ss:$0 sm:$0xff] }
 0x998   : > { %vm5848_vm11 = vcmp.gt.f32.partialorder %v7666_v45, 0.0  ;;  %v5864_v35 = vmul.f32 0.01, %v7666_v45  ;;  %v5900_v43 = vmul.f32 %v10729_v8, %v5877_v48 }
 0x999   : > { %vm5847_vm12 = vcmp.gt.f32.partialorder %v7667_v26, 0.0  ;;  %v5863_v30 = vmul.f32 0.01, %v7667_v26  ;;  %v7346_v32 = vpop.f32.mrb[24].mxu0  ;;  %v5927_v34 = vsel %vm637_vm0, %v5901_v49, 0.0 }
 0x99a   : > { %v7668_v9 = vadd.f32 %v7346_v32, %v10722_v40  ;;  %5928 = vadd.xlane.f32.xlu0 %v5927_v34  ;;  %v5795_v53 = vpop.f32.mrb[25].mxu0  ;;  %v5924_v44 = vsel %vm637_vm0, %v5900_v43, 0.0  ;;  %v5880_v20 = vsel %vm5848_vm11, %v7666_v45, %v5864_v35 }
 0x99b   : > { %v7669_v1 = vadd.f32 %v10722_v40, %v5795_v53  ;;  %5925 = vadd.xlane.f32.xlu1 %v5924_v44  ;;  %v5903_v47 = vmul.f32 %v10729_v8, %v5880_v20  ;;  %v5879_v52 = vsel %vm5847_vm12, %v7667_v26, %v5863_v30 }
 0x99c   : > { %vm5850_vm13 = vcmp.gt.f32.partialorder %v7668_v9, 0.0  ;;  %v5866_v29 = vmul.f32 0.01, %v7668_v9  ;;  %v5902_v2 = vmul.f32 %v10729_v8, %v5879_v52 }
 0x99d   : > { %vm5849_vm14 = vcmp.gt.f32.partialorder %v7669_v1, 0.0  ;;  %v5865_v51 = vmul.f32 0.01, %v7669_v1  ;;  %v7349_v19 = vpop.f32.mrb[26].mxu0  ;;  %v5933_v23 = vsel %vm637_vm0, %v5903_v47, 0.0 }
 0x99e   : > { %v7670_v15 = vadd.f32 %v7349_v19, %v10722_v40  ;;  %5934 = vadd.xlane.f32.xlu0 %v5933_v23  ;;  %v5807_v36 = vpop.f32.mrb[27].mxu0  ;;  %v5930_v24 = vsel %vm637_vm0, %v5902_v2, 0.0  ;;  %v5882_v28 = vsel %vm5850_vm13, %v7668_v9, %v5866_v29 }
 0x99f   : > { %v7671_v38 = vadd.f32 %v10722_v40, %v5807_v36  ;;  %5931 = vadd.xlane.f32.xlu1 %v5930_v24  ;;  %v5905_v7 = vmul.f32 %v10729_v8, %v5882_v28  ;;  %v5881_v3 = vsel %vm5849_vm14, %v7669_v1, %v5865_v51 }
 0x9a0   : > { %vm5852_vm15 = vcmp.gt.f32.partialorder %v7670_v15, 0.0  ;;  %v5868_v21 = vmul.f32 0.01, %v7670_v15  ;;  %v5904_v6 = vmul.f32 %v10729_v8, %v5881_v3 }
 0x9a1   : > { %vm5851_vm1 = vcmp.gt.f32.partialorder %v7671_v38, 0.0  ;;  %v5867_v37 = vmul.f32 0.01, %v7671_v38  ;;  %v7352_v10 = vpop.f32.mrb[28].mxu0  ;;  %v5939_v14 = vsel %vm637_vm0, %v5905_v7, 0.0 }
 0x9a2   : > { %v7672_v16 = vadd.f32 %v7352_v10, %v10722_v40  ;;  %5940 = vadd.xlane.f32.xlu0 %v5939_v14  ;;  %v5819_v0 = vpop.f32.mrb[29].mxu0  ;;  %v5936_v4 = vsel %vm637_vm0, %v5904_v6, 0.0  ;;  %v5884_v42 = vsel %vm5852_vm15, %v7670_v15, %v5868_v21 }
 0x9a3   : > { %v7673_v50 = vadd.f32 %v10722_v40, %v5819_v0  ;;  %5937 = vadd.xlane.f32.xlu1 %v5936_v4  ;;  %v5907_v39 = vmul.f32 %v10729_v8, %v5884_v42  ;;  %v5883_v33 = vsel %vm5851_vm1, %v7671_v38, %v5867_v37 }
 0x9a4   : > { %vm5854_vm2 = vcmp.gt.f32.partialorder %v7672_v16, 0.0  ;;  %v5870_v13 = vmul.f32 0.01, %v7672_v16  ;;  %v5906_v17 = vmul.f32 %v10729_v8, %v5883_v33 }
 0x9a5   : > { %vm5853_vm3 = vcmp.gt.f32.partialorder %v7673_v50, 0.0  ;;  %v5869_v41 = vmul.f32 0.01, %v7673_v50  ;;  %v7355_v22 = vpop.f32.mrb[30].mxu0  ;;  %v5945_v25 = vsel %vm637_vm0, %v5907_v39, 0.0 }
 0x9a6   : > { %v7674_v12 = vadd.f32 %v7355_v22, %v10722_v40  ;;  %5946 = vadd.xlane.f32.xlu0 %v5945_v25  ;;  %v5831_v58 = vpop.f32.mrb[31].mxu0  ;;  %v5942_v31 = vsel %vm637_vm0, %v5906_v17, 0.0  ;;  %v5886_v46 = vsel %vm5854_vm2, %v7672_v16, %v5870_v13 }
 0x9a7   : > { %v7675_v63 = vadd.f32 %v10722_v40, %v5831_v58  ;;  %5943 = vadd.xlane.f32.xlu1 %v5942_v31  ;;  %v5909_v11 = vmul.f32 %v10729_v8, %v5886_v46  ;;  %v5885_v61 = vsel %vm5853_vm3, %v7673_v50, %v5869_v41 }
 0x9a8   : > { %vm5856_vm4 = vcmp.gt.f32.partialorder %v7674_v12, 0.0  ;;  %v5872_v55 = vmul.f32 0.01, %v7674_v12  ;;  %v5908_v54 = vmul.f32 %v10729_v8, %v5885_v61 }
 0x9a9   : > { %vm5855_vm5 = vcmp.gt.f32.partialorder %v7675_v63, 0.0  ;;  %v5871_v62 = vmul.f32 0.01, %v7675_v63  ;;  %v5951_v56 = vsel %vm637_vm0, %v5909_v11, 0.0 }
 0x9aa   : > { %5952 = vadd.xlane.f32.xlu0 %v5951_v56  ;;  %v5948_v27 = vsel %vm637_vm0, %v5908_v54, 0.0  ;;  %v5888_v57 = vsel %vm5856_vm4, %v7674_v12, %v5872_v55 }
 0x9ab   : > { %5949 = vadd.xlane.f32.xlu1 %v5948_v27  ;;  %v5911_v40 = vmul.f32 %v10729_v8, %v5888_v57  ;;  %v5887_v5 = vsel %vm5855_vm5, %v7675_v63, %v5871_v62 }
 0x9ac   : > { %v5910_v45 = vmul.f32 %v10729_v8, %v5887_v5 }
 0x9ad   : > { %v5957_v18 = vsel %vm637_vm0, %v5911_v40, 0.0 }
 0x9ae   : > { %5958 = vadd.xlane.f32.xlu0 %v5957_v18  ;;  %v5954_v60 = vsel %vm637_vm0, %v5910_v45, 0.0 }
 0x9af   : > { %5955 = vadd.xlane.f32.xlu1 %v5954_v60 }
 0xa1f   : > { %v5917_v26 = vpop.xlane.xlu0 %5916 }
 0xa20   : > { %v5968_v8 = vadd.f32 %v6201_v59, %v5917_v26  ;;  %v5914_v49 = vpop.xlane.xlu1 %5913 }
 0xa21   : > { %v5967_v48 = vadd.f32 %v6201_v59, %v5914_v49 }
 0xa22   : > { %5985 = vst.msk [vmem:[%s10782_s18 + $0x8] sm:$0xff] %vm5983_vm6, %v5968_v8 }
 0xa23   : > { %5984 = vst.msk [vmem:[%s10782_s18] sm:$0xff] %vm5983_vm6, %v5967_v48  ;;  %v5923_v35 = vpop.xlane.xlu0 %5922 }
 0xa24   : > { %v5970_v43 = vadd.f32 %v6201_v59, %v5923_v35  ;;  %v5920_v30 = vpop.xlane.xlu1 %5919 }
 0xa25   : > { %v5969_v32 = vadd.f32 %v6201_v59, %v5920_v30 }
 0xa26   : > { %5987 = vst.msk [vmem:[%s10782_s18 + $0x18] sm:$0xff] %vm5983_vm6, %v5970_v43 }
 0xa27   : > { %5986 = vst.msk [vmem:[%s10782_s18 + $0x10] sm:$0xff] %vm5983_vm6, %v5969_v32  ;;  %v5929_v34 = vpop.xlane.xlu0 %5928 }
 0xa28   : > { %v5972_v9 = vadd.f32 %v6201_v59, %v5929_v34  ;;  %v5926_v53 = vpop.xlane.xlu1 %5925 }
 0xa29   : > { %v5971_v44 = vadd.f32 %v6201_v59, %v5926_v53 }
 0xa2a   : > { %5989 = vst.msk [vmem:[%s10782_s18 + $0x28] sm:$0xff] %vm5983_vm6, %v5972_v9 }
 0xa2b   : > { %5988 = vst.msk [vmem:[%s10782_s18 + $0x20] sm:$0xff] %vm5983_vm6, %v5971_v44  ;;  %v5935_v20 = vpop.xlane.xlu0 %5934 }
 0xa2c   : > { %v5974_v1 = vadd.f32 %v6201_v59, %v5935_v20  ;;  %v5932_v47 = vpop.xlane.xlu1 %5931 }
 0xa2d   : > { %v5973_v52 = vadd.f32 %v6201_v59, %v5932_v47 }
 0xa2e   : > { %5991 = vst.msk [vmem:[%s10782_s18 + $0x38] sm:$0xff] %vm5983_vm6, %v5974_v1 }
 0xa2f   : > { %5990 = vst.msk [vmem:[%s10782_s18 + $0x30] sm:$0xff] %vm5983_vm6, %v5973_v52  ;;  %v5941_v29 = vpop.xlane.xlu0 %5940 }
 0xa30   : > { %v5976_v2 = vadd.f32 %v6201_v59, %v5941_v29  ;;  %v5938_v51 = vpop.xlane.xlu1 %5937 }
 0xa31   : > { %v5975_v19 = vadd.f32 %v6201_v59, %v5938_v51 }
 0xa32   : > { %5993 = vst.msk [vmem:[%s10782_s18 + $0x48] sm:$0xff] %vm5983_vm6, %v5976_v2 }
 0xa33   : > { %5992 = vst.msk [vmem:[%s10782_s18 + $0x40] sm:$0xff] %vm5983_vm6, %v5975_v19  ;;  %v5947_v23 = vpop.xlane.xlu0 %5946 }
 0xa34   : > { %v5978_v15 = vadd.f32 %v6201_v59, %v5947_v23  ;;  %v5944_v36 = vpop.xlane.xlu1 %5943 }
 0xa35   : > { %v5977_v24 = vadd.f32 %v6201_v59, %v5944_v36 }
 0xa36   : > { %5995 = vst.msk [vmem:[%s10782_s18 + $0x58] sm:$0xff] %vm5983_vm6, %v5978_v15 }
 0xa37   : > { %5994 = vst.msk [vmem:[%s10782_s18 + $0x50] sm:$0xff] %vm5983_vm6, %v5977_v24  ;;  %v5953_v28 = vpop.xlane.xlu0 %5952 }
 0xa38   : > { %v5980_v38 = vadd.f32 %v6201_v59, %v5953_v28  ;;  %v5950_v7 = vpop.xlane.xlu1 %5949 }
 0xa39   : > { %v5979_v3 = vadd.f32 %v6201_v59, %v5950_v7 }
 0xa3a   : > { %5997 = vst.msk [vmem:[%s10782_s18 + $0x68] sm:$0xff] %vm5983_vm6, %v5980_v38 }
 0xa3b   : > { %5996 = vst.msk [vmem:[%s10782_s18 + $0x60] sm:$0xff] %vm5983_vm6, %v5979_v3  ;;  %v5959_v21 = vpop.xlane.xlu0 %5958 }
 0xa3c   : > { %v5982_v6 = vadd.f32 %v6201_v59, %v5959_v21  ;;  %v5956_v37 = vpop.xlane.xlu1 %5955 }
 0xa3d   : > { %v5981_v10 = vadd.f32 %v6201_v59, %v5956_v37 }
 0xa3e   : > { %5999 = vst.msk [vmem:[%s10782_s18 + $0x78] sm:$0xff] %vm5983_vm6, %v5982_v6 }
 0xa3f   : > { %5998 = vst.msk [vmem:[%s10782_s18 + $0x70] sm:$0xff] %vm5983_vm6, %v5981_v10 }
 0xa40 PF: > { %s24_s23 = sadd.s32 1, %s7924_s23  }
 0xa41   : > { %p21_p4 = scmp.ge.s32.totalorder %s24_s23, 4  }
 0xa43   :  { %23 = sbr.rel (!%p21_p4) target bundleno = 3 (0x3), region = 98 }

</bundles_post_ra>
